<compile_context>
chip_gen: v6e
topology: v6e:2x2x1
jax: 0.10.0
libtpu: 0.0.40
codegen_flags: <defaults>
</compile_context>

<pallas_src>
import functools

import jax
import jax.numpy as jnp
import numpy as np
from jax import lax
from jax.experimental import pallas as pl
from jax.experimental.pallas import tpu as pltpu

_LANE = 128


def _dwconv_bn_kernel(x_ref, w_ref, b_ref, o_ref, *, ci_g, K, S, Ho, Wo, Cb, HB):
    """One grid step: one image x one channel block of the grouped conv + folded BN.

    x_ref : VMEM (1, ci_g, Hp, Wp, Cb)   zero-padded, channel-replicated input (NHWC-ish)
    w_ref : VMEM (ci_g, K, K, Cb)        BN-scaled conv weights, channels on lanes
    b_ref : VMEM (1, Cb)                 BN shift (includes conv bias), channels on lanes
    o_ref : VMEM (1, Ho, Wo, Cb)         output block, channels on lanes (lane-dense)
    """
    # Per-lane weight vectors: loaded once per grid step and reused by every row block
    # (hoisted on purpose -- JAX does not CSE loads/broadcasts inside loops).
    w_taps = [[[w_ref[pl.ds(c, 1), kh, pl.ds(kw, 1), :]          # each (1, 1, Cb)
                for kw in range(K)] for kh in range(K)] for c in range(ci_g)]
    b_vec = b_ref[...]                                           # (1, Cb)

    # Static row-block loop: all slice starts are static, and vreg pressure stays
    # ~2 * HB * Wo * Cb floats independent of the image height.
    for h0 in range(0, Ho, HB):
        hb = min(HB, Ho - h0)
        acc = jnp.broadcast_to(b_vec, (hb, Wo, Cb))              # BN-shift seed
        for c in range(ci_g):                                    # ci_g == 1 for depthwise
            for kh in range(K):
                h_start = h0 * S + kh
                for kw in range(K):
                    if S == 1:
                        xw = x_ref[0, c, pl.ds(h_start, hb), pl.ds(kw, Wo), :]
                    else:
                        # stride > 1: sublane-strided reads only (never lane-strided).
                        xw = x_ref[0, c, pl.ds(h_start, hb, S), pl.ds(kw, Wo, S), :]
                    acc = acc + xw * w_taps[c][kh][kw]           # (hb, Wo, Cb) VPU FMA
        o_ref[0, pl.ds(h0, hb), :, :] = acc                      # unmasked, lane-dense


def _vmem_capacity_bytes():
    try:
        return int(pltpu.get_tpu_info().vmem_capacity_bytes)
    except Exception:
        return 64 * 1024 * 1024          # conservative (v7x-sized) fallback


def _block_vmem_bytes(cb, ci_g, Hp, Wp, Ho, Wo, K):
    # double-buffered input/output blocks + (double-buffered) weights and shift, f32
    return 4 * (2 * ci_g * Hp * Wp * cb + 2 * Ho * Wo * cb
                + 2 * ci_g * K * K * cb + 2 * cb)


@functools.partial(jax.jit,
                   static_argnames=("kernel_size", "stride", "groups", "eps"))
def depthwise_conv2d_bn(x, weight, bias, gamma, beta, run_mean, run_var, *,
                        kernel_size, stride, groups, eps=1e-5):
    """Grouped KxK conv (padding=K//2, with bias) + BatchNorm2d (eval mode).

    x:      (N, Cin, H, W) float32, NCHW
    weight: (Cout, Cin//groups, K, K);  bias/gamma/beta/run_mean/run_var: (Cout,)
    returns (N, Cout, Ho, Wo), NCHW
    """
    N, Cin, H, W = x.shape
    Cout = weight.shape[0]
    K, S, P = kernel_size, stride, kernel_size // 2
    ci_g, co_g = Cin // groups, Cout // groups
    Hp, Wp = H + 2 * P, W + 2 * P
    Ho = (H + 2 * P - K) // S + 1
    Wo = (W + 2 * P - K) // S + 1
    Cp = ((Cout + _LANE - 1) // _LANE) * _LANE      # lane-dense channel padding

    # ---- fold eval-mode BN + conv bias: scale -> weights, shift -> per-lane vector ----
    scale = gamma / jnp.sqrt(run_var + eps)                              # (Cout,)
    shift = (beta - run_mean * scale + bias * scale).astype(jnp.float32)
    w_scaled = weight.astype(jnp.float32) * scale[:, None, None, None]   # (Cout,ci_g,K,K)
    w_cl = jnp.transpose(w_scaled, (1, 2, 3, 0))                         # (ci_g,K,K,Cout)
    w_cl = jnp.pad(w_cl, ((0, 0), (0, 0), (0, 0), (0, Cp - Cout)))
    shift_cl = jnp.pad(shift, (0, Cp - Cout)).reshape(1, Cp)

    # ---- channels-last re-layout (+ grouped-channel replication + zero padding) -------
    # All folded into one XLA copy in the wrapper: the kernel never memsets a padded
    # scratch and never reads scalar weights.
    x_nhwc = jnp.transpose(x.astype(jnp.float32), (0, 2, 3, 1))          # (N,H,W,Cin)
    if ci_g == 1 and co_g == 1:
        # true depthwise (groups == Cin == Cout): identity channel map, no gather
        x_exp = x_nhwc[:, None]                                          # (N,1,H,W,Cout)
    else:
        # x_exp[n, c, h, w, co] = x[n, (co // co_g) * ci_g + c, h, w]
        ch_idx = (((jnp.arange(Cout) // co_g) * ci_g)[None, :]
                  + jnp.arange(ci_g)[:, None])                           # (ci_g, Cout)
        x_exp = jnp.take(x_nhwc, ch_idx.reshape(-1), axis=3)
        x_exp = x_exp.reshape(N, H, W, ci_g, Cout)
        x_exp = jnp.transpose(x_exp, (0, 3, 1, 2, 4))                    # (N,ci_g,H,W,Cout)
    x_exp = jnp.pad(x_exp, ((0, 0), (0, 0), (P, P), (P, P), (0, Cp - Cout)))

    # ---- per-generation VMEM budget and channel-block (lane-tile) selection -----------
    capacity = _vmem_capacity_bytes()
    budget = capacity // 3               # ~21 MiB on v7x (64 MiB), ~42 MiB on v5e/v6e (128 MiB)
    cb = _LANE
    for cand in range(_LANE, Cp + 1, _LANE):
        if Cp % cand:
            continue
        # keep the (N, C-blocks) grid >= 2 steps so both v7x TensorCores get work
        keeps_grid = (N >= 2) or (Cp // cand >= 2) or (cand == _LANE)
        if keeps_grid and _block_vmem_bytes(cand, ci_g, Hp, Wp, Ho, Wo, K) <= budget:
            cb = cand
    est = _block_vmem_bytes(cb, ci_g, Hp, Wp, Ho, Wo, K)
    vmem_limit = int(min(int(0.85 * capacity), max(budget, 2 * est)))
    # TODO(synk): no spatial tiling here; gigantic H*W images would need a row-tiled
    #             (halo) variant to stay under the VMEM limit.

    # Row block: bounds live vreg bytes to roughly 2 * HB * Wo * cb * 4.
    HB = max(1, min(Ho, (48 * 1024) // max(1, 4 * Wo * cb)))

    kernel = functools.partial(_dwconv_bn_kernel, ci_g=ci_g, K=K, S=S,
                               Ho=Ho, Wo=Wo, Cb=cb, HB=HB)

    y_cl = pl.pallas_call(
        kernel,
        out_shape=jax.ShapeDtypeStruct((N, Ho, Wo, Cp), jnp.float32),
        grid=(N, Cp // cb),
        in_specs=[
            pl.BlockSpec((1, ci_g, Hp, Wp, cb), lambda n, j: (n, 0, 0, 0, j)),
            pl.BlockSpec((ci_g, K, K, cb), lambda n, j: (0, 0, 0, j)),
            pl.BlockSpec((1, cb), lambda n, j: (0, j)),
        ],
        out_specs=pl.BlockSpec((1, Ho, Wo, cb), lambda n, j: (n, 0, 0, j)),
        compiler_params=pltpu.CompilerParams(
            dimension_semantics=("parallel", "parallel"),
            vmem_limit_bytes=vmem_limit),
    )(x_exp, w_cl, shift_cl)

    # strip lane padding; free-ish transpose back to NCHW to match the PyTorch module
    return jnp.transpose(y_cl[..., :Cout], (0, 3, 1, 2))


def _reference(x, weight, bias, gamma, beta, run_mean, run_var,
               kernel_size, stride, groups, eps=1e-5):
    """Pure-JAX reference: grouped conv (padding=K//2) + eval-mode BatchNorm2d."""
    P = kernel_size // 2
    y = lax.conv_general_dilated(
        x, weight, window_strides=(stride, stride),
        padding=((P, P), (P, P)),
        dimension_numbers=("NCHW", "OIHW", "NCHW"),
        feature_group_count=groups)
    y = y + bias[None, :, None, None]
    y = (y - run_mean[None, :, None, None]) / jnp.sqrt(
        run_var[None, :, None, None] + eps)
    return y * gamma[None, :, None, None] + beta[None, :, None, None]


if __name__ == "__main__":
    key = jax.random.PRNGKey(0)

    def make_case(k, N, Cin, Cout, G, K, S, H, W):
        kx, kw_, kb, kg, kbe, krm, krv = jax.random.split(k, 7)
        x = jax.random.normal(kx, (N, Cin, H, W), dtype=jnp.float32)
        weight = jax.random.normal(kw_, (Cout, Cin // G, K, K), jnp.float32) * 0.1
        bias = jax.random.normal(kb, (Cout,), jnp.float32) * 0.1
        gamma = 1.0 + 0.1 * jax.random.normal(kg, (Cout,), jnp.float32)
        beta = 0.1 * jax.random.normal(kbe, (Cout,), jnp.float32)
        run_mean = 0.1 * jax.random.normal(krm, (Cout,), jnp.float32)
        run_var = jnp.abs(jax.random.normal(krv, (Cout,), jnp.float32)) + 0.5
        return (x, weight, bias, gamma, beta, run_mean, run_var)

    cases = [
        # DepthwiseConv2d(in_channel=8, out_channel=16, kernel_size=3, stride=1, groups=4)
        dict(N=2, Cin=8, Cout=16, G=4, K=3, S=1, H=16, W=16),
        # true depthwise: groups == in_channel == out_channel
        dict(N=2, Cin=16, Cout=16, G=16, K=3, S=1, H=16, W=16),
    ]
    keys = jax.random.split(key, len(cases))
    for cfg, k in zip(cases, keys):
        args = make_case(k, cfg["N"], cfg["Cin"], cfg["Cout"], cfg["G"],
                         cfg["K"], cfg["S"], cfg["H"], cfg["W"])
        out = depthwise_conv2d_bn(*args, kernel_size=cfg["K"], stride=cfg["S"],
                                  groups=cfg["G"])
        out = jax.block_until_ready(out)
        ref = _reference(*args, cfg["K"], cfg["S"], cfg["G"])
        np.testing.assert_allclose(np.asarray(out), np.asarray(ref),
                                   rtol=1e-4, atol=1e-5)

    print("KERNEL_OK")
</pallas_src>

<mosaic_0001>
module attributes {stable_mosaic.version = 11 : i64} {
  func.func @_dwconv_bn_kernel(%arg0: i32, %arg1: i32, %arg2: memref<1x2x18x18x128xf32, #tpu.memory_space<vmem>>, %arg3: memref<2x3x3x128xf32, #tpu.memory_space<vmem>>, %arg4: memref<1x128xf32, #tpu.memory_space<vmem>>, %arg5: memref<1x16x16x128xf32, #tpu.memory_space<vmem>>) attributes {dimension_semantics = [#tpu.dimension_semantics<parallel>, #tpu.dimension_semantics<parallel>], iteration_bounds = array<i64: 2, 1>, scalar_prefetch = 0 : i64, scratch_operands = 0 : i64, tpu.core_type = #tpu.core_type<tc>, window_params = [{transform_indices = @transform_0, window_bounds = array<i64: 1, 2, 18, 18, 128>}, {transform_indices = @transform_1, window_bounds = array<i64: 2, 3, 3, 128>}, {transform_indices = @transform_2, window_bounds = array<i64: 1, 128>}, {transform_indices = @transform_3, window_bounds = array<i64: 1, 16, 16, 128>}]} {
    %c0 = arith.constant 0 : index
    %c0_0 = arith.constant 0 : index
    %c0_1 = arith.constant 0 : index
    %c0_2 = arith.constant 0 : index
    %0 = vector.load %arg3[%c0, %c0_0, %c0_1, %c0_2] : memref<2x3x3x128xf32, #tpu.memory_space<vmem>>, vector<1x1x1x128xf32>
    %1 = vector.shape_cast %0 : vector<1x1x1x128xf32> to vector<1x1x128xf32>
    %c0_3 = arith.constant 0 : index
    %c0_4 = arith.constant 0 : index
    %c1 = arith.constant 1 : index
    %c0_5 = arith.constant 0 : index
    %2 = vector.load %arg3[%c0_3, %c0_4, %c1, %c0_5] : memref<2x3x3x128xf32, #tpu.memory_space<vmem>>, vector<1x1x1x128xf32>
    %3 = vector.shape_cast %2 : vector<1x1x1x128xf32> to vector<1x1x128xf32>
    %c0_6 = arith.constant 0 : index
    %c0_7 = arith.constant 0 : index
    %c2 = arith.constant 2 : index
    %c0_8 = arith.constant 0 : index
    %4 = vector.load %arg3[%c0_6, %c0_7, %c2, %c0_8] : memref<2x3x3x128xf32, #tpu.memory_space<vmem>>, vector<1x1x1x128xf32>
    %5 = vector.shape_cast %4 : vector<1x1x1x128xf32> to vector<1x1x128xf32>
    %c0_9 = arith.constant 0 : index
    %c1_10 = arith.constant 1 : index
    %c0_11 = arith.constant 0 : index
    %c0_12 = arith.constant 0 : index
    %6 = vector.load %arg3[%c0_9, %c1_10, %c0_11, %c0_12] : memref<2x3x3x128xf32, #tpu.memory_space<vmem>>, vector<1x1x1x128xf32>
    %7 = vector.shape_cast %6 : vector<1x1x1x128xf32> to vector<1x1x128xf32>
    %c0_13 = arith.constant 0 : index
    %c1_14 = arith.constant 1 : index
    %c1_15 = arith.constant 1 : index
    %c0_16 = arith.constant 0 : index
    %8 = vector.load %arg3[%c0_13, %c1_14, %c1_15, %c0_16] : memref<2x3x3x128xf32, #tpu.memory_space<vmem>>, vector<1x1x1x128xf32>
    %9 = vector.shape_cast %8 : vector<1x1x1x128xf32> to vector<1x1x128xf32>
    %c0_17 = arith.constant 0 : index
    %c1_18 = arith.constant 1 : index
    %c2_19 = arith.constant 2 : index
    %c0_20 = arith.constant 0 : index
    %10 = vector.load %arg3[%c0_17, %c1_18, %c2_19, %c0_20] : memref<2x3x3x128xf32, #tpu.memory_space<vmem>>, vector<1x1x1x128xf32>
    %11 = vector.shape_cast %10 : vector<1x1x1x128xf32> to vector<1x1x128xf32>
    %c0_21 = arith.constant 0 : index
    %c2_22 = arith.constant 2 : index
    %c0_23 = arith.constant 0 : index
    %c0_24 = arith.constant 0 : index
    %12 = vector.load %arg3[%c0_21, %c2_22, %c0_23, %c0_24] : memref<2x3x3x128xf32, #tpu.memory_space<vmem>>, vector<1x1x1x128xf32>
    %13 = vector.shape_cast %12 : vector<1x1x1x128xf32> to vector<1x1x128xf32>
    %c0_25 = arith.constant 0 : index
    %c2_26 = arith.constant 2 : index
    %c1_27 = arith.constant 1 : index
    %c0_28 = arith.constant 0 : index
    %14 = vector.load %arg3[%c0_25, %c2_26, %c1_27, %c0_28] : memref<2x3x3x128xf32, #tpu.memory_space<vmem>>, vector<1x1x1x128xf32>
    %15 = vector.shape_cast %14 : vector<1x1x1x128xf32> to vector<1x1x128xf32>
    %c0_29 = arith.constant 0 : index
    %c2_30 = arith.constant 2 : index
    %c2_31 = arith.constant 2 : index
    %c0_32 = arith.constant 0 : index
    %16 = vector.load %arg3[%c0_29, %c2_30, %c2_31, %c0_32] : memref<2x3x3x128xf32, #tpu.memory_space<vmem>>, vector<1x1x1x128xf32>
    %17 = vector.shape_cast %16 : vector<1x1x1x128xf32> to vector<1x1x128xf32>
    %c1_33 = arith.constant 1 : index
    %c0_34 = arith.constant 0 : index
    %c0_35 = arith.constant 0 : index
    %c0_36 = arith.constant 0 : index
    %18 = vector.load %arg3[%c1_33, %c0_34, %c0_35, %c0_36] : memref<2x3x3x128xf32, #tpu.memory_space<vmem>>, vector<1x1x1x128xf32>
    %19 = vector.shape_cast %18 : vector<1x1x1x128xf32> to vector<1x1x128xf32>
    %c1_37 = arith.constant 1 : index
    %c0_38 = arith.constant 0 : index
    %c1_39 = arith.constant 1 : index
    %c0_40 = arith.constant 0 : index
    %20 = vector.load %arg3[%c1_37, %c0_38, %c1_39, %c0_40] : memref<2x3x3x128xf32, #tpu.memory_space<vmem>>, vector<1x1x1x128xf32>
    %21 = vector.shape_cast %20 : vector<1x1x1x128xf32> to vector<1x1x128xf32>
    %c1_41 = arith.constant 1 : index
    %c0_42 = arith.constant 0 : index
    %c2_43 = arith.constant 2 : index
    %c0_44 = arith.constant 0 : index
    %22 = vector.load %arg3[%c1_41, %c0_42, %c2_43, %c0_44] : memref<2x3x3x128xf32, #tpu.memory_space<vmem>>, vector<1x1x1x128xf32>
    %23 = vector.shape_cast %22 : vector<1x1x1x128xf32> to vector<1x1x128xf32>
    %c1_45 = arith.constant 1 : index
    %c1_46 = arith.constant 1 : index
    %c0_47 = arith.constant 0 : index
    %c0_48 = arith.constant 0 : index
    %24 = vector.load %arg3[%c1_45, %c1_46, %c0_47, %c0_48] : memref<2x3x3x128xf32, #tpu.memory_space<vmem>>, vector<1x1x1x128xf32>
    %25 = vector.shape_cast %24 : vector<1x1x1x128xf32> to vector<1x1x128xf32>
    %c1_49 = arith.constant 1 : index
    %c1_50 = arith.constant 1 : index
    %c1_51 = arith.constant 1 : index
    %c0_52 = arith.constant 0 : index
    %26 = vector.load %arg3[%c1_49, %c1_50, %c1_51, %c0_52] : memref<2x3x3x128xf32, #tpu.memory_space<vmem>>, vector<1x1x1x128xf32>
    %27 = vector.shape_cast %26 : vector<1x1x1x128xf32> to vector<1x1x128xf32>
    %c1_53 = arith.constant 1 : index
    %c1_54 = arith.constant 1 : index
    %c2_55 = arith.constant 2 : index
    %c0_56 = arith.constant 0 : index
    %28 = vector.load %arg3[%c1_53, %c1_54, %c2_55, %c0_56] : memref<2x3x3x128xf32, #tpu.memory_space<vmem>>, vector<1x1x1x128xf32>
    %29 = vector.shape_cast %28 : vector<1x1x1x128xf32> to vector<1x1x128xf32>
    %c1_57 = arith.constant 1 : index
    %c2_58 = arith.constant 2 : index
    %c0_59 = arith.constant 0 : index
    %c0_60 = arith.constant 0 : index
    %30 = vector.load %arg3[%c1_57, %c2_58, %c0_59, %c0_60] : memref<2x3x3x128xf32, #tpu.memory_space<vmem>>, vector<1x1x1x128xf32>
    %31 = vector.shape_cast %30 : vector<1x1x1x128xf32> to vector<1x1x128xf32>
    %c1_61 = arith.constant 1 : index
    %c2_62 = arith.constant 2 : index
    %c1_63 = arith.constant 1 : index
    %c0_64 = arith.constant 0 : index
    %32 = vector.load %arg3[%c1_61, %c2_62, %c1_63, %c0_64] : memref<2x3x3x128xf32, #tpu.memory_space<vmem>>, vector<1x1x1x128xf32>
    %33 = vector.shape_cast %32 : vector<1x1x1x128xf32> to vector<1x1x128xf32>
    %c1_65 = arith.constant 1 : index
    %c2_66 = arith.constant 2 : index
    %c2_67 = arith.constant 2 : index
    %c0_68 = arith.constant 0 : index
    %34 = vector.load %arg3[%c1_65, %c2_66, %c2_67, %c0_68] : memref<2x3x3x128xf32, #tpu.memory_space<vmem>>, vector<1x1x1x128xf32>
    %35 = vector.shape_cast %34 : vector<1x1x1x128xf32> to vector<1x1x128xf32>
    %c0_69 = arith.constant 0 : index
    %c0_70 = arith.constant 0 : index
    %36 = vector.load %arg4[%c0_69, %c0_70] : memref<1x128xf32, #tpu.memory_space<vmem>>, vector<1x128xf32>
    %37 = vector.shape_cast %36 : vector<1x128xf32> to vector<1x1x128xf32>
    %38 = vector.broadcast %37 : vector<1x1x128xf32> to vector<6x16x128xf32>
    %c0_71 = arith.constant 0 : index
    %c0_72 = arith.constant 0 : index
    %c0_73 = arith.constant 0 : index
    %c0_74 = arith.constant 0 : index
    %c0_75 = arith.constant 0 : index
    %39 = vector.load %arg2[%c0_71, %c0_72, %c0_73, %c0_74, %c0_75] : memref<1x2x18x18x128xf32, #tpu.memory_space<vmem>>, vector<1x1x6x16x128xf32>
    %40 = vector.shape_cast %39 : vector<1x1x6x16x128xf32> to vector<6x16x128xf32>
    %41 = vector.broadcast %1 : vector<1x1x128xf32> to vector<6x16x128xf32>
    %42 = arith.mulf %40, %41 : vector<6x16x128xf32>
    %43 = arith.addf %38, %42 : vector<6x16x128xf32>
    %c0_76 = arith.constant 0 : index
    %c0_77 = arith.constant 0 : index
    %c0_78 = arith.constant 0 : index
    %c1_79 = arith.constant 1 : index
    %c0_80 = arith.constant 0 : index
    %44 = vector.load %arg2[%c0_76, %c0_77, %c0_78, %c1_79, %c0_80] : memref<1x2x18x18x128xf32, #tpu.memory_space<vmem>>, vector<1x1x6x16x128xf32>
    %45 = vector.shape_cast %44 : vector<1x1x6x16x128xf32> to vector<6x16x128xf32>
    %46 = vector.broadcast %3 : vector<1x1x128xf32> to vector<6x16x128xf32>
    %47 = arith.mulf %45, %46 : vector<6x16x128xf32>
    %48 = arith.addf %43, %47 : vector<6x16x128xf32>
    %c0_81 = arith.constant 0 : index
    %c0_82 = arith.constant 0 : index
    %c0_83 = arith.constant 0 : index
    %c2_84 = arith.constant 2 : index
    %c0_85 = arith.constant 0 : index
    %49 = vector.load %arg2[%c0_81, %c0_82, %c0_83, %c2_84, %c0_85] : memref<1x2x18x18x128xf32, #tpu.memory_space<vmem>>, vector<1x1x6x16x128xf32>
    %50 = vector.shape_cast %49 : vector<1x1x6x16x128xf32> to vector<6x16x128xf32>
    %51 = vector.broadcast %5 : vector<1x1x128xf32> to vector<6x16x128xf32>
    %52 = arith.mulf %50, %51 : vector<6x16x128xf32>
    %53 = arith.addf %48, %52 : vector<6x16x128xf32>
    %c0_86 = arith.constant 0 : index
    %c0_87 = arith.constant 0 : index
    %c1_88 = arith.constant 1 : index
    %c0_89 = arith.constant 0 : index
    %c0_90 = arith.constant 0 : index
    %54 = vector.load %arg2[%c0_86, %c0_87, %c1_88, %c0_89, %c0_90] : memref<1x2x18x18x128xf32, #tpu.memory_space<vmem>>, vector<1x1x6x16x128xf32>
    %55 = vector.shape_cast %54 : vector<1x1x6x16x128xf32> to vector<6x16x128xf32>
    %56 = vector.broadcast %7 : vector<1x1x128xf32> to vector<6x16x128xf32>
    %57 = arith.mulf %55, %56 : vector<6x16x128xf32>
    %58 = arith.addf %53, %57 : vector<6x16x128xf32>
    %c0_91 = arith.constant 0 : index
    %c0_92 = arith.constant 0 : index
    %c1_93 = arith.constant 1 : index
    %c1_94 = arith.constant 1 : index
    %c0_95 = arith.constant 0 : index
    %59 = vector.load %arg2[%c0_91, %c0_92, %c1_93, %c1_94, %c0_95] : memref<1x2x18x18x128xf32, #tpu.memory_space<vmem>>, vector<1x1x6x16x128xf32>
    %60 = vector.shape_cast %59 : vector<1x1x6x16x128xf32> to vector<6x16x128xf32>
    %61 = vector.broadcast %9 : vector<1x1x128xf32> to vector<6x16x128xf32>
    %62 = arith.mulf %60, %61 : vector<6x16x128xf32>
    %63 = arith.addf %58, %62 : vector<6x16x128xf32>
    %c0_96 = arith.constant 0 : index
    %c0_97 = arith.constant 0 : index
    %c1_98 = arith.constant 1 : index
    %c2_99 = arith.constant 2 : index
    %c0_100 = arith.constant 0 : index
    %64 = vector.load %arg2[%c0_96, %c0_97, %c1_98, %c2_99, %c0_100] : memref<1x2x18x18x128xf32, #tpu.memory_space<vmem>>, vector<1x1x6x16x128xf32>
    %65 = vector.shape_cast %64 : vector<1x1x6x16x128xf32> to vector<6x16x128xf32>
    %66 = vector.broadcast %11 : vector<1x1x128xf32> to vector<6x16x128xf32>
    %67 = arith.mulf %65, %66 : vector<6x16x128xf32>
    %68 = arith.addf %63, %67 : vector<6x16x128xf32>
    %c0_101 = arith.constant 0 : index
    %c0_102 = arith.constant 0 : index
    %c2_103 = arith.constant 2 : index
    %c0_104 = arith.constant 0 : index
    %c0_105 = arith.constant 0 : index
    %69 = vector.load %arg2[%c0_101, %c0_102, %c2_103, %c0_104, %c0_105] : memref<1x2x18x18x128xf32, #tpu.memory_space<vmem>>, vector<1x1x6x16x128xf32>
    %70 = vector.shape_cast %69 : vector<1x1x6x16x128xf32> to vector<6x16x128xf32>
    %71 = vector.broadcast %13 : vector<1x1x128xf32> to vector<6x16x128xf32>
    %72 = arith.mulf %70, %71 : vector<6x16x128xf32>
    %73 = arith.addf %68, %72 : vector<6x16x128xf32>
    %c0_106 = arith.constant 0 : index
    %c0_107 = arith.constant 0 : index
    %c2_108 = arith.constant 2 : index
    %c1_109 = arith.constant 1 : index
    %c0_110 = arith.constant 0 : index
    %74 = vector.load %arg2[%c0_106, %c0_107, %c2_108, %c1_109, %c0_110] : memref<1x2x18x18x128xf32, #tpu.memory_space<vmem>>, vector<1x1x6x16x128xf32>
    %75 = vector.shape_cast %74 : vector<1x1x6x16x128xf32> to vector<6x16x128xf32>
    %76 = vector.broadcast %15 : vector<1x1x128xf32> to vector<6x16x128xf32>
    %77 = arith.mulf %75, %76 : vector<6x16x128xf32>
    %78 = arith.addf %73, %77 : vector<6x16x128xf32>
    %c0_111 = arith.constant 0 : index
    %c0_112 = arith.constant 0 : index
    %c2_113 = arith.constant 2 : index
    %c2_114 = arith.constant 2 : index
    %c0_115 = arith.constant 0 : index
    %79 = vector.load %arg2[%c0_111, %c0_112, %c2_113, %c2_114, %c0_115] : memref<1x2x18x18x128xf32, #tpu.memory_space<vmem>>, vector<1x1x6x16x128xf32>
    %80 = vector.shape_cast %79 : vector<1x1x6x16x128xf32> to vector<6x16x128xf32>
    %81 = vector.broadcast %17 : vector<1x1x128xf32> to vector<6x16x128xf32>
    %82 = arith.mulf %80, %81 : vector<6x16x128xf32>
    %83 = arith.addf %78, %82 : vector<6x16x128xf32>
    %c0_116 = arith.constant 0 : index
    %c1_117 = arith.constant 1 : index
    %c0_118 = arith.constant 0 : index
    %c0_119 = arith.constant 0 : index
    %c0_120 = arith.constant 0 : index
    %84 = vector.load %arg2[%c0_116, %c1_117, %c0_118, %c0_119, %c0_120] : memref<1x2x18x18x128xf32, #tpu.memory_space<vmem>>, vector<1x1x6x16x128xf32>
    %85 = vector.shape_cast %84 : vector<1x1x6x16x128xf32> to vector<6x16x128xf32>
    %86 = vector.broadcast %19 : vector<1x1x128xf32> to vector<6x16x128xf32>
    %87 = arith.mulf %85, %86 : vector<6x16x128xf32>
    %88 = arith.addf %83, %87 : vector<6x16x128xf32>
    %c0_121 = arith.constant 0 : index
    %c1_122 = arith.constant 1 : index
    %c0_123 = arith.constant 0 : index
    %c1_124 = arith.constant 1 : index
    %c0_125 = arith.constant 0 : index
    %89 = vector.load %arg2[%c0_121, %c1_122, %c0_123, %c1_124, %c0_125] : memref<1x2x18x18x128xf32, #tpu.memory_space<vmem>>, vector<1x1x6x16x128xf32>
    %90 = vector.shape_cast %89 : vector<1x1x6x16x128xf32> to vector<6x16x128xf32>
    %91 = vector.broadcast %21 : vector<1x1x128xf32> to vector<6x16x128xf32>
    %92 = arith.mulf %90, %91 : vector<6x16x128xf32>
    %93 = arith.addf %88, %92 : vector<6x16x128xf32>
    %c0_126 = arith.constant 0 : index
    %c1_127 = arith.constant 1 : index
    %c0_128 = arith.constant 0 : index
    %c2_129 = arith.constant 2 : index
    %c0_130 = arith.constant 0 : index
    %94 = vector.load %arg2[%c0_126, %c1_127, %c0_128, %c2_129, %c0_130] : memref<1x2x18x18x128xf32, #tpu.memory_space<vmem>>, vector<1x1x6x16x128xf32>
    %95 = vector.shape_cast %94 : vector<1x1x6x16x128xf32> to vector<6x16x128xf32>
    %96 = vector.broadcast %23 : vector<1x1x128xf32> to vector<6x16x128xf32>
    %97 = arith.mulf %95, %96 : vector<6x16x128xf32>
    %98 = arith.addf %93, %97 : vector<6x16x128xf32>
    %c0_131 = arith.constant 0 : index
    %c1_132 = arith.constant 1 : index
    %c1_133 = arith.constant 1 : index
    %c0_134 = arith.constant 0 : index
    %c0_135 = arith.constant 0 : index
    %99 = vector.load %arg2[%c0_131, %c1_132, %c1_133, %c0_134, %c0_135] : memref<1x2x18x18x128xf32, #tpu.memory_space<vmem>>, vector<1x1x6x16x128xf32>
    %100 = vector.shape_cast %99 : vector<1x1x6x16x128xf32> to vector<6x16x128xf32>
    %101 = vector.broadcast %25 : vector<1x1x128xf32> to vector<6x16x128xf32>
    %102 = arith.mulf %100, %101 : vector<6x16x128xf32>
    %103 = arith.addf %98, %102 : vector<6x16x128xf32>
    %c0_136 = arith.constant 0 : index
    %c1_137 = arith.constant 1 : index
    %c1_138 = arith.constant 1 : index
    %c1_139 = arith.constant 1 : index
    %c0_140 = arith.constant 0 : index
    %104 = vector.load %arg2[%c0_136, %c1_137, %c1_138, %c1_139, %c0_140] : memref<1x2x18x18x128xf32, #tpu.memory_space<vmem>>, vector<1x1x6x16x128xf32>
    %105 = vector.shape_cast %104 : vector<1x1x6x16x128xf32> to vector<6x16x128xf32>
    %106 = vector.broadcast %27 : vector<1x1x128xf32> to vector<6x16x128xf32>
    %107 = arith.mulf %105, %106 : vector<6x16x128xf32>
    %108 = arith.addf %103, %107 : vector<6x16x128xf32>
    %c0_141 = arith.constant 0 : index
    %c1_142 = arith.constant 1 : index
    %c1_143 = arith.constant 1 : index
    %c2_144 = arith.constant 2 : index
    %c0_145 = arith.constant 0 : index
    %109 = vector.load %arg2[%c0_141, %c1_142, %c1_143, %c2_144, %c0_145] : memref<1x2x18x18x128xf32, #tpu.memory_space<vmem>>, vector<1x1x6x16x128xf32>
    %110 = vector.shape_cast %109 : vector<1x1x6x16x128xf32> to vector<6x16x128xf32>
    %111 = vector.broadcast %29 : vector<1x1x128xf32> to vector<6x16x128xf32>
    %112 = arith.mulf %110, %111 : vector<6x16x128xf32>
    %113 = arith.addf %108, %112 : vector<6x16x128xf32>
    %c0_146 = arith.constant 0 : index
    %c1_147 = arith.constant 1 : index
    %c2_148 = arith.constant 2 : index
    %c0_149 = arith.constant 0 : index
    %c0_150 = arith.constant 0 : index
    %114 = vector.load %arg2[%c0_146, %c1_147, %c2_148, %c0_149, %c0_150] : memref<1x2x18x18x128xf32, #tpu.memory_space<vmem>>, vector<1x1x6x16x128xf32>
    %115 = vector.shape_cast %114 : vector<1x1x6x16x128xf32> to vector<6x16x128xf32>
    %116 = vector.broadcast %31 : vector<1x1x128xf32> to vector<6x16x128xf32>
    %117 = arith.mulf %115, %116 : vector<6x16x128xf32>
    %118 = arith.addf %113, %117 : vector<6x16x128xf32>
    %c0_151 = arith.constant 0 : index
    %c1_152 = arith.constant 1 : index
    %c2_153 = arith.constant 2 : index
    %c1_154 = arith.constant 1 : index
    %c0_155 = arith.constant 0 : index
    %119 = vector.load %arg2[%c0_151, %c1_152, %c2_153, %c1_154, %c0_155] : memref<1x2x18x18x128xf32, #tpu.memory_space<vmem>>, vector<1x1x6x16x128xf32>
    %120 = vector.shape_cast %119 : vector<1x1x6x16x128xf32> to vector<6x16x128xf32>
    %121 = vector.broadcast %33 : vector<1x1x128xf32> to vector<6x16x128xf32>
    %122 = arith.mulf %120, %121 : vector<6x16x128xf32>
    %123 = arith.addf %118, %122 : vector<6x16x128xf32>
    %c0_156 = arith.constant 0 : index
    %c1_157 = arith.constant 1 : index
    %c2_158 = arith.constant 2 : index
    %c2_159 = arith.constant 2 : index
    %c0_160 = arith.constant 0 : index
    %124 = vector.load %arg2[%c0_156, %c1_157, %c2_158, %c2_159, %c0_160] : memref<1x2x18x18x128xf32, #tpu.memory_space<vmem>>, vector<1x1x6x16x128xf32>
    %125 = vector.shape_cast %124 : vector<1x1x6x16x128xf32> to vector<6x16x128xf32>
    %126 = vector.broadcast %35 : vector<1x1x128xf32> to vector<6x16x128xf32>
    %127 = arith.mulf %125, %126 : vector<6x16x128xf32>
    %128 = arith.addf %123, %127 : vector<6x16x128xf32>
    %c0_161 = arith.constant 0 : index
    %c0_162 = arith.constant 0 : index
    %c0_163 = arith.constant 0 : index
    %c0_164 = arith.constant 0 : index
    %129 = vector.load %arg5[%c0_161, %c0_162, %c0_163, %c0_164] : memref<1x16x16x128xf32, #tpu.memory_space<vmem>>, vector<1x6x16x128xf32>
    %130 = vector.shape_cast %129 : vector<1x6x16x128xf32> to vector<6x16x128xf32>
    %131 = vector.shape_cast %128 : vector<6x16x128xf32> to vector<1x6x16x128xf32>
    tpu.vector_store %arg5[%c0_161, %c0_162, %c0_163, %c0_164], %131 {strides = array<i32>} : memref<1x16x16x128xf32, #tpu.memory_space<vmem>>, vector<1x6x16x128xf32>,
    %132 = vector.shape_cast %36 : vector<1x128xf32> to vector<1x1x128xf32>
    %133 = vector.broadcast %132 : vector<1x1x128xf32> to vector<6x16x128xf32>
    %c0_165 = arith.constant 0 : index
    %c0_166 = arith.constant 0 : index
    %c6 = arith.constant 6 : index
    %c0_167 = arith.constant 0 : index
    %c0_168 = arith.constant 0 : index
    %134 = vector.load %arg2[%c0_165, %c0_166, %c6, %c0_167, %c0_168] : memref<1x2x18x18x128xf32, #tpu.memory_space<vmem>>, vector<1x1x6x16x128xf32>
    %135 = vector.shape_cast %134 : vector<1x1x6x16x128xf32> to vector<6x16x128xf32>
    %136 = vector.broadcast %1 : vector<1x1x128xf32> to vector<6x16x128xf32>
    %137 = arith.mulf %135, %136 : vector<6x16x128xf32>
    %138 = arith.addf %133, %137 : vector<6x16x128xf32>
    %c0_169 = arith.constant 0 : index
    %c0_170 = arith.constant 0 : index
    %c6_171 = arith.constant 6 : index
    %c1_172 = arith.constant 1 : index
    %c0_173 = arith.constant 0 : index
    %139 = vector.load %arg2[%c0_169, %c0_170, %c6_171, %c1_172, %c0_173] : memref<1x2x18x18x128xf32, #tpu.memory_space<vmem>>, vector<1x1x6x16x128xf32>
    %140 = vector.shape_cast %139 : vector<1x1x6x16x128xf32> to vector<6x16x128xf32>
    %141 = vector.broadcast %3 : vector<1x1x128xf32> to vector<6x16x128xf32>
    %142 = arith.mulf %140, %141 : vector<6x16x128xf32>
    %143 = arith.addf %138, %142 : vector<6x16x128xf32>
    %c0_174 = arith.constant 0 : index
    %c0_175 = arith.constant 0 : index
    %c6_176 = arith.constant 6 : index
    %c2_177 = arith.constant 2 : index
    %c0_178 = arith.constant 0 : index
    %144 = vector.load %arg2[%c0_174, %c0_175, %c6_176, %c2_177, %c0_178] : memref<1x2x18x18x128xf32, #tpu.memory_space<vmem>>, vector<1x1x6x16x128xf32>
    %145 = vector.shape_cast %144 : vector<1x1x6x16x128xf32> to vector<6x16x128xf32>
    %146 = vector.broadcast %5 : vector<1x1x128xf32> to vector<6x16x128xf32>
    %147 = arith.mulf %145, %146 : vector<6x16x128xf32>
    %148 = arith.addf %143, %147 : vector<6x16x128xf32>
    %c0_179 = arith.constant 0 : index
    %c0_180 = arith.constant 0 : index
    %c7 = arith.constant 7 : index
    %c0_181 = arith.constant 0 : index
    %c0_182 = arith.constant 0 : index
    %149 = vector.load %arg2[%c0_179, %c0_180, %c7, %c0_181, %c0_182] : memref<1x2x18x18x128xf32, #tpu.memory_space<vmem>>, vector<1x1x6x16x128xf32>
    %150 = vector.shape_cast %149 : vector<1x1x6x16x128xf32> to vector<6x16x128xf32>
    %151 = vector.broadcast %7 : vector<1x1x128xf32> to vector<6x16x128xf32>
    %152 = arith.mulf %150, %151 : vector<6x16x128xf32>
    %153 = arith.addf %148, %152 : vector<6x16x128xf32>
    %c0_183 = arith.constant 0 : index
    %c0_184 = arith.constant 0 : index
    %c7_185 = arith.constant 7 : index
    %c1_186 = arith.constant 1 : index
    %c0_187 = arith.constant 0 : index
    %154 = vector.load %arg2[%c0_183, %c0_184, %c7_185, %c1_186, %c0_187] : memref<1x2x18x18x128xf32, #tpu.memory_space<vmem>>, vector<1x1x6x16x128xf32>
    %155 = vector.shape_cast %154 : vector<1x1x6x16x128xf32> to vector<6x16x128xf32>
    %156 = vector.broadcast %9 : vector<1x1x128xf32> to vector<6x16x128xf32>
    %157 = arith.mulf %155, %156 : vector<6x16x128xf32>
    %158 = arith.addf %153, %157 : vector<6x16x128xf32>
    %c0_188 = arith.constant 0 : index
    %c0_189 = arith.constant 0 : index
    %c7_190 = arith.constant 7 : index
    %c2_191 = arith.constant 2 : index
    %c0_192 = arith.constant 0 : index
    %159 = vector.load %arg2[%c0_188, %c0_189, %c7_190, %c2_191, %c0_192] : memref<1x2x18x18x128xf32, #tpu.memory_space<vmem>>, vector<1x1x6x16x128xf32>
    %160 = vector.shape_cast %159 : vector<1x1x6x16x128xf32> to vector<6x16x128xf32>
    %161 = vector.broadcast %11 : vector<1x1x128xf32> to vector<6x16x128xf32>
    %162 = arith.mulf %160, %161 : vector<6x16x128xf32>
    %163 = arith.addf %158, %162 : vector<6x16x128xf32>
    %c0_193 = arith.constant 0 : index
    %c0_194 = arith.constant 0 : index
    %c8 = arith.constant 8 : index
    %c0_195 = arith.constant 0 : index
    %c0_196 = arith.constant 0 : index
    %164 = vector.load %arg2[%c0_193, %c0_194, %c8, %c0_195, %c0_196] : memref<1x2x18x18x128xf32, #tpu.memory_space<vmem>>, vector<1x1x6x16x128xf32>
    %165 = vector.shape_cast %164 : vector<1x1x6x16x128xf32> to vector<6x16x128xf32>
    %166 = vector.broadcast %13 : vector<1x1x128xf32> to vector<6x16x128xf32>
    %167 = arith.mulf %165, %166 : vector<6x16x128xf32>
    %168 = arith.addf %163, %167 : vector<6x16x128xf32>
    %c0_197 = arith.constant 0 : index
    %c0_198 = arith.constant 0 : index
    %c8_199 = arith.constant 8 : index
    %c1_200 = arith.constant 1 : index
    %c0_201 = arith.constant 0 : index
    %169 = vector.load %arg2[%c0_197, %c0_198, %c8_199, %c1_200, %c0_201] : memref<1x2x18x18x128xf32, #tpu.memory_space<vmem>>, vector<1x1x6x16x128xf32>
    %170 = vector.shape_cast %169 : vector<1x1x6x16x128xf32> to vector<6x16x128xf32>
    %171 = vector.broadcast %15 : vector<1x1x128xf32> to vector<6x16x128xf32>
    %172 = arith.mulf %170, %171 : vector<6x16x128xf32>
    %173 = arith.addf %168, %172 : vector<6x16x128xf32>
    %c0_202 = arith.constant 0 : index
    %c0_203 = arith.constant 0 : index
    %c8_204 = arith.constant 8 : index
    %c2_205 = arith.constant 2 : index
    %c0_206 = arith.constant 0 : index
    %174 = vector.load %arg2[%c0_202, %c0_203, %c8_204, %c2_205, %c0_206] : memref<1x2x18x18x128xf32, #tpu.memory_space<vmem>>, vector<1x1x6x16x128xf32>
    %175 = vector.shape_cast %174 : vector<1x1x6x16x128xf32> to vector<6x16x128xf32>
    %176 = vector.broadcast %17 : vector<1x1x128xf32> to vector<6x16x128xf32>
    %177 = arith.mulf %175, %176 : vector<6x16x128xf32>
    %178 = arith.addf %173, %177 : vector<6x16x128xf32>
    %c0_207 = arith.constant 0 : index
    %c1_208 = arith.constant 1 : index
    %c6_209 = arith.constant 6 : index
    %c0_210 = arith.constant 0 : index
    %c0_211 = arith.constant 0 : index
    %179 = vector.load %arg2[%c0_207, %c1_208, %c6_209, %c0_210, %c0_211] : memref<1x2x18x18x128xf32, #tpu.memory_space<vmem>>, vector<1x1x6x16x128xf32>
    %180 = vector.shape_cast %179 : vector<1x1x6x16x128xf32> to vector<6x16x128xf32>
    %181 = vector.broadcast %19 : vector<1x1x128xf32> to vector<6x16x128xf32>
    %182 = arith.mulf %180, %181 : vector<6x16x128xf32>
    %183 = arith.addf %178, %182 : vector<6x16x128xf32>
    %c0_212 = arith.constant 0 : index
    %c1_213 = arith.constant 1 : index
    %c6_214 = arith.constant 6 : index
    %c1_215 = arith.constant 1 : index
    %c0_216 = arith.constant 0 : index
    %184 = vector.load %arg2[%c0_212, %c1_213, %c6_214, %c1_215, %c0_216] : memref<1x2x18x18x128xf32, #tpu.memory_space<vmem>>, vector<1x1x6x16x128xf32>
    %185 = vector.shape_cast %184 : vector<1x1x6x16x128xf32> to vector<6x16x128xf32>
    %186 = vector.broadcast %21 : vector<1x1x128xf32> to vector<6x16x128xf32>
    %187 = arith.mulf %185, %186 : vector<6x16x128xf32>
    %188 = arith.addf %183, %187 : vector<6x16x128xf32>
    %c0_217 = arith.constant 0 : index
    %c1_218 = arith.constant 1 : index
    %c6_219 = arith.constant 6 : index
    %c2_220 = arith.constant 2 : index
    %c0_221 = arith.constant 0 : index
    %189 = vector.load %arg2[%c0_217, %c1_218, %c6_219, %c2_220, %c0_221] : memref<1x2x18x18x128xf32, #tpu.memory_space<vmem>>, vector<1x1x6x16x128xf32>
    %190 = vector.shape_cast %189 : vector<1x1x6x16x128xf32> to vector<6x16x128xf32>
    %191 = vector.broadcast %23 : vector<1x1x128xf32> to vector<6x16x128xf32>
    %192 = arith.mulf %190, %191 : vector<6x16x128xf32>
    %193 = arith.addf %188, %192 : vector<6x16x128xf32>
    %c0_222 = arith.constant 0 : index
    %c1_223 = arith.constant 1 : index
    %c7_224 = arith.constant 7 : index
    %c0_225 = arith.constant 0 : index
    %c0_226 = arith.constant 0 : index
    %194 = vector.load %arg2[%c0_222, %c1_223, %c7_224, %c0_225, %c0_226] : memref<1x2x18x18x128xf32, #tpu.memory_space<vmem>>, vector<1x1x6x16x128xf32>
    %195 = vector.shape_cast %194 : vector<1x1x6x16x128xf32> to vector<6x16x128xf32>
    %196 = vector.broadcast %25 : vector<1x1x128xf32> to vector<6x16x128xf32>
    %197 = arith.mulf %195, %196 : vector<6x16x128xf32>
    %198 = arith.addf %193, %197 : vector<6x16x128xf32>
    %c0_227 = arith.constant 0 : index
    %c1_228 = arith.constant 1 : index
    %c7_229 = arith.constant 7 : index
    %c1_230 = arith.constant 1 : index
    %c0_231 = arith.constant 0 : index
    %199 = vector.load %arg2[%c0_227, %c1_228, %c7_229, %c1_230, %c0_231] : memref<1x2x18x18x128xf32, #tpu.memory_space<vmem>>, vector<1x1x6x16x128xf32>
    %200 = vector.shape_cast %199 : vector<1x1x6x16x128xf32> to vector<6x16x128xf32>
    %201 = vector.broadcast %27 : vector<1x1x128xf32> to vector<6x16x128xf32>
    %202 = arith.mulf %200, %201 : vector<6x16x128xf32>
    %203 = arith.addf %198, %202 : vector<6x16x128xf32>
    %c0_232 = arith.constant 0 : index
    %c1_233 = arith.constant 1 : index
    %c7_234 = arith.constant 7 : index
    %c2_235 = arith.constant 2 : index
    %c0_236 = arith.constant 0 : index
    %204 = vector.load %arg2[%c0_232, %c1_233, %c7_234, %c2_235, %c0_236] : memref<1x2x18x18x128xf32, #tpu.memory_space<vmem>>, vector<1x1x6x16x128xf32>
    %205 = vector.shape_cast %204 : vector<1x1x6x16x128xf32> to vector<6x16x128xf32>
    %206 = vector.broadcast %29 : vector<1x1x128xf32> to vector<6x16x128xf32>
    %207 = arith.mulf %205, %206 : vector<6x16x128xf32>
    %208 = arith.addf %203, %207 : vector<6x16x128xf32>
    %c0_237 = arith.constant 0 : index
    %c1_238 = arith.constant 1 : index
    %c8_239 = arith.constant 8 : index
    %c0_240 = arith.constant 0 : index
    %c0_241 = arith.constant 0 : index
    %209 = vector.load %arg2[%c0_237, %c1_238, %c8_239, %c0_240, %c0_241] : memref<1x2x18x18x128xf32, #tpu.memory_space<vmem>>, vector<1x1x6x16x128xf32>
    %210 = vector.shape_cast %209 : vector<1x1x6x16x128xf32> to vector<6x16x128xf32>
    %211 = vector.broadcast %31 : vector<1x1x128xf32> to vector<6x16x128xf32>
    %212 = arith.mulf %210, %211 : vector<6x16x128xf32>
    %213 = arith.addf %208, %212 : vector<6x16x128xf32>
    %c0_242 = arith.constant 0 : index
    %c1_243 = arith.constant 1 : index
    %c8_244 = arith.constant 8 : index
    %c1_245 = arith.constant 1 : index
    %c0_246 = arith.constant 0 : index
    %214 = vector.load %arg2[%c0_242, %c1_243, %c8_244, %c1_245, %c0_246] : memref<1x2x18x18x128xf32, #tpu.memory_space<vmem>>, vector<1x1x6x16x128xf32>
    %215 = vector.shape_cast %214 : vector<1x1x6x16x128xf32> to vector<6x16x128xf32>
    %216 = vector.broadcast %33 : vector<1x1x128xf32> to vector<6x16x128xf32>
    %217 = arith.mulf %215, %216 : vector<6x16x128xf32>
    %218 = arith.addf %213, %217 : vector<6x16x128xf32>
    %c0_247 = arith.constant 0 : index
    %c1_248 = arith.constant 1 : index
    %c8_249 = arith.constant 8 : index
    %c2_250 = arith.constant 2 : index
    %c0_251 = arith.constant 0 : index
    %219 = vector.load %arg2[%c0_247, %c1_248, %c8_249, %c2_250, %c0_251] : memref<1x2x18x18x128xf32, #tpu.memory_space<vmem>>, vector<1x1x6x16x128xf32>
    %220 = vector.shape_cast %219 : vector<1x1x6x16x128xf32> to vector<6x16x128xf32>
    %221 = vector.broadcast %35 : vector<1x1x128xf32> to vector<6x16x128xf32>
    %222 = arith.mulf %220, %221 : vector<6x16x128xf32>
    %223 = arith.addf %218, %222 : vector<6x16x128xf32>
    %c0_252 = arith.constant 0 : index
    %c6_253 = arith.constant 6 : index
    %c0_254 = arith.constant 0 : index
    %c0_255 = arith.constant 0 : index
    %224 = vector.load %arg5[%c0_252, %c6_253, %c0_254, %c0_255] : memref<1x16x16x128xf32, #tpu.memory_space<vmem>>, vector<1x6x16x128xf32>
    %225 = vector.shape_cast %224 : vector<1x6x16x128xf32> to vector<6x16x128xf32>
    %226 = vector.shape_cast %223 : vector<6x16x128xf32> to vector<1x6x16x128xf32>
    tpu.vector_store %arg5[%c0_252, %c6_253, %c0_254, %c0_255], %226 {strides = array<i32>} : memref<1x16x16x128xf32, #tpu.memory_space<vmem>>, vector<1x6x16x128xf32>,
    %227 = vector.shape_cast %36 : vector<1x128xf32> to vector<1x1x128xf32>
    %228 = vector.broadcast %227 : vector<1x1x128xf32> to vector<4x16x128xf32>
    %c0_256 = arith.constant 0 : index
    %c0_257 = arith.constant 0 : index
    %c12 = arith.constant 12 : index
    %c0_258 = arith.constant 0 : index
    %c0_259 = arith.constant 0 : index
    %229 = vector.load %arg2[%c0_256, %c0_257, %c12, %c0_258, %c0_259] : memref<1x2x18x18x128xf32, #tpu.memory_space<vmem>>, vector<1x1x4x16x128xf32>
    %230 = vector.shape_cast %229 : vector<1x1x4x16x128xf32> to vector<4x16x128xf32>
    %231 = vector.broadcast %1 : vector<1x1x128xf32> to vector<4x16x128xf32>
    %232 = arith.mulf %230, %231 : vector<4x16x128xf32>
    %233 = arith.addf %228, %232 : vector<4x16x128xf32>
    %c0_260 = arith.constant 0 : index
    %c0_261 = arith.constant 0 : index
    %c12_262 = arith.constant 12 : index
    %c1_263 = arith.constant 1 : index
    %c0_264 = arith.constant 0 : index
    %234 = vector.load %arg2[%c0_260, %c0_261, %c12_262, %c1_263, %c0_264] : memref<1x2x18x18x128xf32, #tpu.memory_space<vmem>>, vector<1x1x4x16x128xf32>
    %235 = vector.shape_cast %234 : vector<1x1x4x16x128xf32> to vector<4x16x128xf32>
    %236 = vector.broadcast %3 : vector<1x1x128xf32> to vector<4x16x128xf32>
    %237 = arith.mulf %235, %236 : vector<4x16x128xf32>
    %238 = arith.addf %233, %237 : vector<4x16x128xf32>
    %c0_265 = arith.constant 0 : index
    %c0_266 = arith.constant 0 : index
    %c12_267 = arith.constant 12 : index
    %c2_268 = arith.constant 2 : index
    %c0_269 = arith.constant 0 : index
    %239 = vector.load %arg2[%c0_265, %c0_266, %c12_267, %c2_268, %c0_269] : memref<1x2x18x18x128xf32, #tpu.memory_space<vmem>>, vector<1x1x4x16x128xf32>
    %240 = vector.shape_cast %239 : vector<1x1x4x16x128xf32> to vector<4x16x128xf32>
    %241 = vector.broadcast %5 : vector<1x1x128xf32> to vector<4x16x128xf32>
    %242 = arith.mulf %240, %241 : vector<4x16x128xf32>
    %243 = arith.addf %238, %242 : vector<4x16x128xf32>
    %c0_270 = arith.constant 0 : index
    %c0_271 = arith.constant 0 : index
    %c13 = arith.constant 13 : index
    %c0_272 = arith.constant 0 : index
    %c0_273 = arith.constant 0 : index
    %244 = vector.load %arg2[%c0_270, %c0_271, %c13, %c0_272, %c0_273] : memref<1x2x18x18x128xf32, #tpu.memory_space<vmem>>, vector<1x1x4x16x128xf32>
    %245 = vector.shape_cast %244 : vector<1x1x4x16x128xf32> to vector<4x16x128xf32>
    %246 = vector.broadcast %7 : vector<1x1x128xf32> to vector<4x16x128xf32>
    %247 = arith.mulf %245, %246 : vector<4x16x128xf32>
    %248 = arith.addf %243, %247 : vector<4x16x128xf32>
    %c0_274 = arith.constant 0 : index
    %c0_275 = arith.constant 0 : index
    %c13_276 = arith.constant 13 : index
    %c1_277 = arith.constant 1 : index
    %c0_278 = arith.constant 0 : index
    %249 = vector.load %arg2[%c0_274, %c0_275, %c13_276, %c1_277, %c0_278] : memref<1x2x18x18x128xf32, #tpu.memory_space<vmem>>, vector<1x1x4x16x128xf32>
    %250 = vector.shape_cast %249 : vector<1x1x4x16x128xf32> to vector<4x16x128xf32>
    %251 = vector.broadcast %9 : vector<1x1x128xf32> to vector<4x16x128xf32>
    %252 = arith.mulf %250, %251 : vector<4x16x128xf32>
    %253 = arith.addf %248, %252 : vector<4x16x128xf32>
    %c0_279 = arith.constant 0 : index
    %c0_280 = arith.constant 0 : index
    %c13_281 = arith.constant 13 : index
    %c2_282 = arith.constant 2 : index
    %c0_283 = arith.constant 0 : index
    %254 = vector.load %arg2[%c0_279, %c0_280, %c13_281, %c2_282, %c0_283] : memref<1x2x18x18x128xf32, #tpu.memory_space<vmem>>, vector<1x1x4x16x128xf32>
    %255 = vector.shape_cast %254 : vector<1x1x4x16x128xf32> to vector<4x16x128xf32>
    %256 = vector.broadcast %11 : vector<1x1x128xf32> to vector<4x16x128xf32>
    %257 = arith.mulf %255, %256 : vector<4x16x128xf32>
    %258 = arith.addf %253, %257 : vector<4x16x128xf32>
    %c0_284 = arith.constant 0 : index
    %c0_285 = arith.constant 0 : index
    %c14 = arith.constant 14 : index
    %c0_286 = arith.constant 0 : index
    %c0_287 = arith.constant 0 : index
    %259 = vector.load %arg2[%c0_284, %c0_285, %c14, %c0_286, %c0_287] : memref<1x2x18x18x128xf32, #tpu.memory_space<vmem>>, vector<1x1x4x16x128xf32>
    %260 = vector.shape_cast %259 : vector<1x1x4x16x128xf32> to vector<4x16x128xf32>
    %261 = vector.broadcast %13 : vector<1x1x128xf32> to vector<4x16x128xf32>
    %262 = arith.mulf %260, %261 : vector<4x16x128xf32>
    %263 = arith.addf %258, %262 : vector<4x16x128xf32>
    %c0_288 = arith.constant 0 : index
    %c0_289 = arith.constant 0 : index
    %c14_290 = arith.constant 14 : index
    %c1_291 = arith.constant 1 : index
    %c0_292 = arith.constant 0 : index
    %264 = vector.load %arg2[%c0_288, %c0_289, %c14_290, %c1_291, %c0_292] : memref<1x2x18x18x128xf32, #tpu.memory_space<vmem>>, vector<1x1x4x16x128xf32>
    %265 = vector.shape_cast %264 : vector<1x1x4x16x128xf32> to vector<4x16x128xf32>
    %266 = vector.broadcast %15 : vector<1x1x128xf32> to vector<4x16x128xf32>
    %267 = arith.mulf %265, %266 : vector<4x16x128xf32>
    %268 = arith.addf %263, %267 : vector<4x16x128xf32>
    %c0_293 = arith.constant 0 : index
    %c0_294 = arith.constant 0 : index
    %c14_295 = arith.constant 14 : index
    %c2_296 = arith.constant 2 : index
    %c0_297 = arith.constant 0 : index
    %269 = vector.load %arg2[%c0_293, %c0_294, %c14_295, %c2_296, %c0_297] : memref<1x2x18x18x128xf32, #tpu.memory_space<vmem>>, vector<1x1x4x16x128xf32>
    %270 = vector.shape_cast %269 : vector<1x1x4x16x128xf32> to vector<4x16x128xf32>
    %271 = vector.broadcast %17 : vector<1x1x128xf32> to vector<4x16x128xf32>
    %272 = arith.mulf %270, %271 : vector<4x16x128xf32>
    %273 = arith.addf %268, %272 : vector<4x16x128xf32>
    %c0_298 = arith.constant 0 : index
    %c1_299 = arith.constant 1 : index
    %c12_300 = arith.constant 12 : index
    %c0_301 = arith.constant 0 : index
    %c0_302 = arith.constant 0 : index
    %274 = vector.load %arg2[%c0_298, %c1_299, %c12_300, %c0_301, %c0_302] : memref<1x2x18x18x128xf32, #tpu.memory_space<vmem>>, vector<1x1x4x16x128xf32>
    %275 = vector.shape_cast %274 : vector<1x1x4x16x128xf32> to vector<4x16x128xf32>
    %276 = vector.broadcast %19 : vector<1x1x128xf32> to vector<4x16x128xf32>
    %277 = arith.mulf %275, %276 : vector<4x16x128xf32>
    %278 = arith.addf %273, %277 : vector<4x16x128xf32>
    %c0_303 = arith.constant 0 : index
    %c1_304 = arith.constant 1 : index
    %c12_305 = arith.constant 12 : index
    %c1_306 = arith.constant 1 : index
    %c0_307 = arith.constant 0 : index
    %279 = vector.load %arg2[%c0_303, %c1_304, %c12_305, %c1_306, %c0_307] : memref<1x2x18x18x128xf32, #tpu.memory_space<vmem>>, vector<1x1x4x16x128xf32>
    %280 = vector.shape_cast %279 : vector<1x1x4x16x128xf32> to vector<4x16x128xf32>
    %281 = vector.broadcast %21 : vector<1x1x128xf32> to vector<4x16x128xf32>
    %282 = arith.mulf %280, %281 : vector<4x16x128xf32>
    %283 = arith.addf %278, %282 : vector<4x16x128xf32>
    %c0_308 = arith.constant 0 : index
    %c1_309 = arith.constant 1 : index
    %c12_310 = arith.constant 12 : index
    %c2_311 = arith.constant 2 : index
    %c0_312 = arith.constant 0 : index
    %284 = vector.load %arg2[%c0_308, %c1_309, %c12_310, %c2_311, %c0_312] : memref<1x2x18x18x128xf32, #tpu.memory_space<vmem>>, vector<1x1x4x16x128xf32>
    %285 = vector.shape_cast %284 : vector<1x1x4x16x128xf32> to vector<4x16x128xf32>
    %286 = vector.broadcast %23 : vector<1x1x128xf32> to vector<4x16x128xf32>
    %287 = arith.mulf %285, %286 : vector<4x16x128xf32>
    %288 = arith.addf %283, %287 : vector<4x16x128xf32>
    %c0_313 = arith.constant 0 : index
    %c1_314 = arith.constant 1 : index
    %c13_315 = arith.constant 13 : index
    %c0_316 = arith.constant 0 : index
    %c0_317 = arith.constant 0 : index
    %289 = vector.load %arg2[%c0_313, %c1_314, %c13_315, %c0_316, %c0_317] : memref<1x2x18x18x128xf32, #tpu.memory_space<vmem>>, vector<1x1x4x16x128xf32>
    %290 = vector.shape_cast %289 : vector<1x1x4x16x128xf32> to vector<4x16x128xf32>
    %291 = vector.broadcast %25 : vector<1x1x128xf32> to vector<4x16x128xf32>
    %292 = arith.mulf %290, %291 : vector<4x16x128xf32>
    %293 = arith.addf %288, %292 : vector<4x16x128xf32>
    %c0_318 = arith.constant 0 : index
    %c1_319 = arith.constant 1 : index
    %c13_320 = arith.constant 13 : index
    %c1_321 = arith.constant 1 : index
    %c0_322 = arith.constant 0 : index
    %294 = vector.load %arg2[%c0_318, %c1_319, %c13_320, %c1_321, %c0_322] : memref<1x2x18x18x128xf32, #tpu.memory_space<vmem>>, vector<1x1x4x16x128xf32>
    %295 = vector.shape_cast %294 : vector<1x1x4x16x128xf32> to vector<4x16x128xf32>
    %296 = vector.broadcast %27 : vector<1x1x128xf32> to vector<4x16x128xf32>
    %297 = arith.mulf %295, %296 : vector<4x16x128xf32>
    %298 = arith.addf %293, %297 : vector<4x16x128xf32>
    %c0_323 = arith.constant 0 : index
    %c1_324 = arith.constant 1 : index
    %c13_325 = arith.constant 13 : index
    %c2_326 = arith.constant 2 : index
    %c0_327 = arith.constant 0 : index
    %299 = vector.load %arg2[%c0_323, %c1_324, %c13_325, %c2_326, %c0_327] : memref<1x2x18x18x128xf32, #tpu.memory_space<vmem>>, vector<1x1x4x16x128xf32>
    %300 = vector.shape_cast %299 : vector<1x1x4x16x128xf32> to vector<4x16x128xf32>
    %301 = vector.broadcast %29 : vector<1x1x128xf32> to vector<4x16x128xf32>
    %302 = arith.mulf %300, %301 : vector<4x16x128xf32>
    %303 = arith.addf %298, %302 : vector<4x16x128xf32>
    %c0_328 = arith.constant 0 : index
    %c1_329 = arith.constant 1 : index
    %c14_330 = arith.constant 14 : index
    %c0_331 = arith.constant 0 : index
    %c0_332 = arith.constant 0 : index
    %304 = vector.load %arg2[%c0_328, %c1_329, %c14_330, %c0_331, %c0_332] : memref<1x2x18x18x128xf32, #tpu.memory_space<vmem>>, vector<1x1x4x16x128xf32>
    %305 = vector.shape_cast %304 : vector<1x1x4x16x128xf32> to vector<4x16x128xf32>
    %306 = vector.broadcast %31 : vector<1x1x128xf32> to vector<4x16x128xf32>
    %307 = arith.mulf %305, %306 : vector<4x16x128xf32>
    %308 = arith.addf %303, %307 : vector<4x16x128xf32>
    %c0_333 = arith.constant 0 : index
    %c1_334 = arith.constant 1 : index
    %c14_335 = arith.constant 14 : index
    %c1_336 = arith.constant 1 : index
    %c0_337 = arith.constant 0 : index
    %309 = vector.load %arg2[%c0_333, %c1_334, %c14_335, %c1_336, %c0_337] : memref<1x2x18x18x128xf32, #tpu.memory_space<vmem>>, vector<1x1x4x16x128xf32>
    %310 = vector.shape_cast %309 : vector<1x1x4x16x128xf32> to vector<4x16x128xf32>
    %311 = vector.broadcast %33 : vector<1x1x128xf32> to vector<4x16x128xf32>
    %312 = arith.mulf %310, %311 : vector<4x16x128xf32>
    %313 = arith.addf %308, %312 : vector<4x16x128xf32>
    %c0_338 = arith.constant 0 : index
    %c1_339 = arith.constant 1 : index
    %c14_340 = arith.constant 14 : index
    %c2_341 = arith.constant 2 : index
    %c0_342 = arith.constant 0 : index
    %314 = vector.load %arg2[%c0_338, %c1_339, %c14_340, %c2_341, %c0_342] : memref<1x2x18x18x128xf32, #tpu.memory_space<vmem>>, vector<1x1x4x16x128xf32>
    %315 = vector.shape_cast %314 : vector<1x1x4x16x128xf32> to vector<4x16x128xf32>
    %316 = vector.broadcast %35 : vector<1x1x128xf32> to vector<4x16x128xf32>
    %317 = arith.mulf %315, %316 : vector<4x16x128xf32>
    %318 = arith.addf %313, %317 : vector<4x16x128xf32>
    %c0_343 = arith.constant 0 : index
    %c12_344 = arith.constant 12 : index
    %c0_345 = arith.constant 0 : index
    %c0_346 = arith.constant 0 : index
    %319 = vector.load %arg5[%c0_343, %c12_344, %c0_345, %c0_346] : memref<1x16x16x128xf32, #tpu.memory_space<vmem>>, vector<1x4x16x128xf32>
    %320 = vector.shape_cast %319 : vector<1x4x16x128xf32> to vector<4x16x128xf32>
    %321 = vector.shape_cast %318 : vector<4x16x128xf32> to vector<1x4x16x128xf32>
    tpu.vector_store %arg5[%c0_343, %c12_344, %c0_345, %c0_346], %321 {strides = array<i32>} : memref<1x16x16x128xf32, #tpu.memory_space<vmem>>, vector<1x4x16x128xf32>,
    return
  }
  func.func @transform_0(%arg0: i32, %arg1: i32) -> (i32, i32, i32, i32, i32) {
    %c0_i32 = arith.constant 0 : i32
    %c0_i32_0 = arith.constant 0 : i32
    %c0_i32_1 = arith.constant 0 : i32
    %c0_i32_2 = arith.constant 0 : i32
    return %arg0, %c0_i32, %c0_i32_0, %c0_i32_1, %arg1 : i32, i32, i32, i32, i32
  }
  func.func @transform_1(%arg0: i32, %arg1: i32) -> (i32, i32, i32, i32) {
    %c0_i32 = arith.constant 0 : i32
    %c0_i32_0 = arith.constant 0 : i32
    %c0_i32_1 = arith.constant 0 : i32
    %c0_i32_2 = arith.constant 0 : i32
    return %c0_i32, %c0_i32_0, %c0_i32_1, %arg1 : i32, i32, i32, i32
  }
  func.func @transform_2(%arg0: i32, %arg1: i32) -> (i32, i32) {
    %c0_i32 = arith.constant 0 : i32
    %c0_i32_0 = arith.constant 0 : i32
    return %c0_i32, %arg1 : i32, i32
  }
  func.func @transform_3(%arg0: i32, %arg1: i32) -> (i32, i32, i32, i32) {
    %c0_i32 = arith.constant 0 : i32
    %c0_i32_0 = arith.constant 0 : i32
    %c0_i32_1 = arith.constant 0 : i32
    return %arg0, %c0_i32, %c0_i32_0, %arg1 : i32, i32, i32, i32
  }
}

</mosaic_0001>

<bundles_post_ra>
// kernel: depthwise_conv2d_bn.1
= control target key start
LH: loop header
LB: loop body
LE: loop exit
PB: predicated region body
PF: predicated region fallthrough
CT: control target
= control target key end

     0   :  { %s2939_s12 = smov 0   ;;  %s2941_s13 = smov 0   ;;  %s5043_s0 = inlined_call_operand.vmem [shape: f32[2,2,18,18,128], index: 0, kind: input, shape index: {}]   ;;  %s5044_s1 = inlined_call_operand.vmem [shape: f32[2,3,3,128], index: 1, kind: input, shape index: {}]   ;;  %s5045_s2 = inlined_call_operand.vmem [shape: f32[1,128], index: 2, kind: input, shape index: {}]   ;;  %s5046_s3 = inlined_call_operand.vmem [shape: f32[2,16,16,128], index: 3, kind: output, shape index: {}]  }
   0x1   :  { %s2943_s14 = smov 0  }
   0x2 LB: > { %s25_s15 = sadd.s32 1, %s2913_s13  ;;  %p2231_p0 = scmp.ge.s32.totalorder %s2917_s14, 1  ;;  %s2917_s14 = sphi %s2943_s14, %s13_s14   ;;  %s2913_s13 = sphi %s2941_s13, %s5083_s13   ;;  %s2909_s12 = sphi %s2939_s12, %s5082_s12  }
   0x3   : > { %p27_p1 = scmp.ge.s32.totalorder %s25_s15, 2  ;;  %p173_p2 = scmp.lt.s32.totalorder %s2917_s14, 3 }
   0x5   : > { %s5085_s15 = smov (%p27_p1, %s25_s15), 0  ;;  %p174_p3 = pnand %p2231_p0, %p173_p2 }
   0x7   : > { %177 = sbr.rel (%p174_p3) target bundleno = 327 (0x147), region = 32 }
   0xc   : > { %p210_p4 = scmp.lt.s32.totalorder %s2909_s12, 1  ;;  %v2963_v0 = vld [vmem:[%s5044_s1] ss:$0 sm:$0xff]  ;;  %v2968_v1 = vld [vmem:[%s5044_s1 + $0x1] ss:$0 sm:$0xff] }
   0xd   : > { %v2978_v2 = vld [vmem:[%s5044_s1 + $0x2] ss:$0 sm:$0xff]  ;;  %v2983_v3 = vld [vmem:[%s5045_s2] ss:$0 sm:$0xff]  ;;  %v2994_v10 = vld [vmem:[%s5044_s1 + $0x4] ss:$0 sm:$0xff] }
   0xe   : > { %s5087_s12 = smov (!%p210_p4, %s2909_s12), 1  ;;  %v3000_v12 = vld [vmem:[%s5044_s1 + $0x5] ss:$0 sm:$0xff]  ;;  %v3007_v15 = vld [vmem:[%s5044_s1 + $0x6] ss:$0 sm:$0xff] }
   0xf   : > { %s2832_s16 = smul.u32 864, %s5087_s12  ;;  %v3013_v17 = vld [vmem:[%s5044_s1 + $0x8] ss:$0 sm:$0xff]  ;;  %v3018_v18 = vld [vmem:[%s5044_s1 + $0x9] ss:$0 sm:$0xff]  ;;  %s2831_s9 = sshll.u32 %s5087_s12, 8 }
  0x10   : > { %v3023_v19 = vld [vmem:[%s5044_s1 + $0xa] ss:$0 sm:$0xff]  ;;  %v3029_v22 = vld [vmem:[%s5044_s1 + $0xc] ss:$0 sm:$0xff]  ;;  %v3038_v27 = vld [vmem:[%s5044_s1 + $0xd] ss:$0 sm:$0xff]  ;;  %s3312_s11 = scalar_lea.vmem %s5046_s3, %s2831_s9 }
  0x11   : > { %s2973_s23 = scalar_lea.vmem %s5043_s0, %s2832_s16  ;;  %v3043_v28 = vld [vmem:[%s5044_s1 + $0xe] ss:$0 sm:$0xff]  ;;  %v3048_v29 = vld [vmem:[%s5044_s1 + $0x10] ss:$0 sm:$0xff]  ;;  %v3053_v30 = vld [vmem:[%s5044_s1 + $0x11] ss:$0 sm:$0xff] }
  0x12   : > { %v263_v4 = vld [vmem:[%s2973_s23] sm:$0xff]  ;;  %v2254_v9 = vld [vmem:[%s2973_s23 + $0x18] sm:$0xff]  ;;  %v264_v24 = vld [vmem:[%s2973_s23 + $0x8] sm:$0xff] }
  0x13   : > { %v303_v5 = vld [vmem:[%s2973_s23 + $0x1] sm:$0xff]  ;;  %v279_v6 = vmul.f32 %v2963_v0, %v263_v4  ;;  %v281_v11 = vmul.f32 %v2254_v9, %v2963_v0  ;;  %v2267_v16 = vld [vmem:[%s2973_s23 + $0x19] sm:$0xff]  ;;  %v400_v21 = vmul.f32 %v2994_v10, %v2254_v9  ;;  %v304_v25 = vld [vmem:[%s2973_s23 + $0x9] sm:$0xff]  ;;  %v280_v33 = vmul.f32 %v2963_v0, %v264_v24 }
  0x14   : > { %v319_v7 = vmul.f32 %v2968_v1, %v303_v5  ;;  %v343_v8 = vld [vmem:[%s2973_s23 + $0x2] sm:$0xff]  ;;  %v440_v23 = vmul.f32 %v3000_v12, %v2267_v16  ;;  %v2332_v32 = vld [vmem:[%s2973_s23 + $0x1b0] sm:$0xff]  ;;  %v320_v34 = vmul.f32 %v2968_v1, %v304_v25  ;;  %v321_v36 = vmul.f32 %v2267_v16, %v2968_v1  ;;  %v2280_v37 = vld [vmem:[%s2973_s23 + $0x1a] sm:$0xff] }
  0x15   : > { %v291_v13 = vadd.f32 %v2983_v3, %v279_v6  ;;  %v359_v14 = vmul.f32 %v2978_v2, %v343_v8  ;;  %v293_v26 = vadd.f32 %v2983_v3, %v281_v11  ;;  %v344_v35 = vld [vmem:[%s2973_s23 + $0xa] sm:$0xff]  ;;  %v480_v41 = vmul.f32 %v3007_v15, %v2280_v37  ;;  %v3069_v42 = vld [vmem:[%s2973_s23 + $0x32] sm:$0xff]  ;;  %v2255_v53 = vld [vmem:[%s2973_s23 + $0x20] sm:$0xff] }
  0x16   : > { %v3062_v38 = vld [vmem:[%s2973_s23 + $0x30] sm:$0xff]  ;;  %v292_v45 = vadd.f32 %v2983_v3, %v280_v33  ;;  %v360_v46 = vmul.f32 %v2978_v2, %v344_v35  ;;  %v601_v51 = vmul.f32 %v3023_v19, %v3069_v42  ;;  %v642_v52 = vmul.f32 %v3029_v22, %v2332_v32  ;;  %v3099_v56 = vld [vmem:[%s2973_s23 + $0x1c8] sm:$0xff]  ;;  %v3129_v9 = vld [vmem:[%s2973_s23 + $0x1e0] sm:$0xff] }
  0x17   : > { %v331_v20 = vadd.f32 %v319_v7, %v291_v13  ;;  %v3065_v39 = vld [vmem:[%s2973_s23 + $0x31] sm:$0xff]  ;;  %v521_v49 = vmul.f32 %v3013_v17, %v3062_v38  ;;  %v3102_v57 = vld [vmem:[%s2973_s23 + $0x1c9] sm:$0xff]  ;;  %v401_v59 = vmul.f32 %v2994_v10, %v2255_v53  ;;  %v333_v60 = vadd.f32 %v321_v36, %v293_v26  ;;  %v2268_v7 = vld [vmem:[%s2973_s23 + $0x21] sm:$0xff] }
  0x18   : > { %v2345_v43 = vld [vmem:[%s2973_s23 + $0x1b1] sm:$0xff]  ;;  %v561_v50 = vmul.f32 %v3018_v18, %v3065_v39  ;;  %v332_v58 = vadd.f32 %v320_v34, %v292_v45  ;;  %v3118_v4 = vmul.f32 %v3048_v29, %v3099_v56  ;;  %v3122_v5 = vmul.f32 %v3053_v30, %v3102_v57  ;;  %v3132_v11 = vld [vmem:[%s2973_s23 + $0x1e1] sm:$0xff]  ;;  %v2346_v36 = vld [vmem:[%s2973_s23 + $0x1b9] sm:$0xff] }
  0x19   : > { %v371_v31 = vadd.f32 %v359_v14, %v331_v20  ;;  %v2358_v44 = vld [vmem:[%s2973_s23 + $0x1b2] sm:$0xff]  ;;  %v3111_v62 = vmul.f32 %v3038_v27, %v2345_v43  ;;  %v3125_v6 = vld [vmem:[%s2973_s23 + $0x1ca] sm:$0xff]  ;;  %v441_v14 = vmul.f32 %v3000_v12, %v2268_v7  ;;  %v2281_v16 = vld [vmem:[%s2973_s23 + $0x22] sm:$0xff]  ;;  %v361_v20 = vmul.f32 %v2280_v37, %v2978_v2 }
  0x1a   : > { %v3078_v47 = vld [vmem:[%s5044_s1 + $0x12] ss:$0 sm:$0xff]  ;;  %v3083_v48 = vld [vmem:[%s5044_s1 + $0x14] ss:$0 sm:$0xff]  ;;  %v3096_v54 = vld [vmem:[%s5044_s1 + $0x15] ss:$0 sm:$0xff]  ;;  %v3114_v63 = vmul.f32 %v3043_v28, %v2358_v44  ;;  %v372_v13 = vadd.f32 %v360_v46, %v332_v58  ;;  %v481_v25 = vmul.f32 %v3007_v15, %v2281_v16  ;;  %v402_v32 = vmul.f32 %v3062_v38, %v2994_v10 }
  0x1b   : > { %v412_v40 = vadd.f32 %v400_v21, %v371_v31  ;;  %v3108_v61 = vld [vmem:[%s5044_s1 + $0x16] ss:$0 sm:$0xff]  ;;  %v3139_v21 = vmul.f32 %v3078_v47, %v3125_v6  ;;  %v3146_v24 = vld [vmem:[%s2973_s23 + $0x1e2] sm:$0xff]  ;;  %v3150_v26 = vld [vmem:[%s2973_s23 + $0x38] sm:$0xff]  ;;  %v3164_v43 = vmul.f32 %v3096_v54, %v3132_v11 }
  0x1c   : > { %v3153_v31 = vld [vmem:[%s2973_s23 + $0x39] sm:$0xff]  ;;  %v413_v34 = vadd.f32 %v401_v59, %v372_v13  ;;  %v3168_v44 = vmul.f32 %v3108_v61, %v3146_v24  ;;  %v522_v45 = vmul.f32 %v3013_v17, %v3150_v26 }
  0x1d   : > { %v452_v55 = vadd.f32 %v440_v23, %v412_v40  ;;  %v3143_v23 = vmul.f32 %v3083_v48, %v3129_v9  ;;  %v2333_v35 = vld [vmem:[%s2973_s23 + $0x1b8] sm:$0xff]  ;;  %v373_v40 = vadd.f32 %v361_v20, %v333_v60  ;;  %5058 = vst [vmem:[#allocation2_spill] sm:$0xff] %v3164_v43  ;;  %v562_v46 = vmul.f32 %v3018_v18, %v3153_v31 }
  0x1e   : > { %v2359_v37 = vld [vmem:[%s2973_s23 + $0x1ba] sm:$0xff]  ;;  %5059 = vst [vmem:[#allocation3_spill] sm:$0xff] %v3168_v44  ;;  %v482_v60 = vmul.f32 %v3069_v42, %v3007_v15  ;;  %v643_v13 = vmul.f32 %v3029_v22, %v2333_v35  ;;  %v683_v20 = vmul.f32 %v3038_v27, %v2346_v36 }
  0x1f   : > { %v492_v8 = vadd.f32 %v480_v41, %v452_v55  ;;  %v442_v41 = vmul.f32 %v3065_v39, %v3000_v12  ;;  %v453_v55 = vadd.f32 %v441_v14, %v413_v34  ;;  %v3175_v58 = vld [vmem:[%s2973_s23 + $0x3a] sm:$0xff]  ;;  %v414_v59 = vadd.f32 %v402_v32, %v373_v40  ;;  %v3188_v34 = vld [vmem:[%s2973_s23 + $0x1d0] sm:$0xff] }
  0x20   : > { %v723_v44 = vmul.f32 %v3043_v28, %v2359_v37  ;;  %5060 = vst [vmem:[#allocation4_spill] sm:$0xff] %v3188_v34  ;;  %v3191_v32 = vld [vmem:[%s2973_s23 + $0x1d1] sm:$0xff]  ;;  %v3197_v35 = vmul.f32 %v3048_v29, %v3188_v34  ;;  %v3204_v37 = vld [vmem:[%s2973_s23 + $0x49] sm:$0xff] }
  0x21   : > { %v533_v33 = vadd.f32 %v521_v49, %v492_v8  ;;  %v602_v8 = vmul.f32 %v3023_v19, %v3175_v58  ;;  %5061 = vst [vmem:[#allocation5_spill] sm:$0xff] %v3191_v32  ;;  %v454_v40 = vadd.f32 %v442_v41, %v414_v59  ;;  %v3201_v36 = vmul.f32 %v3053_v30, %v3191_v32  ;;  %v3212_v59 = vld [vmem:[%s2973_s23 + $0x1e8] sm:$0xff] }
  0x22   : > { %5062 = vst [vmem:[#allocation6_spill] sm:$0xff] %v3197_v35  ;;  %5065 = vst [vmem:[#allocation9_spill] sm:$0xff] %v3212_v59  ;;  %v563_v35 = vmul.f32 %v3018_v18, %v3204_v37 }
  0x23   : > { %v573_v49 = vadd.f32 %v561_v50, %v533_v33  ;;  %v3185_v50 = vld [vmem:[%s2973_s23 + $0x48] sm:$0xff]  ;;  %v493_v33 = vadd.f32 %v481_v25, %v453_v55  ;;  %5063 = vst [vmem:[#allocation7_spill] sm:$0xff] %v3201_v36  ;;  %v322_v25 = vmul.f32 %v2268_v7, %v2968_v1  ;;  %v3209_v55 = vld [vmem:[%s2973_s23 + $0x1d2] sm:$0xff]  ;;  %v494_v34 = vadd.f32 %v482_v60, %v454_v40 }
  0x24   : > { %v523_v43 = vmul.f32 %v3013_v17, %v3185_v50  ;;  %5064 = vst [vmem:[#allocation8_spill] sm:$0xff] %v3209_v55  ;;  %v3218_v32 = vmul.f32 %v3078_v47, %v3209_v55  ;;  %v3225_v36 = vld [vmem:[%s2973_s23 + $0x4a] sm:$0xff]  ;;  %v362_v7 = vmul.f32 %v2281_v16, %v2978_v2 }
  0x25   : > { %v613_v14 = vadd.f32 %v601_v51, %v573_v49  ;;  %v282_v51 = vmul.f32 %v2255_v53, %v2963_v0  ;;  %v534_v49 = vadd.f32 %v522_v45, %v493_v33  ;;  %v3222_v53 = vmul.f32 %v3083_v48, %v3212_v59  ;;  %v3234_v33 = vld [vmem:[%s2973_s23 + $0x1ea] sm:$0xff] }
  0x26   : > { %5067 = vst [vmem:[#allocation11_spill] sm:$0xff] %v3234_v33  ;;  %v535_v40 = vadd.f32 %v523_v43, %v494_v34  ;;  %v603_v55 = vmul.f32 %v3023_v19, %v3225_v36  ;;  %v644_v43 = vmul.f32 %v3099_v56, %v3029_v22  ;;  %v684_v34 = vmul.f32 %v3102_v57, %v3038_v27 }
  0x27   : > { %v654_v41 = vadd.f32 %v642_v52, %v613_v14  ;;  %v294_v52 = vadd.f32 %v2983_v3, %v282_v51  ;;  %v574_v60 = vadd.f32 %v562_v46, %v534_v49  ;;  %v3231_v14 = vld [vmem:[%s2973_s23 + $0x1e9] sm:$0xff]  ;;  %v3244_v51 = vmul.f32 %v3108_v61, %v3234_v33 }
  0x28   : > { %5066 = vst [vmem:[#allocation10_spill] sm:$0xff] %v3231_v14  ;;  %v3240_v59 = vmul.f32 %v3096_v54, %v3231_v14  ;;  %v575_v49 = vadd.f32 %v563_v35, %v535_v40  ;;  %v724_v14 = vmul.f32 %v3125_v6, %v3043_v28  ;;  %v483_v56 = vmul.f32 %v3175_v58, %v3007_v15 }
  0x29   : > { %v694_v45 = vadd.f32 %v3111_v62, %v654_v41  ;;  %5068 = vst [vmem:[#allocation12_spill] sm:$0xff] %v3244_v51  ;;  %v334_v16 = vadd.f32 %v322_v25, %v294_v52  ;;  %v403_v62 = vmul.f32 %v3150_v26, %v2994_v10  ;;  %v614_v41 = vadd.f32 %v602_v8, %v574_v60 }
  0x2a   : > { %v443_v25 = vmul.f32 %v3153_v31, %v3000_v12  ;;  %v765_v8 = vmul.f32 %v3129_v9, %v3048_v29  ;;  %v283_v57 = vmul.f32 %v3062_v38, %v2963_v0  ;;  %v323_v6 = vmul.f32 %v3065_v39, %v2968_v1 }
  0x2b   : > { %v734_v46 = vadd.f32 %v3114_v63, %v694_v45  ;;  %v374_v33 = vadd.f32 %v362_v7, %v334_v16  ;;  %v655_v51 = vadd.f32 %v643_v13, %v614_v41  ;;  %v615_v63 = vadd.f32 %v603_v55, %v575_v49  ;;  %v3270_v45 = vld [vmem:[%s2973_s23 + $0x50] sm:$0xff] }
  0x2c   : > { %v805_v55 = vmul.f32 %v3132_v11, %v3053_v30  ;;  %v295_v38 = vadd.f32 %v2983_v3, %v283_v57  ;;  %v363_v40 = vmul.f32 %v3069_v42, %v2978_v2  ;;  %v3281_v16 = vld [vmem:[%s2973_s23 + $0x51] sm:$0xff]  ;;  %v404_v42 = vmul.f32 %v3185_v50, %v2994_v10 }
  0x2d   : > { %v775_v52 = vadd.f32 %v3118_v4, %v734_v46  ;;  %v415_v35 = vadd.f32 %v403_v62, %v374_v33  ;;  %v695_v4 = vadd.f32 %v683_v20, %v655_v51  ;;  %v656_v13 = vadd.f32 %v644_v43, %v615_v63  ;;  %v3284_v62 = vld [vmem:[%s2973_s23 + $0x1f8] sm:$0xff] }
  0x2e   : > { %v524_v33 = vmul.f32 %v3013_v17, %v3270_v45  ;;  %v845_v51 = vmul.f32 %v3146_v24, %v3078_v47  ;;  %v564_v41 = vmul.f32 %v3018_v18, %v3281_v16  ;;  %v335_v49 = vadd.f32 %v323_v6, %v295_v38  ;;  %v3299_v63 = vld [vmem:[%s2973_s23 + $0x1f9] sm:$0xff] }
  0x2f   : > { %v815_v7 = vadd.f32 %v3122_v5, %v775_v52  ;;  %v455_v60 = vadd.f32 %v443_v25, %v415_v35  ;;  %v735_v5 = vadd.f32 %v723_v44, %v695_v4  ;;  %v696_v20 = vadd.f32 %v684_v34, %v656_v13  ;;  %v5069_v44 = vld [vmem:[#allocation6_spill] sm:$0xff]  ;;  %v3296_v52 = vld [vmem:[%s2973_s23 + $0x52] sm:$0xff]  ;;  %v5071_v4 = vld [vmem:[#allocation7_spill] sm:$0xff] }
  0x30   : > { %v886_v25 = vmul.f32 %v3083_v48, %v3284_v62  ;;  %v375_v57 = vadd.f32 %v363_v40, %v335_v49  ;;  %v444_v6 = vmul.f32 %v3204_v37, %v3000_v12  ;;  %v5072_v40 = vld [vmem:[#allocation4_spill] sm:$0xff] }
  0x31   : > { %v855_v39 = vadd.f32 %v3139_v21, %v815_v7  ;;  %v495_v46 = vadd.f32 %v483_v56, %v455_v60  ;;  %v776_v43 = vadd.f32 %v5069_v44, %v735_v5  ;;  %v736_v34 = vadd.f32 %v724_v14, %v696_v20  ;;  %v5073_v20 = vld [vmem:[#allocation3_spill] sm:$0xff] }
  0x32   : > { %v604_v56 = vmul.f32 %v3023_v19, %v3296_v52  ;;  %v926_v60 = vmul.f32 %v3096_v54, %v3299_v63  ;;  %v416_v5 = vadd.f32 %v404_v42, %v375_v57 }
  0x33   : > { %v896_v21 = vadd.f32 %v3143_v23, %v855_v39  ;;  %v536_v35 = vadd.f32 %v524_v33, %v495_v46  ;;  %v5070_v23 = vld [vmem:[#allocation2_spill] sm:$0xff]  ;;  %v816_v14 = vadd.f32 %v5071_v4, %v776_v43  ;;  %v777_v13 = vadd.f32 %v765_v8, %v736_v34 }
  0x34   : > { %v3315_v33 = vld [vmem:[%s2973_s23 + $0x1fa] sm:$0xff]  ;;  %v645_v39 = vmul.f32 %v5072_v40, %v3029_v22  ;;  %v484_v8 = vmul.f32 %v3225_v36, %v3007_v15 }
  0x35   : > { %v936_v7 = vadd.f32 %v5070_v23, %v896_v21  ;;  %v576_v38 = vadd.f32 %v564_v41, %v536_v35  ;;  %v856_v49 = vadd.f32 %v3218_v32, %v816_v14  ;;  %v817_v21 = vadd.f32 %v805_v55, %v777_v13  ;;  %v3326_v43 = vld [vmem:[%s2973_s23 + $0x60] sm:$0xff]  ;;  %v5074_v41 = vld [vmem:[#allocation5_spill] sm:$0xff]  ;;  %v5075_v32 = vld [vmem:[#allocation8_spill] sm:$0xff] }
  0x36   : > { %v966_v44 = vmul.f32 %v3108_v61, %v3315_v33  ;;  %v685_v35 = vmul.f32 %v5074_v41, %v3038_v27  ;;  %v456_v23 = vadd.f32 %v444_v6, %v416_v5  ;;  %v525_v42 = vmul.f32 %v3013_v17, %v3326_v43  ;;  %v3337_v4 = vld [vmem:[%s2973_s23 + $0x61] sm:$0xff] }
  0x37   : > { %v976_v46 = vadd.f32 %v5073_v20, %v936_v7  ;;  %v616_v34 = vadd.f32 %v604_v56, %v576_v38  ;;  %v897_v57 = vadd.f32 %v3222_v53, %v856_v49  ;;  %v857_v7 = vadd.f32 %v845_v51, %v817_v21  ;;  %v3347_v51 = vld [vmem:[%s2973_s23 + $0x62] sm:$0xff] }
  0x38   : > { %v725_v55 = vmul.f32 %v5075_v32, %v3043_v28  ;;  %v284_v56 = vmul.f32 %v3150_v26, %v2963_v0  ;;  %v496_v13 = vadd.f32 %v484_v8, %v456_v23  ;;  %v565_v6 = vmul.f32 %v3018_v18, %v3337_v4 }
  0x39   : > { %988 = vst [vmem:[%s3312_s11] sm:$0xff] %v976_v46  ;;  %v657_v14 = vadd.f32 %v645_v39, %v616_v34  ;;  %v324_v38 = vmul.f32 %v3153_v31, %v2968_v1  ;;  %v937_v40 = vadd.f32 %v3240_v59, %v897_v57  ;;  %v898_v53 = vadd.f32 %v886_v25, %v857_v7  ;;  %v5076_v39 = vld [vmem:[#allocation9_spill] sm:$0xff]  ;;  %v5077_v31 = vld [vmem:[#allocation12_spill] sm:$0xff] }
  0x3a   : > { %v296_v5 = vadd.f32 %v2983_v3, %v284_v56  ;;  %v364_v20 = vmul.f32 %v3175_v58, %v2978_v2  ;;  %v766_v8 = vmul.f32 %v5076_v39, %v3048_v29  ;;  %v537_v46 = vadd.f32 %v525_v42, %v496_v13  ;;  %v5078_v58 = vld [vmem:[#allocation10_spill] sm:$0xff]  ;;  %v5079_v56 = vld [vmem:[#allocation11_spill] sm:$0xff] }
  0x3b   : > { %v697_v26 = vadd.f32 %v685_v35, %v657_v14  ;;  %v605_v49 = vmul.f32 %v3023_v19, %v3347_v51  ;;  %v977_v21 = vadd.f32 %v5077_v31, %v937_v40  ;;  %v938_v59 = vadd.f32 %v926_v60, %v898_v53 }
  0x3c   : > { %v336_v25 = vadd.f32 %v324_v38, %v296_v5  ;;  %v405_v34 = vmul.f32 %v3270_v45, %v2994_v10  ;;  %v806_v35 = vmul.f32 %v5078_v58, %v3053_v30  ;;  %v577_v23 = vadd.f32 %v565_v6, %v537_v46  ;;  %v3372_v6 = vld [vmem:[%s2973_s23 + $0x200] sm:$0xff] }
  0x3d   : > { %v737_v41 = vadd.f32 %v725_v55, %v697_v26  ;;  %v646_v42 = vmul.f32 %v3129_v9, %v3029_v22  ;;  %989 = vst [vmem:[%s3312_s11 + $0x8] sm:$0xff] %v977_v21  ;;  %v978_v57 = vadd.f32 %v966_v44, %v938_v59  ;;  %v445_v60 = vmul.f32 %v3281_v16, %v3000_v12 }
  0x3e   : > { %v376_v7 = vadd.f32 %v364_v20, %v336_v25  ;;  %v846_v14 = vmul.f32 %v5079_v56, %v3078_v47  ;;  %v617_v55 = vadd.f32 %v605_v49, %v577_v23  ;;  %v686_v13 = vmul.f32 %v3132_v11, %v3038_v27  ;;  %v3381_v20 = vld [vmem:[%s2973_s23 + $0x68] sm:$0xff] }
  0x3f   : > { %v778_v32 = vadd.f32 %v766_v8, %v737_v41  ;;  %990 = vst [vmem:[%s3312_s11 + $0x10] sm:$0xff] %v978_v57  ;;  %v485_v44 = vmul.f32 %v3296_v52, %v3007_v15  ;;  %v887_v40 = vmul.f32 %v3083_v48, %v3372_v6  ;;  %v726_v5 = vmul.f32 %v3146_v24, %v3043_v28  ;;  %v3384_v11 = vld [vmem:[%s2973_s23 + $0x201] sm:$0xff]  ;;  %v3397_v25 = vld [vmem:[%s2973_s23 + $0x69] sm:$0xff] }
  0x40   : > { %v417_v9 = vadd.f32 %v405_v34, %v376_v7  ;;  %v658_v53 = vadd.f32 %v646_v42, %v617_v55  ;;  %v526_v8 = vmul.f32 %v3013_v17, %v3381_v20  ;;  %v285_v46 = vmul.f32 %v3185_v50, %v2963_v0  ;;  %v3400_v34 = vld [vmem:[%s2973_s23 + $0x202] sm:$0xff] }
  0x41   : > { %v818_v38 = vadd.f32 %v806_v35, %v778_v32  ;;  %v325_v49 = vmul.f32 %v3204_v37, %v2968_v1  ;;  %v927_v24 = vmul.f32 %v3096_v54, %v3384_v11  ;;  %v767_v59 = vmul.f32 %v3284_v62, %v3048_v29  ;;  %v3415_v32 = vld [vmem:[%s2973_s23 + $0x210] sm:$0xff] }
  0x42   : > { %v457_v26 = vadd.f32 %v445_v60, %v417_v9  ;;  %v698_v21 = vadd.f32 %v686_v13, %v658_v53  ;;  %v566_v50 = vmul.f32 %v3018_v18, %v3397_v25  ;;  %v297_v35 = vadd.f32 %v2983_v3, %v285_v46  ;;  %v3412_v60 = vld [vmem:[%s2973_s23 + $0x6a] sm:$0xff] }
  0x43   : > { %v858_v31 = vadd.f32 %v846_v14, %v818_v38  ;;  %v365_v37 = vmul.f32 %v3225_v36, %v2978_v2  ;;  %v967_v42 = vmul.f32 %v3108_v61, %v3400_v34  ;;  %v807_v7 = vmul.f32 %v3299_v63, %v3053_v30  ;;  %v3426_v53 = vld [vmem:[%s2973_s23 + $0x211] sm:$0xff] }
  0x44   : > { %v497_v41 = vadd.f32 %v485_v44, %v457_v26  ;;  %v738_v57 = vadd.f32 %v726_v5, %v698_v21  ;;  %v606_v55 = vmul.f32 %v3023_v19, %v3412_v60  ;;  %v337_v13 = vadd.f32 %v325_v49, %v297_v35 }
  0x45   : > { %v899_v23 = vadd.f32 %v887_v40, %v858_v31  ;;  %v406_v36 = vmul.f32 %v3326_v43, %v2994_v10  ;;  %v847_v38 = vmul.f32 %v3315_v33, %v3078_v47  ;;  %v888_v40 = vmul.f32 %v3083_v48, %v3415_v32 }
  0x46   : > { %v538_v14 = vadd.f32 %v526_v8, %v497_v41  ;;  %v779_v44 = vadd.f32 %v767_v59, %v738_v57  ;;  %v647_v26 = vmul.f32 %v5076_v39, %v3029_v22  ;;  %v377_v8 = vadd.f32 %v365_v37, %v337_v13  ;;  %v3439_v39 = vld [vmem:[%s2973_s23 + $0x78] sm:$0xff] }
  0x47   : > { %v939_v9 = vadd.f32 %v927_v24, %v899_v23  ;;  %v446_v46 = vmul.f32 %v3337_v4, %v3000_v12  ;;  %v928_v24 = vmul.f32 %v3096_v54, %v3426_v53  ;;  %v687_v21 = vmul.f32 %v5078_v58, %v3038_v27  ;;  %v3451_v57 = vld [vmem:[%s2973_s23 + $0x212] sm:$0xff] }
  0x48   : > { %v578_v5 = vadd.f32 %v566_v50, %v538_v14  ;;  %v819_v31 = vadd.f32 %v807_v7, %v779_v44  ;;  %v418_v41 = vadd.f32 %v406_v36, %v377_v8  ;;  %v486_v50 = vmul.f32 %v3347_v51, %v3007_v15 }
  0x49   : > { %v979_v49 = vadd.f32 %v967_v42, %v939_v9  ;;  %v286_v35 = vmul.f32 %v3270_v45, %v2963_v0  ;;  %v727_v23 = vmul.f32 %v5079_v56, %v3043_v28  ;;  %v527_v42 = vmul.f32 %v3013_v17, %v3439_v39 }
  0x4a   : > { %v618_v59 = vadd.f32 %v606_v55, %v578_v5  ;;  %v859_v37 = vadd.f32 %v847_v38, %v819_v31  ;;  %v326_v58 = vmul.f32 %v3281_v16, %v2968_v1  ;;  %v458_v14 = vadd.f32 %v446_v46, %v418_v41  ;;  %v3454_v55 = vld [vmem:[%s2973_s23 + $0x79] sm:$0xff] }
  0x4b   : > { %991 = vst [vmem:[%s3312_s11 + $0x18] sm:$0xff] %v979_v49  ;;  %v298_v45 = vadd.f32 %v2983_v3, %v286_v35  ;;  %v366_v13 = vmul.f32 %v3296_v52, %v2978_v2  ;;  %v968_v36 = vmul.f32 %v3108_v61, %v3451_v57  ;;  %v768_v16 = vmul.f32 %v3372_v6, %v3048_v29  ;;  %v3466_v5 = vld [vmem:[%s2973_s23 + $0x7a] sm:$0xff] }
  0x4c   : > { %v659_v7 = vadd.f32 %v647_v26, %v618_v59  ;;  %v900_v56 = vadd.f32 %v888_v40, %v859_v37  ;;  %v567_v9 = vmul.f32 %v3018_v18, %v3454_v55  ;;  %v498_v38 = vadd.f32 %v486_v50, %v458_v14  ;;  %v3480_v59 = vld [vmem:[%s2973_s23 + $0x219] sm:$0xff] }
  0x4d   : > { %v338_v26 = vadd.f32 %v326_v58, %v298_v45  ;;  %v407_v8 = vmul.f32 %v3381_v20, %v2994_v10  ;;  %v808_v40 = vmul.f32 %v3384_v11, %v3053_v30  ;;  %v848_v46 = vmul.f32 %v3400_v34, %v3078_v47  ;;  %v3491_v14 = vld [vmem:[%s2973_s23 + $0x21a] sm:$0xff] }
  0x4e   : > { %v699_v44 = vadd.f32 %v687_v21, %v659_v7  ;;  %v940_v52 = vadd.f32 %v928_v24, %v900_v56  ;;  %v607_v49 = vmul.f32 %v3023_v19, %v3466_v5  ;;  %v3477_v21 = vld [vmem:[%s2973_s23 + $0x218] sm:$0xff]  ;;  %v539_v41 = vadd.f32 %v527_v42, %v498_v38 }
  0x4f   : > { %v378_v50 = vadd.f32 %v366_v13, %v338_v26  ;;  %v447_v24 = vmul.f32 %v3397_v25, %v3000_v12  ;;  %v889_v37 = vmul.f32 %v3083_v48, %v3477_v21  ;;  %v929_v58 = vmul.f32 %v3096_v54, %v3480_v59 }
  0x50   : > { %v739_v31 = vadd.f32 %v727_v23, %v699_v44  ;;  %v980_v35 = vadd.f32 %v968_v36, %v940_v52  ;;  %v648_v23 = vmul.f32 %v3284_v62, %v3029_v22  ;;  %v579_v45 = vadd.f32 %v567_v9, %v539_v41  ;;  %v3501_v44 = vld [vmem:[%s2973_s23 + $0x80] sm:$0xff] }
  0x51   : > { %v419_v42 = vadd.f32 %v407_v8, %v378_v50  ;;  %v487_v13 = vmul.f32 %v3412_v60, %v3007_v15  ;;  %v969_v56 = vmul.f32 %v3108_v61, %v3491_v14  ;;  %v688_v36 = vmul.f32 %v3299_v63, %v3038_v27 }
  0x52   : > { %v780_v7 = vadd.f32 %v768_v16, %v739_v31  ;;  %992 = vst [vmem:[%s3312_s11 + $0x20] sm:$0xff] %v980_v35  ;;  %v287_v62 = vmul.f32 %v3326_v43, %v2963_v0  ;;  %v327_v16 = vmul.f32 %v3337_v4, %v2968_v1  ;;  %v619_v38 = vadd.f32 %v607_v49, %v579_v45  ;;  %v3514_v31 = vld [vmem:[%s2973_s23 + $0x81] sm:$0xff] }
  0x53   : > { %v459_v26 = vadd.f32 %v447_v24, %v419_v42  ;;  %v528_v8 = vmul.f32 %v3013_v17, %v3501_v44  ;;  %v728_v52 = vmul.f32 %v3315_v33, %v3043_v28  ;;  %v769_v63 = vmul.f32 %v3415_v32, %v3048_v29  ;;  %v3526_v35 = vld [vmem:[%s2973_s23 + $0x82] sm:$0xff] }
  0x54   : > { %v820_v9 = vadd.f32 %v808_v40, %v780_v7  ;;  %v299_v43 = vadd.f32 %v2983_v3, %v287_v62  ;;  %v367_v4 = vmul.f32 %v3347_v51, %v2978_v2  ;;  %v660_v49 = vadd.f32 %v648_v23, %v619_v38  ;;  %v3534_v23 = vld [vmem:[%s2973_s23 + $0x229] sm:$0xff] }
  0x55   : > { %v499_v41 = vadd.f32 %v487_v13, %v459_v26  ;;  %v568_v50 = vmul.f32 %v3018_v18, %v3514_v31  ;;  %v809_v33 = vmul.f32 %v3426_v53, %v3053_v30  ;;  %v849_v24 = vmul.f32 %v3451_v57, %v3078_v47  ;;  %5080 = vst [vmem:[#allocation6_spill] sm:$0xff] %v3534_v23 }
  0x56   : > { %v860_v40 = vadd.f32 %v848_v46, %v820_v9  ;;  %v339_v7 = vadd.f32 %v327_v16, %v299_v43  ;;  %v408_v45 = vmul.f32 %v3439_v39, %v2994_v10  ;;  %v700_v51 = vadd.f32 %v688_v36, %v660_v49  ;;  %v3531_v46 = vld [vmem:[%s2973_s23 + $0x228] sm:$0xff] }
  0x57   : > { %v540_v13 = vadd.f32 %v528_v8, %v499_v41  ;;  %v608_v62 = vmul.f32 %v3023_v19, %v3526_v35  ;;  %v890_v9 = vmul.f32 %v3083_v48, %v3531_v46  ;;  %v930_v16 = vmul.f32 %v3096_v54, %v3534_v23 }
  0x58   : > { %v901_v42 = vadd.f32 %v889_v37, %v860_v40  ;;  %v379_v38 = vadd.f32 %v367_v4, %v339_v7  ;;  %v448_v37 = vmul.f32 %v3454_v55, %v3000_v12  ;;  %v740_v26 = vadd.f32 %v728_v52, %v700_v51  ;;  %v3553_v52 = vld [vmem:[%s2973_s23 + $0x90] sm:$0xff] }
  0x59   : > { %v580_v43 = vadd.f32 %v568_v50, %v540_v13  ;;  %v649_v8 = vmul.f32 %v3372_v6, %v3029_v22  ;;  %v689_v40 = vmul.f32 %v3384_v11, %v3038_v27  ;;  %v488_v41 = vmul.f32 %v3466_v5, %v3007_v15  ;;  %v3558_v6 = vld [vmem:[%s2973_s23 + $0x22a] sm:$0xff] }
  0x5a   : > { %v941_v36 = vadd.f32 %v929_v58, %v901_v42  ;;  %v420_v49 = vadd.f32 %v408_v45, %v379_v38  ;;  %v288_v4 = vmul.f32 %v3381_v20, %v2963_v0  ;;  %v781_v23 = vadd.f32 %v769_v63, %v740_v26  ;;  %v3571_v13 = vld [vmem:[%s2973_s23 + $0x91] sm:$0xff] }
  0x5b   : > { %v620_v58 = vadd.f32 %v608_v62, %v580_v43  ;;  %v328_v50 = vmul.f32 %v3397_v25, %v2968_v1  ;;  %v529_v11 = vmul.f32 %v3013_v17, %v3553_v52  ;;  %v368_v20 = vmul.f32 %v3412_v60, %v2978_v2  ;;  %v3585_v43 = vld [vmem:[%s2973_s23 + $0x230] sm:$0xff] }
  0x5c   : > { %v981_v7 = vadd.f32 %v969_v56, %v941_v36  ;;  %v460_v42 = vadd.f32 %v448_v37, %v420_v49  ;;  %v300_v45 = vadd.f32 %v2983_v3, %v288_v4  ;;  %v821_v56 = vadd.f32 %v809_v33, %v781_v23 }
  0x5d   : > { %v970_v63 = vmul.f32 %v3108_v61, %v3558_v6  ;;  %v661_v51 = vadd.f32 %v649_v8, %v620_v58  ;;  %v729_v25 = vmul.f32 %v3400_v34, %v3043_v28  ;;  %v569_v38 = vmul.f32 %v3018_v18, %v3571_v13  ;;  %v3582_v34 = vld [vmem:[%s2973_s23 + $0x92] sm:$0xff] }
  0x5e   : > { %993 = vst [vmem:[%s3312_s11 + $0x28] sm:$0xff] %v981_v7  ;;  %v500_v62 = vadd.f32 %v488_v41, %v460_v42  ;;  %v340_v37 = vadd.f32 %v328_v50, %v300_v45  ;;  %v409_v60 = vmul.f32 %v3501_v44, %v2994_v10  ;;  %v861_v36 = vadd.f32 %v849_v24, %v821_v56 }
  0x5f   : > { %v701_v26 = vadd.f32 %v689_v40, %v661_v51  ;;  %v770_v33 = vmul.f32 %v3477_v21, %v3048_v29  ;;  %v810_v23 = vmul.f32 %v3480_v59, %v3053_v30  ;;  %v609_v49 = vmul.f32 %v3023_v19, %v3582_v34 }
  0x60   : > { %v541_v8 = vadd.f32 %v529_v11, %v500_v62  ;;  %v380_v41 = vadd.f32 %v368_v20, %v340_v37  ;;  %v449_v24 = vmul.f32 %v3514_v31, %v3000_v12  ;;  %v902_v40 = vadd.f32 %v890_v9, %v861_v36  ;;  %v3600_v20 = vld [vmem:[%s2973_s23 + $0x98] sm:$0xff] }
  0x61   : > { %v741_v4 = vadd.f32 %v729_v25, %v701_v26  ;;  %v850_v7 = vmul.f32 %v3491_v14, %v3078_v47  ;;  %v891_v58 = vmul.f32 %v3083_v48, %v3585_v43  ;;  %v650_v42 = vmul.f32 %v3415_v32, %v3029_v22  ;;  %v3607_v32 = vld [vmem:[%s2973_s23 + $0x99] sm:$0xff] }
  0x62   : > { %v581_v50 = vadd.f32 %v569_v38, %v541_v8  ;;  %v421_v11 = vadd.f32 %v409_v60, %v380_v41  ;;  %v489_v45 = vmul.f32 %v3526_v35, %v3007_v15  ;;  %v942_v56 = vadd.f32 %v930_v16, %v902_v40  ;;  %v3621_v41 = vld [vmem:[%s2973_s23 + $0x9a] sm:$0xff]  ;;  %v3634_v40 = vld [vmem:[%s2973_s23 + $0x232] sm:$0xff] }
  0x63   : > { %v782_v9 = vadd.f32 %v770_v33, %v741_v4  ;;  %v690_v51 = vmul.f32 %v3426_v53, %v3038_v27  ;;  %v530_v25 = vmul.f32 %v3013_v17, %v3600_v20  ;;  %v289_v37 = vmul.f32 %v3439_v39, %v2963_v0  ;;  %v3618_v33 = vld [vmem:[%s2973_s23 + $0x231] sm:$0xff] }
  0x64   : > { %v621_v62 = vadd.f32 %v609_v49, %v581_v50  ;;  %v461_v38 = vadd.f32 %v449_v24, %v421_v11  ;;  %v329_v60 = vmul.f32 %v3454_v55, %v2968_v1  ;;  %v982_v16 = vadd.f32 %v970_v63, %v942_v56 }
  0x65   : > { %v822_v36 = vadd.f32 %v810_v23, %v782_v9  ;;  %v730_v53 = vmul.f32 %v3451_v57, %v3043_v28  ;;  %v570_v26 = vmul.f32 %v3018_v18, %v3607_v32  ;;  %v301_v39 = vadd.f32 %v2983_v3, %v289_v37 }
  0x66   : > { %v662_v8 = vadd.f32 %v650_v42, %v621_v62  ;;  %v501_v49 = vadd.f32 %v489_v45, %v461_v38  ;;  %v369_v55 = vmul.f32 %v3466_v5, %v2978_v2  ;;  %994 = vst [vmem:[%s3312_s11 + $0x30] sm:$0xff] %v982_v16  ;;  %v931_v57 = vmul.f32 %v3096_v54, %v3618_v33  ;;  %v5081_v45 = vld [vmem:[#allocation6_spill] sm:$0xff] }
  0x67   : > { %v862_v63 = vadd.f32 %v850_v7, %v822_v36  ;;  %v771_v23 = vmul.f32 %v3531_v46, %v3048_v29  ;;  %v610_v24 = vmul.f32 %v3023_v19, %v3621_v41  ;;  %v341_v42 = vadd.f32 %v329_v60, %v301_v39  ;;  %v3645_v38 = vld [vmem:[%s2973_s23 + $0x240] sm:$0xff] }
  0x68   : > { %v702_v4 = vadd.f32 %v690_v51, %v662_v8  ;;  %v542_v50 = vadd.f32 %v530_v25, %v501_v49  ;;  %v410_v5 = vmul.f32 %v3553_v52, %v2994_v10  ;;  %v971_v7 = vmul.f32 %v3108_v61, %v3634_v40 }
  0x69   : > { %v903_v11 = vadd.f32 %v891_v58, %v862_v63  ;;  %v811_v56 = vmul.f32 %v5081_v45, %v3053_v30  ;;  %v651_v9 = vmul.f32 %v3477_v21, %v3029_v22  ;;  %v381_v25 = vadd.f32 %v369_v55, %v341_v42  ;;  %v3660_v55 = vld [vmem:[%s2973_s23 + $0xa8] sm:$0xff] }
  0x6a   : > { %v742_v62 = vadd.f32 %v730_v53, %v702_v4  ;;  %v582_v51 = vadd.f32 %v570_v26, %v542_v50  ;;  %v450_v37 = vmul.f32 %v3571_v13, %v3000_v12  ;;  %v851_v60 = vmul.f32 %v3558_v6, %v3078_v47 }
  0x6b   : > { %v943_v58 = vadd.f32 %v931_v57, %v903_v11  ;;  %v892_v16 = vmul.f32 %v3083_v48, %v3645_v38  ;;  %v691_v21 = vmul.f32 %v3480_v59, %v3038_v27  ;;  %v422_v26 = vadd.f32 %v410_v5, %v381_v25 }
  0x6c   : > { %v783_v36 = vadd.f32 %v771_v23, %v742_v62  ;;  %v622_v53 = vadd.f32 %v610_v24, %v582_v51  ;;  %v490_v8 = vmul.f32 %v3582_v34, %v3007_v15  ;;  %v731_v39 = vmul.f32 %v3491_v14, %v3043_v28  ;;  %v3667_v23 = vld [vmem:[%s2973_s23 + $0x241] sm:$0xff] }
  0x6d   : > { %v983_v49 = vadd.f32 %v971_v7, %v943_v58  ;;  %v290_v63 = vmul.f32 %v3501_v44, %v2963_v0  ;;  %v330_v59 = vmul.f32 %v3514_v31, %v2968_v1  ;;  %v462_v4 = vadd.f32 %v450_v37, %v422_v26  ;;  %v3677_v44 = vld [vmem:[%s2973_s23 + $0xa9] sm:$0xff] }
  0x6e   : > { %v823_v57 = vadd.f32 %v811_v56, %v783_v36  ;;  %v663_v24 = vadd.f32 %v651_v9, %v622_v53  ;;  %v531_v50 = vmul.f32 %v3013_v17, %v3660_v55  ;;  %v932_v14 = vmul.f32 %v3096_v54, %v3667_v23  ;;  %v3683_v7 = vld [vmem:[%s2973_s23 + $0x242] sm:$0xff]  ;;  %v3692_v37 = vld [vmem:[%s2973_s23 + $0xaa] sm:$0xff] }
  0x6f   : > { %995 = vst [vmem:[%s3312_s11 + $0x38] sm:$0xff] %v983_v49  ;;  %v772_v42 = vmul.f32 %v3585_v43, %v3048_v29  ;;  %v302_v31 = vadd.f32 %v2983_v3, %v290_v63  ;;  %v370_v5 = vmul.f32 %v3526_v35, %v2978_v2  ;;  %v502_v9 = vadd.f32 %v490_v8, %v462_v4 }
  0x70   : > { %v863_v11 = vadd.f32 %v851_v60, %v823_v57  ;;  %v703_v56 = vadd.f32 %v691_v21, %v663_v24  ;;  %v571_v62 = vmul.f32 %v3018_v18, %v3677_v44  ;;  %v972_v51 = vmul.f32 %v3108_v61, %v3683_v7  ;;  %v3697_v21 = vld [vmem:[%s2973_s23 + $0x248] sm:$0xff] }
  0x71   : > { %v812_v25 = vmul.f32 %v3618_v33, %v3053_v30  ;;  %v342_v58 = vadd.f32 %v330_v59, %v302_v31  ;;  %v411_v35 = vmul.f32 %v3600_v20, %v2994_v10  ;;  %v543_v53 = vadd.f32 %v531_v50, %v502_v9 }
  0x72   : > { %v904_v60 = vadd.f32 %v892_v16, %v863_v11  ;;  %v743_v36 = vadd.f32 %v731_v39, %v703_v56  ;;  %v611_v26 = vmul.f32 %v3023_v19, %v3692_v37  ;;  %v852_v8 = vmul.f32 %v3634_v40, %v3078_v47  ;;  %v3708_v39 = vld [vmem:[%s2973_s23 + $0x249] sm:$0xff] }
  0x73   : > { %v893_v49 = vmul.f32 %v3083_v48, %v3697_v21  ;;  %v382_v63 = vadd.f32 %v370_v5, %v342_v58  ;;  %v451_v59 = vmul.f32 %v3607_v32, %v3000_v12  ;;  %v583_v24 = vadd.f32 %v571_v62, %v543_v53  ;;  %v3719_v56 = vld [vmem:[%s2973_s23 + $0xb0] sm:$0xff] }
  0x74   : > { %v944_v57 = vadd.f32 %v932_v14, %v904_v60  ;;  %v784_v16 = vadd.f32 %v772_v42, %v743_v36  ;;  %v652_v4 = vmul.f32 %v3531_v46, %v3029_v22  ;;  %v933_v50 = vmul.f32 %v3096_v54, %v3708_v39  ;;  %v3746_v36 = vld [vmem:[%s2973_s23 + $0xb2] sm:$0xff] }
  0x75   : > { %v692_v31 = vmul.f32 %v5081_v45, %v3038_v27  ;;  %v423_v5 = vadd.f32 %v411_v35, %v382_v63  ;;  %v491_v12 = vmul.f32 %v3621_v41, %v3007_v15  ;;  %v623_v11 = vadd.f32 %v611_v26, %v583_v24  ;;  %v3734_v35 = vld [vmem:[%s2973_s23 + $0xb1] sm:$0xff]  ;;  %v3768_v24 = vld [vmem:[%s5044_s1 + $0x6] ss:$0 sm:$0xff] }
  0x76   : > { %v984_v14 = vadd.f32 %v972_v51, %v944_v57  ;;  %v824_v42 = vadd.f32 %v812_v25, %v784_v16  ;;  %v1013_v46 = vmul.f32 %v3553_v52, %v2963_v0  ;;  %v732_v9 = vmul.f32 %v3558_v6, %v3043_v28  ;;  %v3731_v51 = vld [vmem:[%s2973_s23 + $0x24a] sm:$0xff] }
  0x77   : > { %v463_v62 = vadd.f32 %v451_v59, %v423_v5  ;;  %v532_v45 = vmul.f32 %v3013_v17, %v3719_v56  ;;  %v1049_v58 = vmul.f32 %v3571_v13, %v2968_v1  ;;  %v664_v25 = vadd.f32 %v652_v4, %v623_v11  ;;  %v3800_v11 = vld [vmem:[%s5044_s1 + $0x8] ss:$0 sm:$0xff] }
  0x78   : > { %996 = vst [vmem:[%s3312_s11 + $0x40] sm:$0xff] %v984_v14  ;;  %v864_v15 = vadd.f32 %v852_v8, %v824_v42  ;;  %v1025_v0 = vadd.f32 %v2983_v3, %v1013_v46  ;;  %v1085_v28 = vmul.f32 %v3582_v34, %v2978_v2  ;;  %v973_v52 = vmul.f32 %v3108_v61, %v3731_v51  ;;  %v3805_v46 = vld [vmem:[%s2973_s23 + $0x259] sm:$0xff] }
  0x79   : > { %v773_v17 = vmul.f32 %v3645_v38, %v3048_v29  ;;  %v503_v6 = vadd.f32 %v491_v12, %v463_v62  ;;  %v572_v1 = vmul.f32 %v3018_v18, %v3734_v35  ;;  %v704_v60 = vadd.f32 %v692_v31, %v664_v25  ;;  %v3790_v12 = vld [vmem:[%s5044_s1 + $0x1] ss:$0 sm:$0xff] }
  0x7a   : > { %v905_v13 = vadd.f32 %v893_v49, %v864_v15  ;;  %v1061_v53 = vadd.f32 %v1049_v58, %v1025_v0  ;;  %v1122_v3 = vmul.f32 %v3660_v55, %v2994_v10  ;;  %v813_v2 = vmul.f32 %v3667_v23, %v3053_v30  ;;  %v3757_v49 = vld [vmem:[%s5044_s1 + $0x5] ss:$0 sm:$0xff]  ;;  %v3826_v15 = vld [vmem:[%s5044_s1 + $0x2] ss:$0 sm:$0xff] }
  0x7b   : > { %v544_v34 = vadd.f32 %v532_v45, %v503_v6  ;;  %v612_v29 = vmul.f32 %v3023_v19, %v3746_v36  ;;  %v744_v8 = vadd.f32 %v732_v9, %v704_v60  ;;  %v1158_v10 = vmul.f32 %v3757_v49, %v3677_v44  ;;  %v3815_v62 = vld [vmem:[%s2973_s23 + $0xc1] sm:$0xff]  ;;  %v3820_v45 = vld [vmem:[%s5045_s2] ss:$0 sm:$0xff] }
  0x7c   : > { %v945_v26 = vadd.f32 %v933_v50, %v905_v13  ;;  %v1097_v18 = vadd.f32 %v1085_v28, %v1061_v53  ;;  %v853_v30 = vmul.f32 %v3683_v7, %v3078_v47  ;;  %v653_v19 = vmul.f32 %v3585_v43, %v3029_v22  ;;  %v3773_v50 = vld [vmem:[%s2973_s23 + $0x258] sm:$0xff]  ;;  %v3778_v22 = vld [vmem:[%s2973_s23 + $0xc0] sm:$0xff] }
  0x7d   : > { %v584_v63 = vadd.f32 %v572_v1, %v544_v34  ;;  %v785_v57 = vadd.f32 %v773_v17, %v744_v8  ;;  %v1194_v4 = vmul.f32 %v3768_v24, %v3692_v37  ;;  %v693_v31 = vmul.f32 %v3618_v33, %v3038_v27  ;;  %v3783_v43 = vld [vmem:[%s5044_s1] ss:$0 sm:$0xff]  ;;  %v3850_v13 = vld [vmem:[%s2973_s23 + $0xc2] sm:$0xff] }
  0x7e   : > { %v985_v59 = vadd.f32 %v973_v52, %v945_v26  ;;  %v1134_v16 = vadd.f32 %v1122_v3, %v1097_v18  ;;  %v1014_v5 = vmul.f32 %v3783_v43, %v3600_v20  ;;  %v1050_v14 = vmul.f32 %v3790_v12, %v3607_v32  ;;  %v3810_v32 = vld [vmem:[%s5044_s1 + $0xe] ss:$0 sm:$0xff]  ;;  %v3835_v52 = vld [vmem:[%s5044_s1 + $0x9] ss:$0 sm:$0xff]  ;;  %v3840_v6 = vld [vmem:[%s2973_s23 + $0x25a] sm:$0xff] }
  0x7f   : > { %v624_v47 = vadd.f32 %v612_v29, %v584_v63  ;;  %v825_v27 = vadd.f32 %v813_v2, %v785_v57  ;;  %v894_v33 = vmul.f32 %v3083_v48, %v3773_v50  ;;  %v1231_v20 = vmul.f32 %v3800_v11, %v3778_v22  ;;  %v3855_v53 = vld [vmem:[%s5044_s1 + $0x4] ss:$0 sm:$0xff]  ;;  %v3864_v26 = vld [vmem:[%s5044_s1 + $0xa] ss:$0 sm:$0xff] }
  0x80   : > { %997 = vst [vmem:[%s3312_s11 + $0x48] sm:$0xff] %v985_v59  ;;  %v1170_v42 = vadd.f32 %v1158_v10, %v1134_v16  ;;  %v733_v48 = vmul.f32 %v3810_v32, %v3634_v40  ;;  %v1026_v58 = vadd.f32 %v3820_v45, %v1014_v5  ;;  %v1086_v25 = vmul.f32 %v3826_v15, %v3621_v41  ;;  %v3845_v41 = vld [vmem:[%s5044_s1 + $0x10] ss:$0 sm:$0xff]  ;;  %v3871_v10 = vld [vmem:[%s5044_s1 + $0x11] ss:$0 sm:$0xff] }
  0x81   : > { %v665_v9 = vadd.f32 %v653_v19, %v624_v47  ;;  %v865_v0 = vadd.f32 %v853_v30, %v825_v27  ;;  %v934_v40 = vmul.f32 %v3096_v54, %v3805_v46  ;;  %v1267_v17 = vmul.f32 %v3835_v52, %v3815_v62  ;;  %v3880_v59 = vld [vmem:[%s5044_s1 + $0x12] ss:$0 sm:$0xff]  ;;  %v3894_v5 = vld [vmem:[%s5044_s1 + $0xd] ss:$0 sm:$0xff] }
  0x82   : > { %v1206_v28 = vadd.f32 %v1194_v4, %v1170_v42  ;;  %v774_v54 = vmul.f32 %v3845_v41, %v3697_v21  ;;  %v1062_v60 = vadd.f32 %v1050_v14, %v1026_v58  ;;  %v1123_v3 = vmul.f32 %v3855_v53, %v3719_v56  ;;  %v3887_v4 = vld [vmem:[%s5044_s1 + $0xc] ss:$0 sm:$0xff] }
  0x83   : > { %v705_v1 = vadd.f32 %v693_v31, %v665_v9  ;;  %v906_v2 = vadd.f32 %v894_v33, %v865_v0  ;;  %v974_v34 = vmul.f32 %v3108_v61, %v3840_v6  ;;  %v1303_v8 = vmul.f32 %v3864_v26, %v3850_v13  ;;  %v3904_v9 = vld [vmem:[%s2973_s23 + $0xc8] sm:$0xff] }
  0x84   : > { %v1243_v29 = vadd.f32 %v1231_v20, %v1206_v28  ;;  %v814_v30 = vmul.f32 %v3871_v10, %v3708_v39  ;;  %v1098_v61 = vadd.f32 %v1086_v25, %v1062_v60  ;;  %v1159_v63 = vmul.f32 %v3757_v49, %v3734_v35  ;;  %v3901_v20 = vld [vmem:[%s2973_s23 + $0x260] sm:$0xff] }
  0x85   : > { %v745_v18 = vadd.f32 %v733_v48, %v705_v1  ;;  %v946_v19 = vadd.f32 %v934_v40, %v906_v2  ;;  %v854_v57 = vmul.f32 %v3880_v59, %v3731_v51  ;;  %v1340_v47 = vmul.f32 %v3887_v4, %v3645_v38  ;;  %v3926_v1 = vld [vmem:[%s2973_s23 + $0xc9] sm:$0xff]  ;;  %v3934_v2 = vld [vmem:[%s5044_s1 + $0x15] ss:$0 sm:$0xff] }
  0x86   : > { %v1279_v16 = vadd.f32 %v1267_v17, %v1243_v29  ;;  %v1376_v14 = vmul.f32 %v3894_v5, %v3667_v23  ;;  %v1135_v27 = vadd.f32 %v1123_v3, %v1098_v61  ;;  %v1195_v33 = vmul.f32 %v3768_v24, %v3746_v36  ;;  %v3913_v23 = vld [vmem:[%s5044_s1 + $0x14] ss:$0 sm:$0xff] }
  0x87   : > { %v786_v31 = vadd.f32 %v774_v54, %v745_v18  ;;  %v986_v42 = vadd.f32 %v974_v34, %v946_v19  ;;  %v1015_v48 = vmul.f32 %v3783_v43, %v3660_v55  ;;  %v1051_v58 = vmul.f32 %v3790_v12, %v3677_v44  ;;  %v3921_v55 = vld [vmem:[%s2973_s23 + $0x261] sm:$0xff] }
  0x88   : > { %v1315_v38 = vadd.f32 %v1303_v8, %v1279_v16  ;;  %v895_v0 = vmul.f32 %v3913_v23, %v3901_v20  ;;  %v1171_v40 = vadd.f32 %v1159_v63, %v1135_v27  ;;  %v1232_v28 = vmul.f32 %v3800_v11, %v3904_v9  ;;  %v3941_v8 = vld [vmem:[%s2973_s23 + $0x262] sm:$0xff] }
  0x89   : > { %v826_v25 = vadd.f32 %v814_v30, %v786_v31  ;;  %998 = vst [vmem:[%s3312_s11 + $0x50] sm:$0xff] %v986_v42  ;;  %v1412_v44 = vmul.f32 %v3810_v32, %v3683_v7  ;;  %v1027_v54 = vadd.f32 %v3820_v45, %v1015_v48  ;;  %v1087_v60 = vmul.f32 %v3826_v15, %v3692_v37  ;;  %v3946_v37 = vld [vmem:[%s2973_s23 + $0xca] sm:$0xff] }
  0x8a   : > { %v1352_v17 = vadd.f32 %v1340_v47, %v1315_v38  ;;  %v935_v34 = vmul.f32 %v3934_v2, %v3921_v55  ;;  %v1207_v29 = vadd.f32 %v1195_v33, %v1171_v40  ;;  %v1268_v7 = vmul.f32 %v3835_v52, %v3926_v1 }
  0x8b   : > { %v866_v3 = vadd.f32 %v854_v57, %v826_v25  ;;  %v1449_v30 = vmul.f32 %v3845_v41, %v3773_v50  ;;  %v1063_v61 = vadd.f32 %v1051_v58, %v1027_v54  ;;  %v1124_v63 = vmul.f32 %v3855_v53, %v3778_v22  ;;  %v3953_v57 = vld [vmem:[%s5044_s1 + $0x16] ss:$0 sm:$0xff] }
  0x8c   : > { %v1388_v18 = vadd.f32 %v1376_v14, %v1352_v17  ;;  %v975_v16 = vmul.f32 %v3953_v57, %v3941_v8  ;;  %v1244_v47 = vadd.f32 %v1232_v28, %v1207_v29  ;;  %v1304_v31 = vmul.f32 %v3864_v26, %v3946_v37  ;;  %v3972_v54 = vld [vmem:[%s2973_s23 + $0x270] sm:$0xff] }
  0x8d   : > { %v907_v19 = vadd.f32 %v895_v0, %v866_v3  ;;  %v1485_v27 = vmul.f32 %v3871_v10, %v3805_v46  ;;  %v1099_v33 = vadd.f32 %v1087_v60, %v1063_v61  ;;  %v1160_v42 = vmul.f32 %v3757_v49, %v3815_v62  ;;  %v3975_v3 = vld [vmem:[%s2973_s23 + $0xd8] sm:$0xff] }
  0x8e   : > { %v1424_v14 = vadd.f32 %v1412_v44, %v1388_v18  ;;  %v1521_v48 = vmul.f32 %v3880_v59, %v3840_v6  ;;  %v1280_v58 = vadd.f32 %v1268_v7, %v1244_v47  ;;  %v1341_v25 = vmul.f32 %v3887_v4, %v3697_v21 }
  0x8f   : > { %v947_v38 = vadd.f32 %v935_v34, %v907_v19  ;;  %v1377_v40 = vmul.f32 %v3894_v5, %v3708_v39  ;;  %v1136_v28 = vadd.f32 %v1124_v63, %v1099_v33  ;;  %v1196_v17 = vmul.f32 %v3768_v24, %v3850_v13  ;;  %v3992_v63 = vld [vmem:[%s2973_s23 + $0xd9] sm:$0xff] }
  0x90   : > { %v1461_v0 = vadd.f32 %v1449_v30, %v1424_v14  ;;  %v1316_v60 = vadd.f32 %v1304_v31, %v1280_v58  ;;  %v1016_v34 = vmul.f32 %v3783_v43, %v3719_v56  ;;  %v1052_v21 = vmul.f32 %v3790_v12, %v3734_v35  ;;  %v3987_v30 = vld [vmem:[%s2973_s23 + $0x271] sm:$0xff] }
  0x91   : > { %v987_v44 = vadd.f32 %v975_v16, %v947_v38  ;;  %v1558_v39 = vmul.f32 %v3913_v23, %v3972_v54  ;;  %v1172_v7 = vadd.f32 %v1160_v42, %v1136_v28  ;;  %v1233_v18 = vmul.f32 %v3800_v11, %v3975_v3  ;;  %v4007_v42 = vld [vmem:[%s2973_s23 + $0xda] sm:$0xff] }
  0x92   : > { %v1497_v29 = vadd.f32 %v1485_v27, %v1461_v0  ;;  %v1353_v61 = vadd.f32 %v1341_v25, %v1316_v60  ;;  %v1413_v56 = vmul.f32 %v3810_v32, %v3731_v51  ;;  %v1028_v35 = vadd.f32 %v3820_v45, %v1016_v34  ;;  %v4002_v27 = vld [vmem:[%s2973_s23 + $0x272] sm:$0xff] }
  0x93   : > { %999 = vst [vmem:[%s3312_s11 + $0x58] sm:$0xff] %v987_v44  ;;  %v1088_v19 = vmul.f32 %v3826_v15, %v3746_v36  ;;  %v1594_v47 = vmul.f32 %v3934_v2, %v3987_v30  ;;  %v1208_v31 = vadd.f32 %v1196_v17, %v1172_v7  ;;  %v1269_v14 = vmul.f32 %v3835_v52, %v3992_v63 }
  0x94   : > { %v1533_v16 = vadd.f32 %v1521_v48, %v1497_v29  ;;  %v1389_v33 = vadd.f32 %v1377_v40, %v1353_v61  ;;  %v1450_v51 = vmul.f32 %v3845_v41, %v3901_v20  ;;  %v1064_v38 = vadd.f32 %v1052_v21, %v1028_v35  ;;  %v4028_v35 = vld [vmem:[%s2973_s23 + $0x278] sm:$0xff] }
  0x95   : > { %v1125_v36 = vmul.f32 %v3855_v53, %v3904_v9  ;;  %v1630_v58 = vmul.f32 %v3953_v57, %v4002_v27  ;;  %v1245_v25 = vadd.f32 %v1233_v18, %v1208_v31  ;;  %v1305_v0 = vmul.f32 %v3864_v26, %v4007_v42 }
  0x96   : > { %v1570_v48 = vadd.f32 %v1558_v39, %v1533_v16  ;;  %v1425_v40 = vadd.f32 %v1413_v56, %v1389_v33  ;;  %v1486_v28 = vmul.f32 %v3871_v10, %v3921_v55  ;;  %v1100_v17 = vadd.f32 %v1088_v19, %v1064_v38  ;;  %v4031_v16 = vld [vmem:[%s2973_s23 + $0xe0] sm:$0xff] }
  0x97   : > { %v1161_v44 = vmul.f32 %v3757_v49, %v3926_v1  ;;  %v1522_v34 = vmul.f32 %v3880_v59, %v3941_v8  ;;  %v1281_v21 = vadd.f32 %v1269_v14, %v1245_v25  ;;  %v1342_v29 = vmul.f32 %v3887_v4, %v3773_v50 }
  0x98   : > { %v1606_v60 = vadd.f32 %v1594_v47, %v1570_v48  ;;  %v1462_v39 = vadd.f32 %v1450_v51, %v1425_v40  ;;  %v1378_v7 = vmul.f32 %v3894_v5, %v3805_v46  ;;  %v1137_v18 = vadd.f32 %v1125_v36, %v1100_v17  ;;  %v4043_v51 = vld [vmem:[%s2973_s23 + $0x279] sm:$0xff]  ;;  %v4048_v36 = vld [vmem:[%s2973_s23 + $0xe1] sm:$0xff] }
  0x99   : > { %v1197_v61 = vmul.f32 %v3768_v24, %v3946_v37  ;;  %v1317_v19 = vadd.f32 %v1305_v0, %v1281_v21  ;;  %v1017_v47 = vmul.f32 %v3783_v43, %v3778_v22  ;;  %v1053_v50 = vmul.f32 %v3790_v12, %v3815_v62 }
  0x9a   : > { %v1642_v56 = vadd.f32 %v1630_v58, %v1606_v60  ;;  %v1498_v31 = vadd.f32 %v1486_v28, %v1462_v39  ;;  %v1559_v46 = vmul.f32 %v3913_v23, %v4028_v35  ;;  %v1173_v14 = vadd.f32 %v1161_v44, %v1137_v18  ;;  %v4058_v28 = vld [vmem:[%s2973_s23 + $0x27a] sm:$0xff]  ;;  %v4063_v44 = vld [vmem:[%s2973_s23 + $0xe2] sm:$0xff] }
  0x9b   : > { %v1234_v33 = vmul.f32 %v3800_v11, %v4031_v16  ;;  %v1354_v38 = vadd.f32 %v1342_v29, %v1317_v19  ;;  %v1414_v22 = vmul.f32 %v3810_v32, %v3840_v6  ;;  %v1029_v62 = vadd.f32 %v3820_v45, %v1017_v47 }
  0x9c   : > { %2665 = vst [vmem:[%s3312_s11 + $0x60] sm:$0xff] %v1642_v56  ;;  %v1089_v48 = vmul.f32 %v3826_v15, %v3850_v13  ;;  %v1534_v58 = vadd.f32 %v1522_v34, %v1498_v31  ;;  %v1595_v25 = vmul.f32 %v3934_v2, %v4043_v51  ;;  %v1209_v0 = vadd.f32 %v1197_v61, %v1173_v14 }
  0x9d   : > { %v1270_v40 = vmul.f32 %v3835_v52, %v4048_v36  ;;  %v1390_v17 = vadd.f32 %v1378_v7, %v1354_v38  ;;  %v1451_v6 = vmul.f32 %v3845_v41, %v3972_v54  ;;  %v1065_v60 = vadd.f32 %v1053_v50, %v1029_v62  ;;  %v4084_v62 = vld [vmem:[%s2973_s23 + $0x288] sm:$0xff] }
  0x9e   : > { %v1126_v13 = vmul.f32 %v3855_v53, %v3975_v3  ;;  %v1571_v34 = vadd.f32 %v1559_v46, %v1534_v58  ;;  %v1631_v21 = vmul.f32 %v3953_v57, %v4058_v28  ;;  %v1246_v29 = vadd.f32 %v1234_v33, %v1209_v0  ;;  %v4087_v58 = vld [vmem:[%s2973_s23 + $0xf0] sm:$0xff] }
  0x9f   : > { %v1306_v39 = vmul.f32 %v3864_v26, %v4063_v44  ;;  %v1426_v7 = vadd.f32 %v1414_v22, %v1390_v17  ;;  %v1487_v18 = vmul.f32 %v3871_v10, %v3987_v30  ;;  %v1101_v61 = vadd.f32 %v1089_v48, %v1065_v60 }
  0xa0   : > { %v1162_v56 = vmul.f32 %v3757_v49, %v3992_v63  ;;  %v1607_v19 = vadd.f32 %v1595_v25, %v1571_v34  ;;  %v1523_v47 = vmul.f32 %v3880_v59, %v4002_v27  ;;  %v1282_v50 = vadd.f32 %v1270_v40, %v1246_v29 }
  0xa1   : > { %v1343_v31 = vmul.f32 %v3887_v4, %v3901_v20  ;;  %v1463_v46 = vadd.f32 %v1451_v6, %v1426_v7  ;;  %v1379_v14 = vmul.f32 %v3894_v5, %v3921_v55  ;;  %v1138_v33 = vadd.f32 %v1126_v13, %v1101_v61  ;;  %v4099_v6 = vld [vmem:[%s2973_s23 + $0x289] sm:$0xff]  ;;  %v4104_v13 = vld [vmem:[%s2973_s23 + $0xf1] sm:$0xff] }
  0xa2   : > { %v1198_v38 = vmul.f32 %v3768_v24, %v4007_v42  ;;  %v1643_v22 = vadd.f32 %v1631_v21, %v1607_v19  ;;  %v1318_v48 = vadd.f32 %v1306_v39, %v1282_v50  ;;  %v1018_v25 = vmul.f32 %v3783_v43, %v3904_v9 }
  0xa3   : > { %v1054_v20 = vmul.f32 %v3790_v12, %v3926_v1  ;;  %v1499_v0 = vadd.f32 %v1487_v18, %v1463_v46  ;;  %v1560_v55 = vmul.f32 %v3913_v23, %v4084_v62  ;;  %v1174_v40 = vadd.f32 %v1162_v56, %v1138_v33  ;;  %v4114_v18 = vld [vmem:[%s2973_s23 + $0x28a] sm:$0xff]  ;;  %v4119_v56 = vld [vmem:[%s2973_s23 + $0xf2] sm:$0xff] }
  0xa4   : > { %v1235_v17 = vmul.f32 %v3800_v11, %v4087_v58  ;;  %2666 = vst [vmem:[%s3312_s11 + $0x68] sm:$0xff] %v1643_v22  ;;  %v1355_v60 = vadd.f32 %v1343_v31, %v1318_v48  ;;  %v1415_v9 = vmul.f32 %v3810_v32, %v3941_v8  ;;  %v1030_v1 = vadd.f32 %v3820_v45, %v1018_v25 }
  0xa5   : > { %v1090_v34 = vmul.f32 %v3826_v15, %v3946_v37  ;;  %v1535_v21 = vadd.f32 %v1523_v47, %v1499_v0  ;;  %v1596_v29 = vmul.f32 %v3934_v2, %v4099_v6  ;;  %v1210_v39 = vadd.f32 %v1198_v38, %v1174_v40 }
  0xa6   : > { %v1271_v7 = vmul.f32 %v3835_v52, %v4104_v13  ;;  %v1391_v61 = vadd.f32 %v1379_v14, %v1355_v60  ;;  %v1452_v8 = vmul.f32 %v3845_v41, %v4028_v35  ;;  %v1066_v19 = vadd.f32 %v1054_v20, %v1030_v1  ;;  %v4140_v1 = vld [vmem:[%s2973_s23 + $0x290] sm:$0xff] }
  0xa7   : > { %v1127_v37 = vmul.f32 %v3855_v53, %v4031_v16  ;;  %v1572_v47 = vadd.f32 %v1560_v55, %v1535_v21  ;;  %v1632_v50 = vmul.f32 %v3953_v57, %v4114_v18  ;;  %v1247_v31 = vadd.f32 %v1235_v17, %v1210_v39  ;;  %v4143_v21 = vld [vmem:[%s2973_s23 + $0xf8] sm:$0xff] }
  0xa8   : > { %v1307_v46 = vmul.f32 %v3864_v26, %v4119_v56  ;;  %v1427_v14 = vadd.f32 %v1415_v9, %v1391_v61  ;;  %v1488_v33 = vmul.f32 %v3871_v10, %v4043_v51  ;;  %v1102_v38 = vadd.f32 %v1090_v34, %v1066_v19 }
  0xa9   : > { %v1163_v22 = vmul.f32 %v3757_v49, %v4048_v36  ;;  %v1608_v48 = vadd.f32 %v1596_v29, %v1572_v47  ;;  %v1524_v25 = vmul.f32 %v3880_v59, %v4058_v28  ;;  %v1283_v20 = vadd.f32 %v1271_v7, %v1247_v31 }
  0xaa   : > { %v1344_v0 = vmul.f32 %v3887_v4, %v3972_v54  ;;  %v1464_v55 = vadd.f32 %v1452_v8, %v1427_v14  ;;  %v1380_v40 = vmul.f32 %v3894_v5, %v3987_v30  ;;  %v1139_v17 = vadd.f32 %v1127_v37, %v1102_v38  ;;  %v4155_v8 = vld [vmem:[%s2973_s23 + $0x291] sm:$0xff]  ;;  %v4160_v37 = vld [vmem:[%s2973_s23 + $0xf9] sm:$0xff] }
  0xab   : > { %v1199_v60 = vmul.f32 %v3768_v24, %v4063_v44  ;;  %v1644_v9 = vadd.f32 %v1632_v50, %v1608_v48  ;;  %v1319_v34 = vadd.f32 %v1307_v46, %v1283_v20  ;;  %v1019_v29 = vmul.f32 %v3783_v43, %v3975_v3 }
  0xac   : > { %v1055_v54 = vmul.f32 %v3790_v12, %v3992_v63  ;;  %v1500_v39 = vadd.f32 %v1488_v33, %v1464_v55  ;;  %v1561_v30 = vmul.f32 %v3913_v23, %v4140_v1  ;;  %v1175_v7 = vadd.f32 %v1163_v22, %v1139_v17  ;;  %v4170_v33 = vld [vmem:[%s2973_s23 + $0x292] sm:$0xff]  ;;  %v4175_v22 = vld [vmem:[%s2973_s23 + $0xfa] sm:$0xff] }
  0xad   : > { %v1236_v61 = vmul.f32 %v3800_v11, %v4143_v21  ;;  %2667 = vst [vmem:[%s3312_s11 + $0x70] sm:$0xff] %v1644_v9  ;;  %v1356_v19 = vadd.f32 %v1344_v0, %v1319_v34  ;;  %v1416_v3 = vmul.f32 %v3810_v32, %v4002_v27  ;;  %v1031_v63 = vadd.f32 %v3820_v45, %v1019_v29 }
  0xae   : > { %v1091_v47 = vmul.f32 %v3826_v15, %v4007_v42  ;;  %v1536_v50 = vadd.f32 %v1524_v25, %v1500_v39  ;;  %v1597_v31 = vmul.f32 %v3934_v2, %v4155_v8  ;;  %v1211_v46 = vadd.f32 %v1199_v60, %v1175_v7 }
  0xaf   : > { %v1272_v14 = vmul.f32 %v3835_v52, %v4160_v37  ;;  %v1392_v38 = vadd.f32 %v1380_v40, %v1356_v19  ;;  %v1453_v27 = vmul.f32 %v3845_v41, %v4084_v62  ;;  %v1067_v48 = vadd.f32 %v1055_v54, %v1031_v63  ;;  %v4196_v63 = vld [vmem:[%s2973_s23 + $0x2a0] sm:$0xff] }
  0xb0   : > { %v1128_v42 = vmul.f32 %v3855_v53, %v4087_v58  ;;  %v1573_v25 = vadd.f32 %v1561_v30, %v1536_v50  ;;  %v1633_v20 = vmul.f32 %v3953_v57, %v4170_v33  ;;  %v1248_v0 = vadd.f32 %v1236_v61, %v1211_v46  ;;  %v4199_v50 = vld [vmem:[%s2973_s23 + $0x108] sm:$0xff] }
  0xb1   : > { %v1308_v55 = vmul.f32 %v3864_v26, %v4175_v22  ;;  %v1428_v40 = vadd.f32 %v1416_v3, %v1392_v38  ;;  %v1489_v17 = vmul.f32 %v3871_v10, %v4099_v6  ;;  %v1103_v60 = vadd.f32 %v1091_v47, %v1067_v48 }
  0xb2   : > { %v1164_v9 = vmul.f32 %v3757_v49, %v4104_v13  ;;  %v1609_v34 = vadd.f32 %v1597_v31, %v1573_v25  ;;  %v1525_v29 = vmul.f32 %v3880_v59, %v4114_v18  ;;  %v1284_v54 = vadd.f32 %v1272_v14, %v1248_v0 }
  0xb3   : > { %v1345_v39 = vmul.f32 %v3887_v4, %v4028_v35  ;;  %v1465_v30 = vadd.f32 %v1453_v27, %v1428_v40  ;;  %v1381_v7 = vmul.f32 %v3894_v5, %v4043_v51  ;;  %v1140_v61 = vadd.f32 %v1128_v42, %v1103_v60  ;;  %v4211_v27 = vld [vmem:[%s2973_s23 + $0x2a1] sm:$0xff]  ;;  %v4216_v42 = vld [vmem:[%s2973_s23 + $0x109] sm:$0xff] }
  0xb4   : > { %v1200_v19 = vmul.f32 %v3768_v24, %v4119_v56  ;;  %v1645_v3 = vadd.f32 %v1633_v20, %v1609_v34  ;;  %v1320_v47 = vadd.f32 %v1308_v55, %v1284_v54  ;;  %v1020_v31 = vmul.f32 %v3783_v43, %v4031_v16 }
  0xb5   : > { %v1056_v35 = vmul.f32 %v3790_v12, %v4048_v36  ;;  %v1501_v46 = vadd.f32 %v1489_v17, %v1465_v30  ;;  %v1562_v51 = vmul.f32 %v3913_v23, %v4196_v63  ;;  %v1176_v14 = vadd.f32 %v1164_v9, %v1140_v61  ;;  %v4226_v17 = vld [vmem:[%s2973_s23 + $0x2a2] sm:$0xff]  ;;  %v4231_v9 = vld [vmem:[%s2973_s23 + $0x10a] sm:$0xff] }
  0xb6   : > { %v1237_v38 = vmul.f32 %v3800_v11, %v4199_v50  ;;  %2668 = vst [vmem:[%s3312_s11 + $0x78] sm:$0xff] %v1645_v3  ;;  %v1357_v48 = vadd.f32 %v1345_v39, %v1320_v47  ;;  %v1417_v16 = vmul.f32 %v3810_v32, %v4058_v28  ;;  %v1032_v36 = vadd.f32 %v3820_v45, %v1020_v31 }
  0xb7   : > { %v1092_v25 = vmul.f32 %v3826_v15, %v4063_v44  ;;  %v1537_v20 = vadd.f32 %v1525_v29, %v1501_v46  ;;  %v1598_v0 = vmul.f32 %v3934_v2, %v4211_v27  ;;  %v1212_v55 = vadd.f32 %v1200_v19, %v1176_v14 }
  0xb8   : > { %v1273_v40 = vmul.f32 %v3835_v52, %v4216_v42  ;;  %v1393_v60 = vadd.f32 %v1381_v7, %v1357_v48  ;;  %v1454_v28 = vmul.f32 %v3845_v41, %v4140_v1  ;;  %v1068_v34 = vadd.f32 %v1056_v35, %v1032_v36  ;;  %v4252_v36 = vld [vmem:[%s2973_s23 + $0x2a8] sm:$0xff] }
  0xb9   : > { %v1129_v44 = vmul.f32 %v3855_v53, %v4143_v21  ;;  %v1574_v29 = vadd.f32 %v1562_v51, %v1537_v20  ;;  %v1634_v54 = vmul.f32 %v3953_v57, %v4226_v17  ;;  %v1249_v39 = vadd.f32 %v1237_v38, %v1212_v55  ;;  %v4255_v20 = vld [vmem:[%s2973_s23 + $0x110] sm:$0xff] }
  0xba   : > { %v1309_v30 = vmul.f32 %v3864_v26, %v4231_v9  ;;  %v1429_v7 = vadd.f32 %v1417_v16, %v1393_v60  ;;  %v1490_v61 = vmul.f32 %v3871_v10, %v4155_v8  ;;  %v1104_v19 = vadd.f32 %v1092_v25, %v1068_v34 }
  0xbb   : > { %v1165_v3 = vmul.f32 %v3757_v49, %v4160_v37  ;;  %v1610_v47 = vadd.f32 %v1598_v0, %v1574_v29  ;;  %v1526_v31 = vmul.f32 %v3880_v59, %v4170_v33  ;;  %v1285_v35 = vadd.f32 %v1273_v40, %v1249_v39 }
  0xbc   : > { %v1346_v46 = vmul.f32 %v3887_v4, %v4084_v62  ;;  %v1466_v51 = vadd.f32 %v1454_v28, %v1429_v7  ;;  %v1382_v14 = vmul.f32 %v3894_v5, %v4099_v6  ;;  %v1141_v38 = vadd.f32 %v1129_v44, %v1104_v19  ;;  %v4267_v28 = vld [vmem:[%s2973_s23 + $0x2a9] sm:$0xff]  ;;  %v4272_v44 = vld [vmem:[%s2973_s23 + $0x111] sm:$0xff] }
  0xbd   : > { %v1201_v48 = vmul.f32 %v3768_v24, %v4175_v22  ;;  %v1646_v16 = vadd.f32 %v1634_v54, %v1610_v47  ;;  %v1321_v25 = vadd.f32 %v1309_v30, %v1285_v35  ;;  %v1021_v0 = vmul.f32 %v3783_v43, %v4087_v58 }
  0xbe   : > { %v1057_v62 = vmul.f32 %v3790_v12, %v4104_v13  ;;  %v1502_v55 = vadd.f32 %v1490_v61, %v1466_v51  ;;  %v1563_v6 = vmul.f32 %v3913_v23, %v4252_v36  ;;  %v1177_v40 = vadd.f32 %v1165_v3, %v1141_v38  ;;  %v4282_v61 = vld [vmem:[%s2973_s23 + $0x2aa] sm:$0xff]  ;;  %v4287_v3 = vld [vmem:[%s2973_s23 + $0x112] sm:$0xff] }
  0xbf   : > { %v1238_v60 = vmul.f32 %v3800_v11, %v4255_v20  ;;  %2669 = vst [vmem:[%s3312_s11 + $0x80] sm:$0xff] %v1646_v16  ;;  %v1358_v34 = vadd.f32 %v1346_v46, %v1321_v25  ;;  %v1418_v58 = vmul.f32 %v3810_v32, %v4114_v18  ;;  %v1033_v13 = vadd.f32 %v3820_v45, %v1021_v0 }
  0xc0   : > { %v1093_v29 = vmul.f32 %v3826_v15, %v4119_v56  ;;  %v1538_v54 = vadd.f32 %v1526_v31, %v1502_v55  ;;  %v1599_v39 = vmul.f32 %v3934_v2, %v4267_v28  ;;  %v1213_v30 = vadd.f32 %v1201_v48, %v1177_v40 }
  0xc1   : > { %v1274_v7 = vmul.f32 %v3835_v52, %v4272_v44  ;;  %v1394_v19 = vadd.f32 %v1382_v14, %v1358_v34  ;;  %v1455_v18 = vmul.f32 %v3845_v41, %v4196_v63  ;;  %v1069_v47 = vadd.f32 %v1057_v62, %v1033_v13  ;;  %v4308_v13 = vld [vmem:[%s2973_s23 + $0x2b8] sm:$0xff] }
  0xc2   : > { %v1130_v56 = vmul.f32 %v3855_v53, %v4199_v50  ;;  %v1575_v31 = vadd.f32 %v1563_v6, %v1538_v54  ;;  %v1635_v35 = vmul.f32 %v3953_v57, %v4282_v61  ;;  %v1250_v46 = vadd.f32 %v1238_v60, %v1213_v30  ;;  %v4311_v54 = vld [vmem:[%s2973_s23 + $0x120] sm:$0xff] }
  0xc3   : > { %v1310_v51 = vmul.f32 %v3864_v26, %v4287_v3  ;;  %v1430_v14 = vadd.f32 %v1418_v58, %v1394_v19  ;;  %v1491_v38 = vmul.f32 %v3871_v10, %v4211_v27  ;;  %v1105_v48 = vadd.f32 %v1093_v29, %v1069_v47 }
  0xc4   : > { %v1166_v16 = vmul.f32 %v3757_v49, %v4216_v42  ;;  %v1611_v25 = vadd.f32 %v1599_v39, %v1575_v31  ;;  %v1527_v0 = vmul.f32 %v3880_v59, %v4226_v17  ;;  %v1286_v62 = vadd.f32 %v1274_v7, %v1250_v46 }
  0xc5   : > { %v1347_v55 = vmul.f32 %v3887_v4, %v4140_v1  ;;  %v1467_v6 = vadd.f32 %v1455_v18, %v1430_v14  ;;  %v1383_v40 = vmul.f32 %v3894_v5, %v4155_v8  ;;  %v1142_v60 = vadd.f32 %v1130_v56, %v1105_v48  ;;  %v4323_v18 = vld [vmem:[%s2973_s23 + $0x2b9] sm:$0xff]  ;;  %v4328_v56 = vld [vmem:[%s2973_s23 + $0x121] sm:$0xff] }
  0xc6   : > { %v1202_v34 = vmul.f32 %v3768_v24, %v4231_v9  ;;  %v1647_v58 = vadd.f32 %v1635_v35, %v1611_v25  ;;  %v1322_v29 = vadd.f32 %v1310_v51, %v1286_v62  ;;  %v1022_v39 = vmul.f32 %v3783_v43, %v4143_v21 }
  0xc7   : > { %v1058_v1 = vmul.f32 %v3790_v12, %v4160_v37  ;;  %v1503_v30 = vadd.f32 %v1491_v38, %v1467_v6  ;;  %v1564_v8 = vmul.f32 %v3913_v23, %v4308_v13  ;;  %v1178_v7 = vadd.f32 %v1166_v16, %v1142_v60  ;;  %v4338_v38 = vld [vmem:[%s2973_s23 + $0x2ba] sm:$0xff]  ;;  %v4343_v16 = vld [vmem:[%s2973_s23 + $0x122] sm:$0xff] }
  0xc8   : > { %v1239_v19 = vmul.f32 %v3800_v11, %v4311_v54  ;;  %2670 = vst [vmem:[%s3312_s11 + $0x88] sm:$0xff] %v1647_v58  ;;  %v1359_v47 = vadd.f32 %v1347_v55, %v1322_v29  ;;  %v1419_v21 = vmul.f32 %v3810_v32, %v4170_v33  ;;  %v1034_v37 = vadd.f32 %v3820_v45, %v1022_v39 }
  0xc9   : > { %v1094_v31 = vmul.f32 %v3826_v15, %v4175_v22  ;;  %v1539_v35 = vadd.f32 %v1527_v0, %v1503_v30  ;;  %v1600_v46 = vmul.f32 %v3934_v2, %v4323_v18  ;;  %v1214_v51 = vadd.f32 %v1202_v34, %v1178_v7 }
  0xca   : > { %v1275_v14 = vmul.f32 %v3835_v52, %v4328_v56  ;;  %v1395_v48 = vadd.f32 %v1383_v40, %v1359_v47  ;;  %v1456_v33 = vmul.f32 %v3845_v41, %v4252_v36  ;;  %v1070_v25 = vadd.f32 %v1058_v1, %v1034_v37  ;;  %v4364_v37 = vld [vmem:[%s2973_s23 + $0x2c0] sm:$0xff] }
  0xcb   : > { %v1131_v22 = vmul.f32 %v3855_v53, %v4255_v20  ;;  %v1576_v0 = vadd.f32 %v1564_v8, %v1539_v35  ;;  %v1636_v62 = vmul.f32 %v3953_v57, %v4338_v38  ;;  %v1251_v55 = vadd.f32 %v1239_v19, %v1214_v51  ;;  %v4367_v35 = vld [vmem:[%s2973_s23 + $0x128] sm:$0xff] }
  0xcc   : > { %v1311_v6 = vmul.f32 %v3864_v26, %v4343_v16  ;;  %v1431_v40 = vadd.f32 %v1419_v21, %v1395_v48  ;;  %v1492_v60 = vmul.f32 %v3871_v10, %v4267_v28  ;;  %v1106_v34 = vadd.f32 %v1094_v31, %v1070_v25 }
  0xcd   : > { %v1167_v58 = vmul.f32 %v3757_v49, %v4272_v44  ;;  %v1612_v29 = vadd.f32 %v1600_v46, %v1576_v0  ;;  %v1528_v39 = vmul.f32 %v3880_v59, %v4282_v61  ;;  %v1287_v1 = vadd.f32 %v1275_v14, %v1251_v55 }
  0xce   : > { %v1348_v30 = vmul.f32 %v3887_v4, %v4196_v63  ;;  %v1468_v8 = vadd.f32 %v1456_v33, %v1431_v40  ;;  %v1384_v7 = vmul.f32 %v3894_v5, %v4211_v27  ;;  %v1143_v19 = vadd.f32 %v1131_v22, %v1106_v34  ;;  %v4379_v33 = vld [vmem:[%s2973_s23 + $0x2c1] sm:$0xff]  ;;  %v4384_v22 = vld [vmem:[%s2973_s23 + $0x129] sm:$0xff] }
  0xcf   : > { %v1203_v47 = vmul.f32 %v3768_v24, %v4287_v3  ;;  %v1648_v21 = vadd.f32 %v1636_v62, %v1612_v29  ;;  %v1323_v31 = vadd.f32 %v1311_v6, %v1287_v1  ;;  %v1023_v46 = vmul.f32 %v3783_v43, %v4199_v50 }
  0xd0   : > { %v1059_v63 = vmul.f32 %v3790_v12, %v4216_v42  ;;  %v1504_v51 = vadd.f32 %v1492_v60, %v1468_v8  ;;  %v1565_v27 = vmul.f32 %v3913_v23, %v4364_v37  ;;  %v1179_v14 = vadd.f32 %v1167_v58, %v1143_v19  ;;  %v4394_v60 = vld [vmem:[%s2973_s23 + $0x2c2] sm:$0xff]  ;;  %v4399_v58 = vld [vmem:[%s2973_s23 + $0x12a] sm:$0xff] }
  0xd1   : > { %v1240_v48 = vmul.f32 %v3800_v11, %v4367_v35  ;;  %2671 = vst [vmem:[%s3312_s11 + $0x90] sm:$0xff] %v1648_v21  ;;  %v1360_v25 = vadd.f32 %v1348_v30, %v1323_v31  ;;  %v1420_v50 = vmul.f32 %v3810_v32, %v4226_v17  ;;  %v1035_v42 = vadd.f32 %v3820_v45, %v1023_v46 }
  0xd2   : > { %v1095_v0 = vmul.f32 %v3826_v15, %v4231_v9  ;;  %v1540_v62 = vadd.f32 %v1528_v39, %v1504_v51  ;;  %v1601_v55 = vmul.f32 %v3934_v2, %v4379_v33  ;;  %v1215_v6 = vadd.f32 %v1203_v47, %v1179_v14 }
  0xd3   : > { %v1276_v40 = vmul.f32 %v3835_v52, %v4384_v22  ;;  %v1396_v34 = vadd.f32 %v1384_v7, %v1360_v25  ;;  %v1457_v17 = vmul.f32 %v3845_v41, %v4308_v13  ;;  %v1071_v29 = vadd.f32 %v1059_v63, %v1035_v42  ;;  %v4420_v42 = vld [vmem:[%s2973_s23 + $0x2d0] sm:$0xff] }
  0xd4   : > { %v1132_v9 = vmul.f32 %v3855_v53, %v4311_v54  ;;  %v1577_v39 = vadd.f32 %v1565_v27, %v1540_v62  ;;  %v1637_v1 = vmul.f32 %v3953_v57, %v4394_v60  ;;  %v1252_v30 = vadd.f32 %v1240_v48, %v1215_v6  ;;  %v4423_v62 = vld [vmem:[%s2973_s23 + $0x138] sm:$0xff] }
  0xd5   : > { %v1312_v8 = vmul.f32 %v3864_v26, %v4399_v58  ;;  %v1432_v7 = vadd.f32 %v1420_v50, %v1396_v34  ;;  %v1493_v19 = vmul.f32 %v3871_v10, %v4323_v18  ;;  %v1107_v47 = vadd.f32 %v1095_v0, %v1071_v29 }
  0xd6   : > { %v1168_v21 = vmul.f32 %v3757_v49, %v4328_v56  ;;  %v1613_v31 = vadd.f32 %v1601_v55, %v1577_v39  ;;  %v1529_v46 = vmul.f32 %v3880_v59, %v4338_v38  ;;  %v1288_v63 = vadd.f32 %v1276_v40, %v1252_v30 }
  0xd7   : > { %v1349_v51 = vmul.f32 %v3887_v4, %v4252_v36  ;;  %v1469_v27 = vadd.f32 %v1457_v17, %v1432_v7  ;;  %v1385_v14 = vmul.f32 %v3894_v5, %v4267_v28  ;;  %v1144_v48 = vadd.f32 %v1132_v9, %v1107_v47  ;;  %v4435_v17 = vld [vmem:[%s2973_s23 + $0x2d1] sm:$0xff]  ;;  %v4440_v9 = vld [vmem:[%s2973_s23 + $0x139] sm:$0xff] }
  0xd8   : > { %v1204_v25 = vmul.f32 %v3768_v24, %v4343_v16  ;;  %v1649_v50 = vadd.f32 %v1637_v1, %v1613_v31  ;;  %v1324_v0 = vadd.f32 %v1312_v8, %v1288_v63  ;;  %v1024_v55 = vmul.f32 %v3783_v43, %v4255_v20 }
  0xd9   : > { %v1060_v36 = vmul.f32 %v3790_v12, %v4272_v44  ;;  %v1505_v6 = vadd.f32 %v1493_v19, %v1469_v27  ;;  %v1566_v28 = vmul.f32 %v3913_v23, %v4420_v42  ;;  %v1180_v40 = vadd.f32 %v1168_v21, %v1144_v48  ;;  %v4450_v19 = vld [vmem:[%s2973_s23 + $0x2d2] sm:$0xff]  ;;  %v4455_v21 = vld [vmem:[%s2973_s23 + $0x13a] sm:$0xff] }
  0xda   : > { %v1241_v34 = vmul.f32 %v3800_v11, %v4423_v62  ;;  %2672 = vst [vmem:[%s3312_s11 + $0x98] sm:$0xff] %v1649_v50  ;;  %v1361_v29 = vadd.f32 %v1349_v51, %v1324_v0  ;;  %v1421_v20 = vmul.f32 %v3810_v32, %v4282_v61  ;;  %v1036_v44 = vadd.f32 %v3820_v45, %v1024_v55 }
  0xdb   : > { %v1096_v39 = vmul.f32 %v3826_v15, %v4287_v3  ;;  %v1541_v1 = vadd.f32 %v1529_v46, %v1505_v6  ;;  %v1602_v30 = vmul.f32 %v3934_v2, %v4435_v17  ;;  %v1216_v8 = vadd.f32 %v1204_v25, %v1180_v40 }
  0xdc   : > { %v1277_v7 = vmul.f32 %v3835_v52, %v4440_v9  ;;  %v1397_v47 = vadd.f32 %v1385_v14, %v1361_v29  ;;  %v1458_v61 = vmul.f32 %v3845_v41, %v4364_v37  ;;  %v1072_v31 = vadd.f32 %v1060_v36, %v1036_v44 }
  0xdd   : > { %v1133_v3 = vmul.f32 %v3855_v53, %v4367_v35  ;;  %v1578_v46 = vadd.f32 %v1566_v28, %v1541_v1  ;;  %v1638_v63 = vmul.f32 %v3953_v57, %v4450_v19  ;;  %v1253_v51 = vadd.f32 %v1241_v34, %v1216_v8 }
  0xde   : > { %v1313_v27 = vmul.f32 %v3864_v26, %v4455_v21  ;;  %v1433_v14 = vadd.f32 %v1421_v20, %v1397_v47  ;;  %v1494_v48 = vmul.f32 %v3871_v10, %v4379_v33  ;;  %v1108_v25 = vadd.f32 %v1096_v39, %v1072_v31  ;;  %v4476_v20 = vld [vmem:[%s2973_s23 + $0x2d8] sm:$0xff]  ;;  %v4479_v39 = vld [vmem:[%s2973_s23 + $0x140] sm:$0xff] }
  0xdf   : > { %v1169_v50 = vmul.f32 %v3757_v49, %v4384_v22  ;;  %v1614_v0 = vadd.f32 %v1602_v30, %v1578_v46  ;;  %v1530_v55 = vmul.f32 %v3880_v59, %v4394_v60  ;;  %v1289_v36 = vadd.f32 %v1277_v7, %v1253_v51  ;;  %v4491_v7 = vld [vmem:[%s2973_s23 + $0x2d9] sm:$0xff] }
  0xe0   : > { %v1350_v6 = vmul.f32 %v3887_v4, %v4308_v13  ;;  %v1470_v28 = vadd.f32 %v1458_v61, %v1433_v14  ;;  %v1386_v40 = vmul.f32 %v3894_v5, %v4323_v18  ;;  %v1145_v34 = vadd.f32 %v1133_v3, %v1108_v25  ;;  %v4506_v46 = vld [vmem:[%s2973_s23 + $0x2da] sm:$0xff]  ;;  %v4524_v25 = vld [vmem:[%s5044_s1 + $0x5] ss:$0 sm:$0xff] }
  0xe1   : > { %v1205_v29 = vmul.f32 %v3768_v24, %v4399_v58  ;;  %v1650_v49 = vadd.f32 %v1638_v63, %v1614_v0  ;;  %v1325_v44 = vadd.f32 %v1313_v27, %v1289_v36  ;;  %v1676_v1 = vmul.f32 %v3783_v43, %v4311_v54  ;;  %v4496_v54 = vld [vmem:[%s2973_s23 + $0x141] sm:$0xff] }
  0xe2   : > { %v1700_v13 = vmul.f32 %v3790_v12, %v4328_v56  ;;  %v1506_v30 = vadd.f32 %v1494_v48, %v1470_v28  ;;  %v1567_v18 = vmul.f32 %v3913_v23, %v4476_v20  ;;  %v1181_v8 = vadd.f32 %v1169_v50, %v1145_v34  ;;  %v4537_v28 = vld [vmem:[%s5044_s1 + $0x6] ss:$0 sm:$0xff]  ;;  %v4542_v34 = vld [vmem:[%s2973_s23 + $0x2e8] sm:$0xff] }
  0xe3   : > { %v1242_v24 = vmul.f32 %v3800_v11, %v4479_v39  ;;  %2673 = vst [vmem:[%s3312_s11 + $0xa0] sm:$0xff] %v1650_v49  ;;  %v1362_v47 = vadd.f32 %v1350_v6, %v1325_v44  ;;  %v1422_v43 = vmul.f32 %v3810_v32, %v4338_v38  ;;  %v1684_v12 = vadd.f32 %v3820_v45, %v1676_v1  ;;  %v4511_v38 = vld [vmem:[%s2973_s23 + $0x142] sm:$0xff] }
  0xe4   : > { %v1724_v56 = vmul.f32 %v3826_v15, %v4343_v16  ;;  %v1542_v61 = vadd.f32 %v1530_v55, %v1506_v30  ;;  %v1603_v31 = vmul.f32 %v3934_v2, %v4491_v7  ;;  %v1217_v3 = vadd.f32 %v1205_v29, %v1181_v8  ;;  %v4566_v30 = vld [vmem:[%s5044_s1 + $0x8] ss:$0 sm:$0xff] }
  0xe5   : > { %v1278_v11 = vmul.f32 %v3835_v52, %v4496_v54  ;;  %v1398_v63 = vadd.f32 %v1386_v40, %v1362_v47  ;;  %v1459_v32 = vmul.f32 %v3845_v41, %v4420_v42  ;;  %v1708_v45 = vadd.f32 %v1700_v13, %v1684_v12  ;;  %v4587_v47 = vld [vmem:[%s5045_s2] ss:$0 sm:$0xff]  ;;  %v4593_v12 = vld [vmem:[%s5044_s1 + $0x2] ss:$0 sm:$0xff] }
  0xe6   : > { %v1749_v15 = vmul.f32 %v3855_v53, %v4423_v62  ;;  %v1579_v16 = vadd.f32 %v1567_v18, %v1542_v61  ;;  %v1639_v51 = vmul.f32 %v3953_v57, %v4506_v46  ;;  %v1254_v27 = vadd.f32 %v1242_v24, %v1217_v3  ;;  %v4572_v18 = vld [vmem:[%s2973_s23 + $0x2e9] sm:$0xff]  ;;  %v4582_v24 = vld [vmem:[%s2973_s23 + $0x151] sm:$0xff] }
  0xe7   : > { %v1314_v52 = vmul.f32 %v3864_v26, %v4511_v38  ;;  %v1434_v14 = vadd.f32 %v1422_v43, %v1398_v63  ;;  %v1495_v48 = vmul.f32 %v3871_v10, %v4435_v17  ;;  %v1732_v41 = vadd.f32 %v1724_v56, %v1708_v45  ;;  %v4602_v3 = vld [vmem:[%s5044_s1 + $0x9] ss:$0 sm:$0xff]  ;;  %v4607_v63 = vld [vmem:[%s2973_s23 + $0x2ea] sm:$0xff]  ;;  %v4617_v45 = vld [vmem:[%s2973_s23 + $0x152] sm:$0xff] }
  0xe8   : > { %v1773_v53 = vmul.f32 %v4524_v25, %v4440_v9  ;;  %v1615_v50 = vadd.f32 %v1603_v31, %v1579_v16  ;;  %v1531_v0 = vmul.f32 %v3880_v59, %v4450_v19  ;;  %v1290_v26 = vadd.f32 %v1278_v11, %v1254_v27  ;;  %v4622_v16 = vld [vmem:[%s5044_s1 + $0x4] ss:$0 sm:$0xff] }
  0xe9   : > { %v1351_v55 = vmul.f32 %v3887_v4, %v4364_v37  ;;  %v1471_v36 = vadd.f32 %v1459_v32, %v1434_v14  ;;  %v1387_v10 = vmul.f32 %v3894_v5, %v4379_v33  ;;  %v1757_v6 = vadd.f32 %v1749_v15, %v1732_v41  ;;  %v4545_v4 = vld [vmem:[%s2973_s23 + $0x150] sm:$0xff]  ;;  %v4550_v5 = vld [vmem:[%s5044_s1] ss:$0 sm:$0xff]  ;;  %v4557_v33 = vld [vmem:[%s5044_s1 + $0x1] ss:$0 sm:$0xff] }
  0xea   : > { %v1797_v40 = vmul.f32 %v4537_v28, %v4455_v21  ;;  %v1651_v59 = vadd.f32 %v1639_v51, %v1615_v50  ;;  %v1326_v29 = vadd.f32 %v1314_v52, %v1290_v26  ;;  %v1677_v37 = vmul.f32 %v4550_v5, %v4367_v35  ;;  %v4638_v50 = vld [vmem:[%s5044_s1 + $0x11] ss:$0 sm:$0xff] }
  0xeb   : > { %v1701_v49 = vmul.f32 %v4557_v33, %v4384_v22  ;;  %v1507_v44 = vadd.f32 %v1495_v48, %v1471_v36  ;;  %v1568_v1 = vmul.f32 %v3913_v23, %v4542_v34  ;;  %v1781_v13 = vadd.f32 %v1773_v53, %v1757_v6  ;;  %v4577_v22 = vld [vmem:[%s5044_s1 + $0xe] ss:$0 sm:$0xff]  ;;  %v4631_v48 = vld [vmem:[%s5044_s1 + $0xa] ss:$0 sm:$0xff]  ;;  %v4647_v36 = vld [vmem:[%s5044_s1 + $0x12] ss:$0 sm:$0xff] }
  0xec   : > { %v1822_v35 = vmul.f32 %v4566_v30, %v4545_v4  ;;  %2674 = vst [vmem:[%s3312_s11 + $0xa8] sm:$0xff] %v1651_v59  ;;  %v1363_v8 = vadd.f32 %v1351_v55, %v1326_v29  ;;  %v1423_v23 = vmul.f32 %v4577_v22, %v4394_v60  ;;  %v1685_v43 = vadd.f32 %v4587_v47, %v1677_v37  ;;  %v4661_v37 = vld [vmem:[%s5044_s1 + $0xd] ss:$0 sm:$0xff] }
  0xed   : > { %v1725_v56 = vmul.f32 %v4593_v12, %v4399_v58  ;;  %v1543_v61 = vadd.f32 %v1531_v0, %v1507_v44  ;;  %v1604_v60 = vmul.f32 %v3934_v2, %v4572_v18  ;;  %v1805_v31 = vadd.f32 %v1797_v40, %v1781_v13  ;;  %v4612_v58 = vld [vmem:[%s5044_s1 + $0x10] ss:$0 sm:$0xff]  ;;  %v4654_v40 = vld [vmem:[%s5044_s1 + $0xc] ss:$0 sm:$0xff] }
  0xee   : > { %v1846_v11 = vmul.f32 %v4602_v3, %v4582_v24  ;;  %v1399_v32 = vadd.f32 %v1387_v10, %v1363_v8  ;;  %v1460_v2 = vmul.f32 %v4612_v58, %v4476_v20  ;;  %v1709_v15 = vadd.f32 %v1701_v49, %v1685_v43  ;;  %v4671_v8 = vld [vmem:[%s2973_s23 + $0x158] sm:$0xff] }
  0xef   : > { %v1750_v51 = vmul.f32 %v4622_v16, %v4479_v39  ;;  %v1580_v27 = vadd.f32 %v1568_v1, %v1543_v61  ;;  %v1640_v52 = vmul.f32 %v3953_v57, %v4607_v63  ;;  %v1830_v14 = vadd.f32 %v1822_v35, %v1805_v31  ;;  %v4668_v35 = vld [vmem:[%s2973_s23 + $0x2f0] sm:$0xff] }
  0xf0   : > { %v1870_v41 = vmul.f32 %v4631_v48, %v4617_v45  ;;  %v1435_v53 = vadd.f32 %v1423_v23, %v1399_v32  ;;  %v1496_v0 = vmul.f32 %v4638_v50, %v4491_v7  ;;  %v1733_v57 = vadd.f32 %v1725_v56, %v1709_v15  ;;  %v4693_v32 = vld [vmem:[%s2973_s23 + $0x159] sm:$0xff] }
  0xf1   : > { %v1774_v26 = vmul.f32 %v4524_v25, %v4496_v54  ;;  %v1616_v55 = vadd.f32 %v1604_v60, %v1580_v27  ;;  %v1532_v10 = vmul.f32 %v4647_v36, %v4506_v46  ;;  %v1854_v6 = vadd.f32 %v1846_v11, %v1830_v14  ;;  %v4701_v27 = vld [vmem:[%s5044_s1 + $0x15] ss:$0 sm:$0xff] }
  0xf2   : > { %v1895_v59 = vmul.f32 %v4654_v40, %v4420_v42  ;;  %v1472_v29 = vadd.f32 %v1460_v2, %v1435_v53  ;;  %v1919_v49 = vmul.f32 %v4661_v37, %v4435_v17  ;;  %v1758_v44 = vadd.f32 %v1750_v51, %v1733_v57  ;;  %v4680_v17 = vld [vmem:[%s5044_s1 + $0x14] ss:$0 sm:$0xff] }
  0xf3   : > { %v1798_v1 = vmul.f32 %v4537_v28, %v4511_v38  ;;  %v1652_v13 = vadd.f32 %v1640_v52, %v1616_v55  ;;  %v1878_v42 = vadd.f32 %v1870_v41, %v1854_v6  ;;  %v1678_v23 = vmul.f32 %v4550_v5, %v4423_v62  ;;  %v4688_v62 = vld [vmem:[%s2973_s23 + $0x2f1] sm:$0xff] }
  0xf4   : > { %v1702_v43 = vmul.f32 %v4557_v33, %v4440_v9  ;;  %v1508_v56 = vadd.f32 %v1496_v0, %v1472_v29  ;;  %v1569_v61 = vmul.f32 %v4680_v17, %v4668_v35  ;;  %v1782_v60 = vadd.f32 %v1774_v26, %v1758_v44  ;;  %v4708_v41 = vld [vmem:[%s2973_s23 + $0x2f2] sm:$0xff] }
  0xf5   : > { %v1823_v31 = vmul.f32 %v4566_v30, %v4671_v8  ;;  %2675 = vst [vmem:[%s3312_s11 + $0xb0] sm:$0xff] %v1652_v13  ;;  %v1903_v11 = vadd.f32 %v1895_v59, %v1878_v42  ;;  %v1943_v9 = vmul.f32 %v4577_v22, %v4450_v19  ;;  %v1686_v2 = vadd.f32 %v4587_v47, %v1678_v23 }
  0xf6   : > { %v1726_v15 = vmul.f32 %v4593_v12, %v4455_v21  ;;  %v1544_v51 = vadd.f32 %v1532_v10, %v1508_v56  ;;  %v1605_v52 = vmul.f32 %v4701_v27, %v4688_v62  ;;  %v1806_v14 = vadd.f32 %v1798_v1, %v1782_v60  ;;  %v4713_v21 = vld [vmem:[%s2973_s23 + $0x15a] sm:$0xff]  ;;  %v4720_v10 = vld [vmem:[%s5044_s1 + $0x16] ss:$0 sm:$0xff] }
  0xf7   : > { %v1847_v19 = vmul.f32 %v4602_v3, %v4693_v32  ;;  %v1927_v53 = vadd.f32 %v1919_v49, %v1903_v11  ;;  %v1968_v0 = vmul.f32 %v4612_v58, %v4542_v34  ;;  %v1710_v57 = vadd.f32 %v1702_v43, %v1686_v2  ;;  %v4739_v2 = vld [vmem:[%s2973_s23 + $0x300] sm:$0xff] }
  0xf8   : > { %v1751_v26 = vmul.f32 %v4622_v16, %v4545_v4  ;;  %v1581_v55 = vadd.f32 %v1569_v61, %v1544_v51  ;;  %v1641_v6 = vmul.f32 %v4720_v10, %v4708_v41  ;;  %v1831_v59 = vadd.f32 %v1823_v31, %v1806_v14  ;;  %v4742_v51 = vld [vmem:[%s2973_s23 + $0x168] sm:$0xff] }
  0xf9   : > { %v1871_v29 = vmul.f32 %v4631_v48, %v4713_v21  ;;  %v1951_v49 = vadd.f32 %v1943_v9, %v1927_v53  ;;  %v1992_v44 = vmul.f32 %v4638_v50, %v4572_v18  ;;  %v1734_v1 = vadd.f32 %v1726_v15, %v1710_v57 }
  0xfa   : > { %v1775_v13 = vmul.f32 %v4524_v25, %v4582_v24  ;;  %v1617_v42 = vadd.f32 %v1605_v52, %v1581_v55  ;;  %v2016_v23 = vmul.f32 %v4647_v36, %v4607_v63  ;;  %v1855_v43 = vadd.f32 %v1847_v19, %v1831_v59 }
  0xfb   : > { %v1896_v56 = vmul.f32 %v4654_v40, %v4476_v20  ;;  %v1976_v61 = vadd.f32 %v1968_v0, %v1951_v49  ;;  %v1920_v60 = vmul.f32 %v4661_v37, %v4491_v7  ;;  %v1759_v31 = vadd.f32 %v1751_v26, %v1734_v1  ;;  %v4754_v0 = vld [vmem:[%s2973_s23 + $0x301] sm:$0xff]  ;;  %v4759_v26 = vld [vmem:[%s2973_s23 + $0x169] sm:$0xff] }
  0xfc   : > { %v1799_v11 = vmul.f32 %v4537_v28, %v4617_v45  ;;  %v1653_v9 = vadd.f32 %v1641_v6, %v1617_v42  ;;  %v1879_v15 = vadd.f32 %v1871_v29, %v1855_v43  ;;  %v1679_v52 = vmul.f32 %v4550_v5, %v4479_v39 }
  0xfd   : > { %v1703_v20 = vmul.f32 %v4557_v33, %v4496_v54  ;;  %v2000_v14 = vadd.f32 %v1992_v44, %v1976_v61  ;;  %v2041_v7 = vmul.f32 %v4680_v17, %v4739_v2  ;;  %v1783_v19 = vadd.f32 %v1775_v13, %v1759_v31  ;;  %v4769_v44 = vld [vmem:[%s2973_s23 + $0x302] sm:$0xff]  ;;  %v4774_v13 = vld [vmem:[%s2973_s23 + $0x16a] sm:$0xff] }
  0xfe   : > { %v1824_v53 = vmul.f32 %v4566_v30, %v4742_v51  ;;  %2676 = vst [vmem:[%s3312_s11 + $0xb8] sm:$0xff] %v1653_v9  ;;  %v1904_v57 = vadd.f32 %v1896_v56, %v1879_v15  ;;  %v1944_v39 = vmul.f32 %v4577_v22, %v4506_v46  ;;  %v1687_v54 = vadd.f32 %v4587_v47, %v1679_v52 }
  0xff   : > { %v1727_v55 = vmul.f32 %v4593_v12, %v4511_v38  ;;  %v2024_v6 = vadd.f32 %v2016_v23, %v2000_v14  ;;  %v2065_v59 = vmul.f32 %v4701_v27, %v4754_v0  ;;  %v1807_v29 = vadd.f32 %v1799_v11, %v1783_v19 }
 0x100   : > { %v1848_v49 = vmul.f32 %v4602_v3, %v4759_v26  ;;  %v1928_v1 = vadd.f32 %v1920_v60, %v1904_v57  ;;  %v1969_v46 = vmul.f32 %v4612_v58, %v4668_v35  ;;  %v1711_v42 = vadd.f32 %v1703_v20, %v1687_v54  ;;  %v4795_v54 = vld [vmem:[%s2973_s23 + $0x308] sm:$0xff] }
 0x101   : > { %v1752_v38 = vmul.f32 %v4622_v16, %v4671_v8  ;;  %v2049_v23 = vadd.f32 %v2041_v7, %v2024_v6  ;;  %v2089_v43 = vmul.f32 %v4720_v10, %v4769_v44  ;;  %v1832_v56 = vadd.f32 %v1824_v53, %v1807_v29  ;;  %v4798_v6 = vld [vmem:[%s2973_s23 + $0x170] sm:$0xff] }
 0x102   : > { %v1872_v61 = vmul.f32 %v4631_v48, %v4774_v13  ;;  %v1952_v60 = vadd.f32 %v1944_v39, %v1928_v1  ;;  %v1993_v31 = vmul.f32 %v4638_v50, %v4688_v62  ;;  %v1735_v11 = vadd.f32 %v1727_v55, %v1711_v42 }
 0x103   : > { %v1776_v9 = vmul.f32 %v4524_v25, %v4693_v32  ;;  %v2073_v15 = vadd.f32 %v2065_v59, %v2049_v23  ;;  %v2017_v52 = vmul.f32 %v4647_v36, %v4708_v41  ;;  %v1856_v20 = vadd.f32 %v1848_v49, %v1832_v56 }
 0x104   : > { %v1897_v14 = vmul.f32 %v4654_v40, %v4542_v34  ;;  %v1977_v7 = vadd.f32 %v1969_v46, %v1952_v60  ;;  %v1921_v19 = vmul.f32 %v4661_v37, %v4572_v18  ;;  %v1760_v53 = vadd.f32 %v1752_v38, %v1735_v11  ;;  %v4810_v46 = vld [vmem:[%s2973_s23 + $0x309] sm:$0xff]  ;;  %v4815_v38 = vld [vmem:[%s2973_s23 + $0x171] sm:$0xff] }
 0x105   : > { %v1800_v57 = vmul.f32 %v4537_v28, %v4713_v21  ;;  %v2097_v39 = vadd.f32 %v2089_v43, %v2073_v15  ;;  %v1880_v55 = vadd.f32 %v1872_v61, %v1856_v20  ;;  %v1680_v59 = vmul.f32 %v4550_v5, %v4545_v4 }
 0x106   : > { %v1704_v34 = vmul.f32 %v4557_v33, %v4582_v24  ;;  %v2001_v29 = vadd.f32 %v1993_v31, %v1977_v7  ;;  %v2042_v18 = vmul.f32 %v4680_v17, %v4795_v54  ;;  %v1784_v49 = vadd.f32 %v1776_v9, %v1760_v53  ;;  %v4825_v31 = vld [vmem:[%s2973_s23 + $0x30a] sm:$0xff]  ;;  %v4830_v9 = vld [vmem:[%s2973_s23 + $0x172] sm:$0xff] }
 0x107   : > { %v1825_v1 = vmul.f32 %v4566_v30, %v4798_v6  ;;  %2821 = vst [vmem:[%s3312_s11 + $0xc0] sm:$0xff] %v2097_v39  ;;  %v1905_v42 = vadd.f32 %v1897_v14, %v1880_v55  ;;  %v1945_v4 = vmul.f32 %v4577_v22, %v4607_v63  ;;  %v1688_v24 = vadd.f32 %v4587_v47, %v1680_v59 }
 0x108   : > { %v1728_v23 = vmul.f32 %v4593_v12, %v4617_v45  ;;  %v2025_v43 = vadd.f32 %v2017_v52, %v2001_v29  ;;  %v2066_v56 = vmul.f32 %v4701_v27, %v4810_v46  ;;  %v1808_v61 = vadd.f32 %v1800_v57, %v1784_v49 }
 0x109   : > { %v1849_v60 = vmul.f32 %v4602_v3, %v4815_v38  ;;  %v1929_v11 = vadd.f32 %v1921_v19, %v1905_v42  ;;  %v1970_v63 = vmul.f32 %v4612_v58, %v4739_v2  ;;  %v1712_v15 = vadd.f32 %v1704_v34, %v1688_v24  ;;  %v4851_v24 = vld [vmem:[%s2973_s23 + $0x318] sm:$0xff] }
 0x10a   : > { %v1753_v45 = vmul.f32 %v4622_v16, %v4742_v51  ;;  %v2050_v52 = vadd.f32 %v2042_v18, %v2025_v43  ;;  %v2090_v20 = vmul.f32 %v4720_v10, %v4825_v31  ;;  %v1833_v14 = vadd.f32 %v1825_v1, %v1808_v61  ;;  %v4854_v43 = vld [vmem:[%s2973_s23 + $0x180] sm:$0xff] }
 0x10b   : > { %v1873_v7 = vmul.f32 %v4631_v48, %v4830_v9  ;;  %v1953_v19 = vadd.f32 %v1945_v4, %v1929_v11  ;;  %v1994_v53 = vmul.f32 %v4638_v50, %v4754_v0  ;;  %v1736_v57 = vadd.f32 %v1728_v23, %v1712_v15 }
 0x10c   : > { %v1777_v39 = vmul.f32 %v4524_v25, %v4759_v26  ;;  %v2074_v55 = vadd.f32 %v2066_v56, %v2050_v52  ;;  %v2018_v59 = vmul.f32 %v4647_v36, %v4769_v44  ;;  %v1857_v34 = vadd.f32 %v1849_v60, %v1833_v14 }
 0x10d   : > { %v1898_v29 = vmul.f32 %v4654_v40, %v4668_v35  ;;  %v1978_v18 = vadd.f32 %v1970_v63, %v1953_v19  ;;  %v1922_v49 = vmul.f32 %v4661_v37, %v4688_v62  ;;  %v1761_v1 = vadd.f32 %v1753_v45, %v1736_v57  ;;  %v4866_v63 = vld [vmem:[%s2973_s23 + $0x319] sm:$0xff]  ;;  %v4871_v45 = vld [vmem:[%s2973_s23 + $0x181] sm:$0xff] }
 0x10e   : > { %v1801_v42 = vmul.f32 %v4537_v28, %v4774_v13  ;;  %v2098_v4 = vadd.f32 %v2090_v20, %v2074_v55  ;;  %v1881_v23 = vadd.f32 %v1873_v7, %v1857_v34  ;;  %v1681_v56 = vmul.f32 %v4550_v5, %v4671_v8 }
 0x10f   : > { %v1705_v35 = vmul.f32 %v4557_v33, %v4693_v32  ;;  %v2002_v61 = vadd.f32 %v1994_v53, %v1978_v18  ;;  %v2043_v62 = vmul.f32 %v4680_v17, %v4851_v24  ;;  %v1785_v60 = vadd.f32 %v1777_v39, %v1761_v1  ;;  %v4881_v53 = vld [vmem:[%s2973_s23 + $0x31a] sm:$0xff]  ;;  %v2745_v39 = vld [vmem:[%s2973_s23 + $0x182] sm:$0xff] }
 0x110   : > { %v1826_v11 = vmul.f32 %v4566_v30, %v4854_v43  ;;  %2822 = vst [vmem:[%s3312_s11 + $0xc8] sm:$0xff] %v2098_v4  ;;  %v1906_v15 = vadd.f32 %v1898_v29, %v1881_v23  ;;  %v1946_v8 = vmul.f32 %v4577_v22, %v4708_v41  ;;  %v1689_v32 = vadd.f32 %v4587_v47, %v1681_v56 }
 0x111   : > { %v1729_v52 = vmul.f32 %v4593_v12, %v4713_v21  ;;  %v2026_v20 = vadd.f32 %v2018_v59, %v2002_v61  ;;  %v2067_v14 = vmul.f32 %v4701_v27, %v4866_v63  ;;  %v1809_v7 = vadd.f32 %v1801_v42, %v1785_v60 }
 0x112   : > { %v1850_v19 = vmul.f32 %v4602_v3, %v4871_v45  ;;  %v1930_v57 = vadd.f32 %v1922_v49, %v1906_v15  ;;  %v1971_v41 = vmul.f32 %v4612_v58, %v4795_v54  ;;  %v1713_v55 = vadd.f32 %v1705_v35, %v1689_v32  ;;  %v4904_v32 = vld [vmem:[%s2973_s23 + $0x320] sm:$0xff] }
 0x113   : > { %v1754_v34 = vmul.f32 %v4622_v16, %v4798_v6  ;;  %v2051_v21 = vadd.f32 %v2043_v62, %v2026_v20  ;;  %v2091_v59 = vmul.f32 %v4720_v10, %v4881_v53  ;;  %v1834_v29 = vadd.f32 %v1826_v11, %v1809_v7  ;;  %v4907_v20 = vld [vmem:[%s2973_s23 + $0x188] sm:$0xff] }
 0x114   : > { %v1874_v18 = vmul.f32 %v4631_v48, %v2745_v39  ;;  %v1954_v1 = vadd.f32 %v1946_v8, %v1930_v57  ;;  %v1995_v49 = vmul.f32 %v4638_v50, %v4810_v46  ;;  %v1737_v42 = vadd.f32 %v1729_v52, %v1713_v55 }
 0x115   : > { %v1778_v4 = vmul.f32 %v4524_v25, %v4815_v38  ;;  %v2075_v23 = vadd.f32 %v2067_v14, %v2051_v21  ;;  %v2019_v56 = vmul.f32 %v4647_v36, %v4825_v31  ;;  %v1858_v35 = vadd.f32 %v1850_v19, %v1834_v29 }
 0x116   : > { %v1899_v61 = vmul.f32 %v4654_v40, %v4739_v2  ;;  %v1979_v62 = vadd.f32 %v1971_v41, %v1954_v1  ;;  %v1923_v60 = vmul.f32 %v4661_v37, %v4754_v0  ;;  %v1762_v11 = vadd.f32 %v1754_v34, %v1737_v42  ;;  %v4919_v41 = vld [vmem:[%s2973_s23 + $0x321] sm:$0xff]  ;;  %v4924_v34 = vld [vmem:[%s2973_s23 + $0x189] sm:$0xff] }
 0x117   : > { %v1802_v15 = vmul.f32 %v4537_v28, %v4830_v9  ;;  %v2099_v8 = vadd.f32 %v2091_v59, %v2075_v23  ;;  %v1882_v52 = vadd.f32 %v1874_v18, %v1858_v35  ;;  %v1682_v14 = vmul.f32 %v4550_v5, %v4742_v51 }
 0x118   : > { %v1706_v2 = vmul.f32 %v4557_v33, %v4759_v26  ;;  %v2003_v7 = vadd.f32 %v1995_v49, %v1979_v62  ;;  %v2044_v0 = vmul.f32 %v4680_v17, %v4904_v32  ;;  %v1786_v19 = vadd.f32 %v1778_v4, %v1762_v11  ;;  %v4934_v49 = vld [vmem:[%s2973_s23 + $0x322] sm:$0xff]  ;;  %v2746_v4 = vld [vmem:[%s2973_s23 + $0x18a] sm:$0xff] }
 0x119   : > { %v1827_v57 = vmul.f32 %v4566_v30, %v4907_v20  ;;  %2823 = vst [vmem:[%s3312_s11 + $0xd0] sm:$0xff] %v2099_v8  ;;  %v1907_v55 = vadd.f32 %v1899_v61, %v1882_v52  ;;  %v1947_v51 = vmul.f32 %v4577_v22, %v4769_v44  ;;  %v1690_v26 = vadd.f32 %v4587_v47, %v1682_v14 }
 0x11a   : > { %v1730_v21 = vmul.f32 %v4593_v12, %v4774_v13  ;;  %v2027_v59 = vadd.f32 %v2019_v56, %v2003_v7  ;;  %v2068_v29 = vmul.f32 %v4701_v27, %v4919_v41  ;;  %v1810_v18 = vadd.f32 %v1802_v15, %v1786_v19  ;;  %v2731_v7 = vld [vmem:[%s2973_s23 + $0x198] sm:$0xff] }
 0x11b   : > { %v1851_v1 = vmul.f32 %v4602_v3, %v4924_v34  ;;  %v1931_v42 = vadd.f32 %v1923_v60, %v1907_v55  ;;  %v1972_v44 = vmul.f32 %v4612_v58, %v4851_v24  ;;  %v1714_v23 = vadd.f32 %v1706_v2, %v1690_v26 }
 0x11c   : > { %v1755_v13 = vmul.f32 %v4622_v16, %v4854_v43  ;;  %v2052_v56 = vadd.f32 %v2044_v0, %v2027_v59  ;;  %v2092_v35 = vmul.f32 %v4720_v10, %v4934_v49  ;;  %v1835_v61 = vadd.f32 %v1827_v57, %v1810_v18 }
 0x11d   : > { %v1875_v62 = vmul.f32 %v4631_v48, %v2746_v4  ;;  %v1955_v11 = vadd.f32 %v1947_v51, %v1931_v42  ;;  %v1996_v60 = vmul.f32 %v4638_v50, %v4866_v63  ;;  %v1738_v15 = vadd.f32 %v1730_v21, %v1714_v23  ;;  %v2801_v51 = vld [vmem:[%s2973_s23 + $0x330] sm:$0xff]  ;;  %v2739_v21 = vld [vmem:[%s2973_s23 + $0x199] sm:$0xff] }
 0x11e   : > { %v1779_v8 = vmul.f32 %v4524_v25, %v4871_v45  ;;  %v2076_v52 = vadd.f32 %v2068_v29, %v2052_v56  ;;  %v2020_v43 = vmul.f32 %v4647_v36, %v4881_v53  ;;  %v1859_v14 = vadd.f32 %v1851_v1, %v1835_v61  ;;  %v2809_v42 = vld [vmem:[%s2973_s23 + $0x331] sm:$0xff]  ;;  %v2747_v23 = vld [vmem:[%s2973_s23 + $0x19a] sm:$0xff] }
 0x11f   : > { %v1900_v2 = vmul.f32 %v4654_v40, %v4795_v54  ;;  %v1980_v0 = vadd.f32 %v1972_v44, %v1955_v11  ;;  %v1924_v19 = vmul.f32 %v4661_v37, %v4810_v46  ;;  %v1763_v57 = vadd.f32 %v1755_v13, %v1738_v15 }
 0x120   : > { %v1803_v55 = vmul.f32 %v4537_v28, %v2745_v39  ;;  %v2100_v45 = vadd.f32 %v2092_v35, %v2076_v52  ;;  %v1883_v26 = vadd.f32 %v1875_v62, %v1859_v14  ;;  %v1683_v59 = vmul.f32 %v4550_v5, %v4798_v6  ;;  %v2817_v35 = vld [vmem:[%s2973_s23 + $0x332] sm:$0xff] }
 0x121   : > { %v1707_v54 = vmul.f32 %v4557_v33, %v4815_v38  ;;  %v2004_v29 = vadd.f32 %v1996_v60, %v1980_v0  ;;  %v2045_v18 = vmul.f32 %v4680_v17, %v2801_v51  ;;  %v1787_v1 = vadd.f32 %v1779_v8, %v1763_v57 }
 0x122   : > { %v1828_v46 = vmul.f32 %v4566_v30, %v2731_v7  ;;  %2824 = vst [vmem:[%s3312_s11 + $0xd8] sm:$0xff] %v2100_v45  ;;  %v1908_v39 = vadd.f32 %v1900_v2, %v1883_v26  ;;  %v1948_v44 = vmul.f32 %v4577_v22, %v4825_v31  ;;  %v1691_v13 = vadd.f32 %v4587_v47, %v1683_v59  ;;  %v2802_v45 = vld [vmem:[%s2973_s23 + $0x338] sm:$0xff] }
 0x123   : > { %v1731_v5 = vmul.f32 %v4593_v12, %v4830_v9  ;;  %v2028_v33 = vadd.f32 %v2020_v43, %v2004_v29  ;;  %v2069_v6 = vmul.f32 %v4701_v27, %v2809_v42  ;;  %v1811_v38 = vadd.f32 %v1803_v55, %v1787_v1  ;;  %v2810_v29 = vld [vmem:[%s2973_s23 + $0x339] sm:$0xff] }
 0x124   : > { %v1852_v56 = vmul.f32 %v4602_v3, %v2739_v21  ;;  %v1932_v61 = vadd.f32 %v1924_v19, %v1908_v39  ;;  %v1973_v62 = vmul.f32 %v4612_v58, %v4904_v32  ;;  %v1715_v11 = vadd.f32 %v1707_v54, %v1691_v13 }
 0x125   : > { %v1756_v31 = vmul.f32 %v4622_v16, %v4907_v20  ;;  %v2053_v47 = vadd.f32 %v2045_v18, %v2028_v33  ;;  %v2093_v60 = vmul.f32 %v4720_v10, %v2817_v35  ;;  %v1836_v12 = vadd.f32 %v1828_v46, %v1811_v38  ;;  %v2732_v20 = vld [vmem:[%s2973_s23 + $0x1a0] sm:$0xff] }
 0x126   : > { %v1876_v9 = vmul.f32 %v4631_v48, %v2747_v23  ;;  %v1956_v15 = vadd.f32 %v1948_v44, %v1932_v61  ;;  %v1997_v8 = vmul.f32 %v4638_v50, %v4919_v41  ;;  %v1739_v52 = vadd.f32 %v1731_v5, %v1715_v11  ;;  %v2818_v44 = vld [vmem:[%s2973_s23 + $0x33a] sm:$0xff]  ;;  %v2803_v61 = vld [vmem:[%s2973_s23 + $0x348] sm:$0xff] }
 0x127   : > { %v1780_v43 = vmul.f32 %v4524_v25, %v4924_v34  ;;  %v2077_v14 = vadd.f32 %v2069_v6, %v2053_v47  ;;  %v1860_v2 = vadd.f32 %v1852_v56, %v1836_v12  ;;  %v1901_v16 = vmul.f32 %v4654_v40, %v4851_v24  ;;  %v2740_v34 = vld [vmem:[%s2973_s23 + $0x1a1] sm:$0xff]  ;;  %v2811_v47 = vld [vmem:[%s2973_s23 + $0x349] sm:$0xff] }
 0x128   : > { %v1981_v7 = vadd.f32 %v1973_v62, %v1956_v15  ;;  %v2021_v0 = vmul.f32 %v4647_v36, %v4934_v49  ;;  %v1764_v19 = vadd.f32 %v1756_v31, %v1739_v52  ;;  %v1804_v57 = vmul.f32 %v4537_v28, %v2746_v4  ;;  %v2748_v4 = vld [vmem:[%s2973_s23 + $0x1a2] sm:$0xff] }
 0x129   : > { %v2101_v55 = vadd.f32 %v2093_v60, %v2077_v14  ;;  %v1884_v26 = vadd.f32 %v1876_v9, %v1860_v2  ;;  %v1925_v25 = vmul.f32 %v4661_v37, %v4866_v63  ;;  %v2046_v24 = vmul.f32 %v4680_v17, %v2802_v45 }
 0x12a   : > { %v2005_v21 = vadd.f32 %v1997_v8, %v1981_v7  ;;  %v1788_v59 = vadd.f32 %v1780_v43, %v1764_v19  ;;  %v1829_v54 = vmul.f32 %v4566_v30, %v2732_v20  ;;  %v1949_v28 = vmul.f32 %v4577_v22, %v4881_v53  ;;  %v2812_v7 = vld [vmem:[%s2973_s23 + $0x351] sm:$0xff] }
 0x12b   : > { %2825 = vst [vmem:[%s3312_s11 + $0xe0] sm:$0xff] %v2101_v55  ;;  %v1909_v18 = vadd.f32 %v1901_v16, %v1884_v26  ;;  %v2070_v46 = vmul.f32 %v4701_v27, %v2810_v29  ;;  %v1853_v63 = vmul.f32 %v4602_v3, %v2740_v34  ;;  %v1974_v13 = vmul.f32 %v4612_v58, %v2801_v51  ;;  %v2804_v16 = vld [vmem:[%s2973_s23 + $0x350] sm:$0xff] }
 0x12c   : > { %v2029_v1 = vadd.f32 %v2021_v0, %v2005_v21  ;;  %v1812_v39 = vadd.f32 %v1804_v57, %v1788_v59  ;;  %v2094_v5 = vmul.f32 %v4720_v10, %v2818_v44  ;;  %v1877_v53 = vmul.f32 %v4631_v48, %v2748_v4  ;;  %v2820_v57 = vld [vmem:[%s2973_s23 + $0x352] sm:$0xff] }
 0x12d   : > { %v1933_v23 = vadd.f32 %v1925_v25, %v1909_v18  ;;  %v1998_v38 = vmul.f32 %v4638_v50, %v2809_v42  ;;  %v1902_v3 = vmul.f32 %v4654_v40, %v4904_v32  ;;  %v2022_v51 = vmul.f32 %v4647_v36, %v2817_v35  ;;  %v2819_v42 = vld [vmem:[%s2973_s23 + $0x34a] sm:$0xff] }
 0x12e   : > { %v2054_v30 = vadd.f32 %v2046_v24, %v2029_v1  ;;  %v1837_v33 = vadd.f32 %v1829_v54, %v1812_v39  ;;  %v1926_v12 = vmul.f32 %v4661_v37, %v4919_v41  ;;  %v2047_v9 = vmul.f32 %v4680_v17, %v2803_v61 }
 0x12f   : > { %v1957_v6 = vadd.f32 %v1949_v28, %v1933_v23  ;;  %v1950_v40 = vmul.f32 %v4577_v22, %v4934_v49  ;;  %v2071_v35 = vmul.f32 %v4701_v27, %v2811_v47  ;;  %v1975_v52 = vmul.f32 %v4612_v58, %v2802_v45 }
 0x130   : > { %v2078_v56 = vadd.f32 %v2070_v46, %v2054_v30  ;;  %v1861_v62 = vadd.f32 %v1853_v63, %v1837_v33  ;;  %v2095_v41 = vmul.f32 %v4720_v10, %v2819_v42  ;;  %v1999_v14 = vmul.f32 %v4638_v50, %v2810_v29 }
 0x131   : > { %v1982_v11 = vadd.f32 %v1974_v13, %v1957_v6  ;;  %v2023_v22 = vmul.f32 %v4647_v36, %v2818_v44  ;;  %v2048_v19 = vmul.f32 %v4680_v17, %v2804_v16  ;;  %v2072_v55 = vmul.f32 %v4701_v27, %v2812_v7 }
 0x132   : > { %v2102_v31 = vadd.f32 %v2094_v5, %v2078_v56  ;;  %v1885_v60 = vadd.f32 %v1877_v53, %v1861_v62  ;;  %v2096_v26 = vmul.f32 %v4720_v10, %v2820_v57 }
 0x133   : > { %v2006_v48 = vadd.f32 %v1998_v38, %v1982_v11 }
 0x134   : > { %2826 = vst [vmem:[%s3312_s11 + $0xe8] sm:$0xff] %v2102_v31  ;;  %v1910_v15 = vadd.f32 %v1902_v3, %v1885_v60 }
 0x135   : > { %v2030_v32 = vadd.f32 %v2022_v51, %v2006_v48 }
 0x136   : > { %v1934_v8 = vadd.f32 %v1926_v12, %v1910_v15 }
 0x137   : > { %v2055_v37 = vadd.f32 %v2047_v9, %v2030_v32 }
 0x138   : > { %v1958_v43 = vadd.f32 %v1950_v40, %v1934_v8 }
 0x139   : > { %v2079_v2 = vadd.f32 %v2071_v35, %v2055_v37 }
 0x13a   : > { %v1983_v20 = vadd.f32 %v1975_v52, %v1958_v43 }
 0x13b   : > { %v2103_v49 = vadd.f32 %v2095_v41, %v2079_v2 }
 0x13c   : > { %v2007_v0 = vadd.f32 %v1999_v14, %v1983_v20 }
 0x13d   : > { %2827 = vst [vmem:[%s3312_s11 + $0xf0] sm:$0xff] %v2103_v49 }
 0x13e   : > { %v2031_v58 = vadd.f32 %v2023_v22, %v2007_v0 }
 0x140   : > { %v2056_v45 = vadd.f32 %v2048_v19, %v2031_v58 }
 0x142   : > { %v2080_v50 = vadd.f32 %v2072_v55, %v2056_v45 }
 0x144   : > { %v2104_v25 = vadd.f32 %v2096_v26, %v2080_v50 }
 0x146   : > { %2828 = vst [vmem:[%s3312_s11 + $0xf8] sm:$0xff] %v2104_v25 }
 0x147 PF: > { %s13_s14 = sadd.s32 1, %s2917_s14   ;;  %s5082_s12 = smov %s2913_s13 }
 0x148   : > { %p10_p5 = scmp.ge.s32.totalorder %s13_s14, 4   ;;  %s5083_s13 = smov %s5085_s15 }
 0x14a   :  { %12 = sbr.rel (!%p10_p5) target bundleno = 2 (0x2), region = 92 }

</bundles_post_ra>
